<compile_context>
chip_gen: v7x
topology: tpu7x:2x2x1
jax: 0.10.0
libtpu: 0.0.40
codegen_flags: <defaults>
</compile_context>

<pallas_src>
import functools
import math

import jax
import jax.numpy as jnp
from jax.experimental import pallas as pl
from jax.experimental.pallas import tpu as pltpu

# ---------------- config (small synthetic Whisper) ----------------
B = 2            # batch
N_MELS = 16      # mel bins (Whisper uses 80; small here)
T_IN = 16        # input mel frames
T_ENC = 8        # frames after stride-2 conv2
D = 32           # d_model
H = 4            # attention heads
HD = D // H      # head dim
FFN = 64         # encoder/decoder ffn dim
VOCAB = 64       # vocab size
VPAD = 128       # vocab padded to a full lane width
T_DEC = 8        # decoder / label length
N_ENC_LAYERS = 1
N_DEC_LAYERS = 1
MAX_DEC_POS = 16
DEC_START = 1    # decoder_start_token_id
PAD_ID = 0       # pad_token_id
NEG_INF = -1e9
_INV_SQRT2 = 1.0 / math.sqrt(2.0)
_ATTN_SCALE = HD ** -0.5


# ---------------- small helpers (traced inside kernels) ----------------
def _zero_map(ndim):
    def idx(i):
        return (0,) * ndim
    return idx


def _gelu(x):
    # exact (erf) GELU, matching torch.nn.GELU default
    return 0.5 * x * (1.0 + jax.lax.erf(x * _INV_SQRT2))


def _layernorm(x, g, b):
    m = jnp.mean(x, axis=-1, keepdims=True)
    v = jnp.mean(jnp.square(x - m), axis=-1, keepdims=True)
    return (x - m) * jax.lax.rsqrt(v + 1e-5) * g + b


def _mha(h, kv, wq, bq, wk, wv, bv, wo, bo, mask):
    """Multi-head attention on one batch element, all in VMEM/vregs.

    h: (Tq, D) queries source, kv: (Tk, D) key/value source, mask: (Tq, Tk) or None.
    Heads are an unrolled loop; no k_proj bias (Whisper convention).
    """
    q = (jnp.dot(h, wq, preferred_element_type=jnp.float32) + bq) * _ATTN_SCALE
    k = jnp.dot(kv, wk, preferred_element_type=jnp.float32)
    v = jnp.dot(kv, wv, preferred_element_type=jnp.float32) + bv
    outs = []
    for head in range(H):
        sl = slice(head * HD, (head + 1) * HD)
        s = jnp.dot(q[:, sl], k[:, sl].T, preferred_element_type=jnp.float32)
        if mask is not None:
            s = s + mask
        s = s - jnp.max(s, axis=-1, keepdims=True)
        p = jnp.exp(s)
        p = p * pl.reciprocal(jnp.sum(p, axis=-1, keepdims=True), approx=True)
        outs.append(jnp.dot(p, v[:, sl], preferred_element_type=jnp.float32))
    o = jnp.concatenate(outs, axis=-1)
    return jnp.dot(o, wo, preferred_element_type=jnp.float32) + bo


# ---------------- fused transformer-layer kernels ----------------
def _make_encoder_layer_kernel(apply_final_ln):
    def kernel(x_ref,
               ln1_g, ln1_b, q_w, q_b, k_w, v_w, v_b, o_w, o_b,
               ln2_g, ln2_b, fc1_w, fc1_b, fc2_w, fc2_b,
               *rest):
        if apply_final_ln:
            fin_g, fin_b, o_ref = rest
        else:
            (o_ref,) = rest
        x = x_ref[0]                                             # (T, D)
        h = _layernorm(x, ln1_g[...], ln1_b[...])
        x = x + _mha(h, h, q_w[...], q_b[...], k_w[...],
                     v_w[...], v_b[...], o_w[...], o_b[...], mask=None)
        h = _layernorm(x, ln2_g[...], ln2_b[...])
        h = _gelu(jnp.dot(h, fc1_w[...], preferred_element_type=jnp.float32) + fc1_b[...])
        h = jnp.dot(h, fc2_w[...], preferred_element_type=jnp.float32) + fc2_b[...]
        x = x + h
        if apply_final_ln:
            x = _layernorm(x, fin_g[...], fin_b[...])
        o_ref[0] = x.astype(o_ref.dtype)
    return kernel


def _make_decoder_layer_kernel(apply_final_ln):
    def kernel(x_ref, enc_ref,
               ln1_g, ln1_b, sq_w, sq_b, sk_w, sv_w, sv_b, so_w, so_b,
               lnx_g, lnx_b, xq_w, xq_b, xk_w, xv_w, xv_b, xo_w, xo_b,
               ln2_g, ln2_b, fc1_w, fc1_b, fc2_w, fc2_b,
               *rest):
        if apply_final_ln:
            fin_g, fin_b, o_ref = rest
        else:
            (o_ref,) = rest
        x = x_ref[0]                                             # (Td, D)
        enc = enc_ref[0]                                         # (Te, D)
        Td = x.shape[0]
        rows = jax.lax.broadcasted_iota(jnp.int32, (Td, Td), 0)
        cols = jax.lax.broadcasted_iota(jnp.int32, (Td, Td), 1)
        causal = jnp.where(rows >= cols, 0.0, NEG_INF).astype(jnp.float32)

        # masked self-attention
        h = _layernorm(x, ln1_g[...], ln1_b[...])
        x = x + _mha(h, h, sq_w[...], sq_b[...], sk_w[...],
                     sv_w[...], sv_b[...], so_w[...], so_b[...], mask=causal)
        # cross-attention over encoder states
        h = _layernorm(x, lnx_g[...], lnx_b[...])
        x = x + _mha(h, enc, xq_w[...], xq_b[...], xk_w[...],
                     xv_w[...], xv_b[...], xo_w[...], xo_b[...], mask=None)
        # FFN
        h = _layernorm(x, ln2_g[...], ln2_b[...])
        h = _gelu(jnp.dot(h, fc1_w[...], preferred_element_type=jnp.float32) + fc1_b[...])
        h = jnp.dot(h, fc2_w[...], preferred_element_type=jnp.float32) + fc2_b[...]
        x = x + h
        if apply_final_ln:
            x = _layernorm(x, fin_g[...], fin_b[...])
        o_ref[0] = x.astype(o_ref.dtype)
    return kernel


def encoder_layer(x, p, final_ln=None):
    Bx, T, Dm = x.shape
    b2 = lambda v: v.reshape(1, -1)
    args = [
        x,
        b2(p["ln1_g"]), b2(p["ln1_b"]),
        p["attn_q_w"], b2(p["attn_q_b"]), p["attn_k_w"],
        p["attn_v_w"], b2(p["attn_v_b"]), p["attn_o_w"], b2(p["attn_o_b"]),
        b2(p["ln2_g"]), b2(p["ln2_b"]),
        p["fc1_w"], b2(p["fc1_b"]), p["fc2_w"], b2(p["fc2_b"]),
    ]
    if final_ln is not None:
        args += [b2(final_ln[0]), b2(final_ln[1])]
    in_specs = [pl.BlockSpec((1, T, Dm), lambda i: (i, 0, 0))] + [
        pl.BlockSpec(a.shape, _zero_map(a.ndim)) for a in args[1:]
    ]
    return pl.pallas_call(
        _make_encoder_layer_kernel(final_ln is not None),
        grid=(Bx,),
        out_shape=jax.ShapeDtypeStruct((Bx, T, Dm), jnp.float32),
        in_specs=in_specs,
        out_specs=pl.BlockSpec((1, T, Dm), lambda i: (i, 0, 0)),
        compiler_params=pltpu.CompilerParams(dimension_semantics=("parallel",)),
    )(*args)


def decoder_layer(x, enc, p, final_ln=None):
    Bx, Td, Dm = x.shape
    Te = enc.shape[1]
    b2 = lambda v: v.reshape(1, -1)
    args = [
        x, enc,
        b2(p["ln1_g"]), b2(p["ln1_b"]),
        p["attn_q_w"], b2(p["attn_q_b"]), p["attn_k_w"],
        p["attn_v_w"], b2(p["attn_v_b"]), p["attn_o_w"], b2(p["attn_o_b"]),
        b2(p["lnx_g"]), b2(p["lnx_b"]),
        p["xattn_q_w"], b2(p["xattn_q_b"]), p["xattn_k_w"],
        p["xattn_v_w"], b2(p["xattn_v_b"]), p["xattn_o_w"], b2(p["xattn_o_b"]),
        b2(p["ln2_g"]), b2(p["ln2_b"]),
        p["fc1_w"], b2(p["fc1_b"]), p["fc2_w"], b2(p["fc2_b"]),
    ]
    if final_ln is not None:
        args += [b2(final_ln[0]), b2(final_ln[1])]
    in_specs = [
        pl.BlockSpec((1, Td, Dm), lambda i: (i, 0, 0)),
        pl.BlockSpec((1, Te, Dm), lambda i: (i, 0, 0)),
    ] + [pl.BlockSpec(a.shape, _zero_map(a.ndim)) for a in args[2:]]
    return pl.pallas_call(
        _make_decoder_layer_kernel(final_ln is not None),
        grid=(Bx,),
        out_shape=jax.ShapeDtypeStruct((Bx, Td, Dm), jnp.float32),
        in_specs=in_specs,
        out_specs=pl.BlockSpec((1, Td, Dm), lambda i: (i, 0, 0)),
        compiler_params=pltpu.CompilerParams(dimension_semantics=("parallel",)),
    )(*args)


# ---------------- generic fused matmul (+bias, +gelu) kernel ----------------
def _linear_kernel(*refs, activation, has_bias):
    if has_bias:
        x_ref, w_ref, b_ref, o_ref = refs
    else:
        x_ref, w_ref, o_ref = refs
    acc = jnp.dot(x_ref[...], w_ref[...], preferred_element_type=jnp.float32)
    if has_bias:
        acc = acc + b_ref[...]
    if activation == "gelu":
        acc = _gelu(acc)
    o_ref[...] = acc.astype(o_ref.dtype)


def linear(x, w, b=None, activation=None):
    """x: (M, K), w: (K, N), b: (N,) or None -> (M, N); matmul (+bias, +gelu) in one kernel."""
    M, _ = x.shape
    N = w.shape[1]
    args = [x, w]
    if b is not None:
        args.append(b.reshape(1, N))
    return pl.pallas_call(
        functools.partial(_linear_kernel, activation=activation, has_bias=b is not None),
        grid=(1,),
        out_shape=jax.ShapeDtypeStruct((M, N), jnp.float32),
        in_specs=[pl.BlockSpec(a.shape, _zero_map(a.ndim)) for a in args],
        out_specs=pl.BlockSpec((M, N), _zero_map(2)),
    )(*args)


# ---------------- fused LM head + cross-entropy (vocab padded to 128 lanes) ----------------
def _lm_head_ce_kernel(h_ref, w_ref, oh_ref, valid_ref, logits_ref, loss_ref):
    logits = jnp.dot(h_ref[...], w_ref[...], preferred_element_type=jnp.float32)  # (M, VPAD)
    logits_ref[...] = logits
    cols = jax.lax.broadcasted_iota(jnp.int32, logits.shape, 1)
    masked = jnp.where(cols < VOCAB, logits, NEG_INF)        # pad columns excluded from LSE
    m = jnp.max(masked, axis=-1, keepdims=True)
    lse = jnp.log(jnp.sum(jnp.exp(masked - m), axis=-1, keepdims=True)) + m
    tgt = jnp.sum(logits * oh_ref[...], axis=-1, keepdims=True)
    nll = (lse - tgt) * valid_ref[...]
    total = jnp.sum(nll, axis=(0, 1), keepdims=True)
    count = jnp.maximum(jnp.sum(valid_ref[...]), 1.0)
    loss_ref[...] = total / count


def lm_head_ce(h2d, w_lm, onehot, valid):
    M = h2d.shape[0]
    return pl.pallas_call(
        _lm_head_ce_kernel,
        grid=(1,),
        out_shape=(jax.ShapeDtypeStruct((M, VPAD), jnp.float32),
                   jax.ShapeDtypeStruct((1, 1), jnp.float32)),
        in_specs=[pl.BlockSpec(a.shape, _zero_map(a.ndim))
                  for a in (h2d, w_lm, onehot, valid)],
        out_specs=(pl.BlockSpec((M, VPAD), _zero_map(2)),
                   pl.BlockSpec((1, 1), _zero_map(2))),
    )(h2d, w_lm, onehot, valid)


# ---------------- glue: conv frontend (3 strided slices + fused matmul) ----------------
def conv1d_gelu(x, w, b, stride):
    """x: (B, C_in, T); w: (C_out, C_in, K); stride conv with pad=1, GELU. Returns (B, T_out, C_out)."""
    Bx, Cin, T = x.shape
    Cout, _, K = w.shape
    Tout = (T + 2 - K) // stride + 1
    xp = jnp.pad(x, ((0, 0), (0, 0), (1, 1)))
    # im2col as K strided slices concatenated on the channel axis (no 4-D stack/transpose)
    cols = jnp.concatenate(
        [xp[:, :, k:k + stride * Tout:stride] for k in range(K)], axis=1
    )                                                   # (B, K*Cin, Tout), k-major
    cols = cols.transpose(0, 2, 1).reshape(Bx * Tout, K * Cin)
    wf = w.transpose(2, 1, 0).reshape(K * Cin, Cout)    # matching k-major layout
    y = linear(cols, wf, b, activation="gelu")
    return y.reshape(Bx, Tout, Cout)


# ---------------- model forward ----------------
def shift_tokens_right(labels):
    start = jnp.full((labels.shape[0], 1), DEC_START, labels.dtype)
    shifted = jnp.concatenate([start, labels[:, :-1]], axis=1)
    return jnp.where(shifted == -100, PAD_ID, shifted)


def whisper_forward(params, input_values, labels=None):
    Bx = input_values.shape[0]

    # ----- encoder -----
    h1 = conv1d_gelu(input_values, params["conv1_w"], params["conv1_b"], stride=1)            # (B, T_IN, D)
    h2 = conv1d_gelu(h1.transpose(0, 2, 1), params["conv2_w"], params["conv2_b"], stride=2)   # (B, T_ENC, D)
    x = h2 + params["enc_pos"][None]
    n_enc = len(params["enc_layers"])
    for li, lp in enumerate(params["enc_layers"]):
        fin = (params["enc_ln_g"], params["enc_ln_b"]) if li == n_enc - 1 else None
        x = encoder_layer(x, lp, final_ln=fin)
    enc = x

    # ----- decoder -----
    if labels is not None:
        dec_ids = shift_tokens_right(labels)
    else:
        dec_ids = jnp.full((Bx, 1), DEC_START, jnp.int32)
    Td = dec_ids.shape[1]
    h = params["embed_tokens"][dec_ids] + params["dec_pos"][:Td][None]
    n_dec = len(params["dec_layers"])
    for li, lp in enumerate(params["dec_layers"]):
        fin = (params["dec_ln_g"], params["dec_ln_b"]) if li == n_dec - 1 else None
        h = decoder_layer(h, enc, lp, final_ln=fin)

    # LM head tied to token embedding (no bias); vocab padded to 128 lanes.
    w_lm = jnp.zeros((D, VPAD), jnp.float32).at[:, :VOCAB].set(params["embed_tokens"].T)
    h2d = h.reshape(Bx * Td, D)

    if labels is None:
        logits_pad = linear(h2d, w_lm, b=None)
        logits = logits_pad[:, :VOCAB].reshape(Bx, Td, VOCAB)
        return {"logits": logits, "encoder_last_hidden_state": enc}

    onehot = jax.nn.one_hot(jnp.maximum(labels, 0), VPAD, dtype=jnp.float32).reshape(Bx * Td, VPAD)
    valid = (labels >= 0).astype(jnp.float32).reshape(Bx * Td, 1)
    logits_pad, loss = lm_head_ce(h2d, w_lm, onehot, valid)
    logits = logits_pad[:, :VOCAB].reshape(Bx, Td, VOCAB)
    return {"loss": loss[0, 0], "logits": logits, "encoder_last_hidden_state": enc}


# ---------------- deterministic parameter init ----------------
def sinusoids(length, channels, max_timescale=10000.0):
    log_inc = math.log(max_timescale) / (channels // 2 - 1)
    inv = jnp.exp(-log_inc * jnp.arange(channels // 2, dtype=jnp.float32))
    t = jnp.arange(length, dtype=jnp.float32)[:, None] * inv[None, :]
    return jnp.concatenate([jnp.sin(t), jnp.cos(t)], axis=1)


def init_params(key):
    keys = iter(jax.random.split(key, 256))

    def w(shape, scale=0.02):
        return scale * jax.random.normal(next(keys), shape, jnp.float32)

    def zeros(shape):
        return jnp.zeros(shape, jnp.float32)

    def ones(shape):
        return jnp.ones(shape, jnp.float32)

    def attn_block(prefix):
        return {
            prefix + "q_w": w((D, D)), prefix + "q_b": zeros((D,)),
            prefix + "k_w": w((D, D)),                      # no k bias in Whisper
            prefix + "v_w": w((D, D)), prefix + "v_b": zeros((D,)),
            prefix + "o_w": w((D, D)), prefix + "o_b": zeros((D,)),
        }

    def enc_layer():
        p = {}
        p.update(attn_block("attn_"))
        p.update({
            "ln1_g": ones((D,)), "ln1_b": zeros((D,)),
            "ln2_g": ones((D,)), "ln2_b": zeros((D,)),
            "fc1_w": w((D, FFN)), "fc1_b": zeros((FFN,)),
            "fc2_w": w((FFN, D)), "fc2_b": zeros((D,)),
        })
        return p

    def dec_layer():
        p = enc_layer()
        p.update(attn_block("xattn_"))
        p.update({"lnx_g": ones((D,)), "lnx_b": zeros((D,))})
        return p

    params = {
        "conv1_w": w((D, N_MELS, 3)), "conv1_b": zeros((D,)),
        "conv2_w": w((D, D, 3)), "conv2_b": zeros((D,)),
        "enc_pos": sinusoids(T_ENC, D),
        "enc_layers": [enc_layer() for _ in range(N_ENC_LAYERS)],
        "enc_ln_g": ones((D,)), "enc_ln_b": zeros((D,)),
        "embed_tokens": w((VOCAB, D)),
        "dec_pos": w((MAX_DEC_POS, D)),
        "dec_layers": [dec_layer() for _ in range(N_DEC_LAYERS)],
        "dec_ln_g": ones((D,)), "dec_ln_b": zeros((D,)),
    }
    return params


# ---------------- main ----------------
if __name__ == "__main__":
    key = jax.random.PRNGKey(0)
    pkey, xkey, lkey = jax.random.split(key, 3)
    params = init_params(pkey)

    input_values = jax.random.normal(xkey, (B, N_MELS, T_IN), jnp.float32)
    labels = jax.random.randint(lkey, (B, T_DEC), 0, VOCAB).astype(jnp.int32)

    fwd = jax.jit(whisper_forward)
    out = fwd(params, input_values, labels)
    jax.block_until_ready(out)

    assert out["logits"].shape == (B, T_DEC, VOCAB)
    assert out["encoder_last_hidden_state"].shape == (B, T_ENC, D)
    assert jnp.isfinite(out["loss"]).item()
    assert bool(jnp.all(jnp.isfinite(out["logits"])))
    print("KERNEL_OK")
</pallas_src>

<mosaic_0001>
module attributes {stable_mosaic.version = 11 : i64} {
  func.func @_linear_kernel(%arg0: i32, %arg1: memref<32x48xf32, #tpu.memory_space<vmem>>, %arg2: memref<48x32xf32, #tpu.memory_space<vmem>>, %arg3: memref<1x32xf32, #tpu.memory_space<vmem>>, %arg4: memref<32x32xf32, #tpu.memory_space<vmem>>) attributes {dimension_semantics = [#tpu.dimension_semantics<arbitrary>], iteration_bounds = array<i64: 1>, scalar_prefetch = 0 : i64, scratch_operands = 0 : i64, tpu.core_type = #tpu.core_type<tc>, window_params = [{pipeline_mode = #tpu.pipeline_mode<synchronous>, transform_indices = @transform_0, window_bounds = array<i64: 32, 48>}, {pipeline_mode = #tpu.pipeline_mode<synchronous>, transform_indices = @transform_1, window_bounds = array<i64: 48, 32>}, {pipeline_mode = #tpu.pipeline_mode<synchronous>, transform_indices = @transform_2, window_bounds = array<i64: 1, 32>}, {pipeline_mode = #tpu.pipeline_mode<synchronous>, transform_indices = @transform_3, window_bounds = array<i64: 32, 32>}]} {
    %c0 = arith.constant 0 : index
    %c0_0 = arith.constant 0 : index
    %0 = vector.load %arg1[%c0, %c0_0] : memref<32x48xf32, #tpu.memory_space<vmem>>, vector<32x48xf32>
    %c0_1 = arith.constant 0 : index
    %c0_2 = arith.constant 0 : index
    %1 = vector.load %arg2[%c0_1, %c0_2] : memref<48x32xf32, #tpu.memory_space<vmem>>, vector<48x32xf32>
    %cst = arith.constant dense<0.000000e+00> : vector<32x32xf32>
    %2 = tpu.matmul %0, %1, %cst {dimension_numbers = #tpu.dot_dimension_numbers<[1], [0], [0], [1], [0, 0, 1, 1], [], []>} : vector<32x48xf32>, vector<48x32xf32>, vector<32x32xf32> -> vector<32x32xf32>
    %c0_3 = arith.constant 0 : index
    %c0_4 = arith.constant 0 : index
    %3 = vector.load %arg3[%c0_3, %c0_4] : memref<1x32xf32, #tpu.memory_space<vmem>>, vector<1x32xf32>
    %4 = vector.broadcast %3 : vector<1x32xf32> to vector<32x32xf32>
    %5 = arith.addf %2, %4 : vector<32x32xf32>
    %cst_5 = arith.constant 5.000000e-01 : f32
    %6 = vector.broadcast %cst_5 : f32 to vector<32x32xf32>
    %7 = arith.mulf %6, %5 : vector<32x32xf32>
    %cst_6 = arith.constant 0.707106769 : f32
    %8 = vector.broadcast %cst_6 : f32 to vector<32x32xf32>
    %9 = arith.mulf %5, %8 : vector<32x32xf32>
    %10 = math.erf %9 : vector<32x32xf32>
    %cst_7 = arith.constant 1.000000e+00 : f32
    %11 = vector.broadcast %cst_7 : f32 to vector<32x32xf32>
    %12 = arith.addf %11, %10 : vector<32x32xf32>
    %13 = arith.mulf %7, %12 : vector<32x32xf32>
    %c0_8 = arith.constant 0 : index
    %c0_9 = arith.constant 0 : index
    %14 = vector.load %arg4[%c0_8, %c0_9] : memref<32x32xf32, #tpu.memory_space<vmem>>, vector<32x32xf32>
    tpu.vector_store %arg4[%c0_8, %c0_9], %13 {strides = array<i32>} : memref<32x32xf32, #tpu.memory_space<vmem>>, vector<32x32xf32>,
    return
  }
  func.func @transform_0(%arg0: i32) -> (i32, i32) {
    %c0_i32 = arith.constant 0 : i32
    %c0_i32_0 = arith.constant 0 : i32
    %c0_i32_1 = arith.constant 0 : i32
    return %c0_i32, %c0_i32_0 : i32, i32
  }
  func.func @transform_1(%arg0: i32) -> (i32, i32) {
    %c0_i32 = arith.constant 0 : i32
    %c0_i32_0 = arith.constant 0 : i32
    %c0_i32_1 = arith.constant 0 : i32
    return %c0_i32, %c0_i32_0 : i32, i32
  }
  func.func @transform_2(%arg0: i32) -> (i32, i32) {
    %c0_i32 = arith.constant 0 : i32
    %c0_i32_0 = arith.constant 0 : i32
    %c0_i32_1 = arith.constant 0 : i32
    return %c0_i32, %c0_i32_0 : i32, i32
  }
  func.func @transform_3(%arg0: i32) -> (i32, i32) {
    %c0_i32 = arith.constant 0 : i32
    %c0_i32_0 = arith.constant 0 : i32
    %c0_i32_1 = arith.constant 0 : i32
    return %c0_i32, %c0_i32_0 : i32, i32
  }
}

module attributes {stable_mosaic.version = 11 : i64} {
  func.func @_linear_kernel(%arg0: i32, %arg1: memref<16x96xf32, #tpu.memory_space<vmem>>, %arg2: memref<96x32xf32, #tpu.memory_space<vmem>>, %arg3: memref<1x32xf32, #tpu.memory_space<vmem>>, %arg4: memref<16x32xf32, #tpu.memory_space<vmem>>) attributes {dimension_semantics = [#tpu.dimension_semantics<arbitrary>], iteration_bounds = array<i64: 1>, scalar_prefetch = 0 : i64, scratch_operands = 0 : i64, tpu.core_type = #tpu.core_type<tc>, window_params = [{pipeline_mode = #tpu.pipeline_mode<synchronous>, transform_indices = @transform_0, window_bounds = array<i64: 16, 96>}, {pipeline_mode = #tpu.pipeline_mode<synchronous>, transform_indices = @transform_1, window_bounds = array<i64: 96, 32>}, {pipeline_mode = #tpu.pipeline_mode<synchronous>, transform_indices = @transform_2, window_bounds = array<i64: 1, 32>}, {pipeline_mode = #tpu.pipeline_mode<synchronous>, transform_indices = @transform_3, window_bounds = array<i64: 16, 32>}]} {
    %c0 = arith.constant 0 : index
    %c0_0 = arith.constant 0 : index
    %0 = vector.load %arg1[%c0, %c0_0] : memref<16x96xf32, #tpu.memory_space<vmem>>, vector<16x96xf32>
    %c0_1 = arith.constant 0 : index
    %c0_2 = arith.constant 0 : index
    %1 = vector.load %arg2[%c0_1, %c0_2] : memref<96x32xf32, #tpu.memory_space<vmem>>, vector<96x32xf32>
    %cst = arith.constant dense<0.000000e+00> : vector<16x32xf32>
    %2 = tpu.matmul %0, %1, %cst {dimension_numbers = #tpu.dot_dimension_numbers<[1], [0], [0], [1], [0, 0, 1, 1], [], []>} : vector<16x96xf32>, vector<96x32xf32>, vector<16x32xf32> -> vector<16x32xf32>
    %c0_3 = arith.constant 0 : index
    %c0_4 = arith.constant 0 : index
    %3 = vector.load %arg3[%c0_3, %c0_4] : memref<1x32xf32, #tpu.memory_space<vmem>>, vector<1x32xf32>
    %4 = vector.broadcast %3 : vector<1x32xf32> to vector<16x32xf32>
    %5 = arith.addf %2, %4 : vector<16x32xf32>
    %cst_5 = arith.constant 5.000000e-01 : f32
    %6 = vector.broadcast %cst_5 : f32 to vector<16x32xf32>
    %7 = arith.mulf %6, %5 : vector<16x32xf32>
    %cst_6 = arith.constant 0.707106769 : f32
    %8 = vector.broadcast %cst_6 : f32 to vector<16x32xf32>
    %9 = arith.mulf %5, %8 : vector<16x32xf32>
    %10 = math.erf %9 : vector<16x32xf32>
    %cst_7 = arith.constant 1.000000e+00 : f32
    %11 = vector.broadcast %cst_7 : f32 to vector<16x32xf32>
    %12 = arith.addf %11, %10 : vector<16x32xf32>
    %13 = arith.mulf %7, %12 : vector<16x32xf32>
    %c0_8 = arith.constant 0 : index
    %c0_9 = arith.constant 0 : index
    %14 = vector.load %arg4[%c0_8, %c0_9] : memref<16x32xf32, #tpu.memory_space<vmem>>, vector<16x32xf32>
    tpu.vector_store %arg4[%c0_8, %c0_9], %13 {strides = array<i32>} : memref<16x32xf32, #tpu.memory_space<vmem>>, vector<16x32xf32>,
    return
  }
  func.func @transform_0(%arg0: i32) -> (i32, i32) {
    %c0_i32 = arith.constant 0 : i32
    %c0_i32_0 = arith.constant 0 : i32
    %c0_i32_1 = arith.constant 0 : i32
    return %c0_i32, %c0_i32_0 : i32, i32
  }
  func.func @transform_1(%arg0: i32) -> (i32, i32) {
    %c0_i32 = arith.constant 0 : i32
    %c0_i32_0 = arith.constant 0 : i32
    %c0_i32_1 = arith.constant 0 : i32
    return %c0_i32, %c0_i32_0 : i32, i32
  }
  func.func @transform_2(%arg0: i32) -> (i32, i32) {
    %c0_i32 = arith.constant 0 : i32
    %c0_i32_0 = arith.constant 0 : i32
    %c0_i32_1 = arith.constant 0 : i32
    return %c0_i32, %c0_i32_0 : i32, i32
  }
  func.func @transform_3(%arg0: i32) -> (i32, i32) {
    %c0_i32 = arith.constant 0 : i32
    %c0_i32_0 = arith.constant 0 : i32
    %c0_i32_1 = arith.constant 0 : i32
    return %c0_i32, %c0_i32_0 : i32, i32
  }
}

module attributes {stable_mosaic.version = 11 : i64} {
  func.func @kernel(%arg0: i32, %arg1: memref<1x8x32xf32, #tpu.memory_space<vmem>>, %arg2: memref<1x32xf32, #tpu.memory_space<vmem>>, %arg3: memref<1x32xf32, #tpu.memory_space<vmem>>, %arg4: memref<32x32xf32, #tpu.memory_space<vmem>>, %arg5: memref<1x32xf32, #tpu.memory_space<vmem>>, %arg6: memref<32x32xf32, #tpu.memory_space<vmem>>, %arg7: memref<32x32xf32, #tpu.memory_space<vmem>>, %arg8: memref<1x32xf32, #tpu.memory_space<vmem>>, %arg9: memref<32x32xf32, #tpu.memory_space<vmem>>, %arg10: memref<1x32xf32, #tpu.memory_space<vmem>>, %arg11: memref<1x32xf32, #tpu.memory_space<vmem>>, %arg12: memref<1x32xf32, #tpu.memory_space<vmem>>, %arg13: memref<32x64xf32, #tpu.memory_space<vmem>>, %arg14: memref<1x64xf32, #tpu.memory_space<vmem>>, %arg15: memref<64x32xf32, #tpu.memory_space<vmem>>, %arg16: memref<1x32xf32, #tpu.memory_space<vmem>>, %arg17: memref<1x32xf32, #tpu.memory_space<vmem>>, %arg18: memref<1x32xf32, #tpu.memory_space<vmem>>, %arg19: memref<1x8x32xf32, #tpu.memory_space<vmem>>) attributes {dimension_semantics = [#tpu.dimension_semantics<parallel>], iteration_bounds = array<i64: 2>, scalar_prefetch = 0 : i64, scratch_operands = 0 : i64, tpu.core_type = #tpu.core_type<tc>, window_params = [{transform_indices = @transform_0, window_bounds = array<i64: 1, 8, 32>}, {pipeline_mode = #tpu.pipeline_mode<synchronous>, transform_indices = @transform_1, window_bounds = array<i64: 1, 32>}, {pipeline_mode = #tpu.pipeline_mode<synchronous>, transform_indices = @transform_2, window_bounds = array<i64: 1, 32>}, {pipeline_mode = #tpu.pipeline_mode<synchronous>, transform_indices = @transform_3, window_bounds = array<i64: 32, 32>}, {pipeline_mode = #tpu.pipeline_mode<synchronous>, transform_indices = @transform_4, window_bounds = array<i64: 1, 32>}, {pipeline_mode = #tpu.pipeline_mode<synchronous>, transform_indices = @transform_5, window_bounds = array<i64: 32, 32>}, {pipeline_mode = #tpu.pipeline_mode<synchronous>, transform_indices = @transform_6, window_bounds = array<i64: 32, 32>}, {pipeline_mode = #tpu.pipeline_mode<synchronous>, transform_indices = @transform_7, window_bounds = array<i64: 1, 32>}, {pipeline_mode = #tpu.pipeline_mode<synchronous>, transform_indices = @transform_8, window_bounds = array<i64: 32, 32>}, {pipeline_mode = #tpu.pipeline_mode<synchronous>, transform_indices = @transform_9, window_bounds = array<i64: 1, 32>}, {pipeline_mode = #tpu.pipeline_mode<synchronous>, transform_indices = @transform_10, window_bounds = array<i64: 1, 32>}, {pipeline_mode = #tpu.pipeline_mode<synchronous>, transform_indices = @transform_11, window_bounds = array<i64: 1, 32>}, {pipeline_mode = #tpu.pipeline_mode<synchronous>, transform_indices = @transform_12, window_bounds = array<i64: 32, 64>}, {pipeline_mode = #tpu.pipeline_mode<synchronous>, transform_indices = @transform_13, window_bounds = array<i64: 1, 64>}, {pipeline_mode = #tpu.pipeline_mode<synchronous>, transform_indices = @transform_14, window_bounds = array<i64: 64, 32>}, {pipeline_mode = #tpu.pipeline_mode<synchronous>, transform_indices = @transform_15, window_bounds = array<i64: 1, 32>}, {pipeline_mode = #tpu.pipeline_mode<synchronous>, transform_indices = @transform_16, window_bounds = array<i64: 1, 32>}, {pipeline_mode = #tpu.pipeline_mode<synchronous>, transform_indices = @transform_17, window_bounds = array<i64: 1, 32>}, {transform_indices = @transform_18, window_bounds = array<i64: 1, 8, 32>}]} {
    %c0 = arith.constant 0 : index
    %c0_0 = arith.constant 0 : index
    %c0_1 = arith.constant 0 : index
    %0 = vector.load %arg1[%c0, %c0_0, %c0_1] : memref<1x8x32xf32, #tpu.memory_space<vmem>>, vector<1x8x32xf32>
    %1 = vector.shape_cast %0 : vector<1x8x32xf32> to vector<8x32xf32>
    %c0_2 = arith.constant 0 : index
    %c0_3 = arith.constant 0 : index
    %2 = vector.load %arg2[%c0_2, %c0_3] : memref<1x32xf32, #tpu.memory_space<vmem>>, vector<1x32xf32>
    %c0_4 = arith.constant 0 : index
    %c0_5 = arith.constant 0 : index
    %3 = vector.load %arg3[%c0_4, %c0_5] : memref<1x32xf32, #tpu.memory_space<vmem>>, vector<1x32xf32>
    %cst = arith.constant dense<0.000000e+00> : vector<8xf32>
    %4 = vector.multi_reduction <add>, %1, %cst [1] : vector<8x32xf32> to vector<8xf32>
    %5 = vector.shape_cast %4 : vector<8xf32> to vector<8x1xf32>
    %cst_6 = arith.constant 3.200000e+01 : f32
    %6 = vector.broadcast %cst_6 : f32 to vector<8x1xf32>
    %7 = arith.divf %5, %6 : vector<8x1xf32>
    %8 = vector.broadcast %7 : vector<8x1xf32> to vector<8x32xf32>
    %9 = arith.subf %1, %8 : vector<8x32xf32>
    %10 = arith.mulf %9, %9 : vector<8x32xf32>
    %cst_7 = arith.constant dense<0.000000e+00> : vector<8xf32>
    %11 = vector.multi_reduction <add>, %10, %cst_7 [1] : vector<8x32xf32> to vector<8xf32>
    %12 = vector.shape_cast %11 : vector<8xf32> to vector<8x1xf32>
    %cst_8 = arith.constant 3.200000e+01 : f32
    %13 = vector.broadcast %cst_8 : f32 to vector<8x1xf32>
    %14 = arith.divf %12, %13 : vector<8x1xf32>
    %15 = vector.broadcast %7 : vector<8x1xf32> to vector<8x32xf32>
    %16 = arith.subf %1, %15 : vector<8x32xf32>
    %cst_9 = arith.constant 9.99999974E-6 : f32
    %17 = vector.broadcast %cst_9 : f32 to vector<8x1xf32>
    %18 = arith.addf %14, %17 : vector<8x1xf32>
    %19 = math.rsqrt %18 : vector<8x1xf32>
    %20 = vector.broadcast %19 : vector<8x1xf32> to vector<8x32xf32>
    %21 = arith.mulf %16, %20 : vector<8x32xf32>
    %22 = vector.broadcast %2 : vector<1x32xf32> to vector<8x32xf32>
    %23 = arith.mulf %21, %22 : vector<8x32xf32>
    %24 = vector.broadcast %3 : vector<1x32xf32> to vector<8x32xf32>
    %25 = arith.addf %23, %24 : vector<8x32xf32>
    %c0_10 = arith.constant 0 : index
    %c0_11 = arith.constant 0 : index
    %26 = vector.load %arg4[%c0_10, %c0_11] : memref<32x32xf32, #tpu.memory_space<vmem>>, vector<32x32xf32>
    %c0_12 = arith.constant 0 : index
    %c0_13 = arith.constant 0 : index
    %27 = vector.load %arg5[%c0_12, %c0_13] : memref<1x32xf32, #tpu.memory_space<vmem>>, vector<1x32xf32>
    %c0_14 = arith.constant 0 : index
    %c0_15 = arith.constant 0 : index
    %28 = vector.load %arg6[%c0_14, %c0_15] : memref<32x32xf32, #tpu.memory_space<vmem>>, vector<32x32xf32>
    %c0_16 = arith.constant 0 : index
    %c0_17 = arith.constant 0 : index
    %29 = vector.load %arg7[%c0_16, %c0_17] : memref<32x32xf32, #tpu.memory_space<vmem>>, vector<32x32xf32>
    %c0_18 = arith.constant 0 : index
    %c0_19 = arith.constant 0 : index
    %30 = vector.load %arg8[%c0_18, %c0_19] : memref<1x32xf32, #tpu.memory_space<vmem>>, vector<1x32xf32>
    %c0_20 = arith.constant 0 : index
    %c0_21 = arith.constant 0 : index
    %31 = vector.load %arg9[%c0_20, %c0_21] : memref<32x32xf32, #tpu.memory_space<vmem>>, vector<32x32xf32>
    %c0_22 = arith.constant 0 : index
    %c0_23 = arith.constant 0 : index
    %32 = vector.load %arg10[%c0_22, %c0_23] : memref<1x32xf32, #tpu.memory_space<vmem>>, vector<1x32xf32>
    %cst_24 = arith.constant dense<0.000000e+00> : vector<8x32xf32>
    %33 = tpu.matmul %25, %26, %cst_24 {dimension_numbers = #tpu.dot_dimension_numbers<[1], [0], [0], [1], [0, 0, 1, 1], [], []>} : vector<8x32xf32>, vector<32x32xf32>, vector<8x32xf32> -> vector<8x32xf32>
    %34 = vector.broadcast %27 : vector<1x32xf32> to vector<8x32xf32>
    %35 = arith.addf %33, %34 : vector<8x32xf32>
    %cst_25 = arith.constant 0.353553385 : f32
    %36 = vector.broadcast %cst_25 : f32 to vector<8x32xf32>
    %37 = arith.mulf %35, %36 : vector<8x32xf32>
    %cst_26 = arith.constant dense<0.000000e+00> : vector<8x32xf32>
    %38 = tpu.matmul %25, %28, %cst_26 {dimension_numbers = #tpu.dot_dimension_numbers<[1], [0], [0], [1], [0, 0, 1, 1], [], []>} : vector<8x32xf32>, vector<32x32xf32>, vector<8x32xf32> -> vector<8x32xf32>
    %cst_27 = arith.constant dense<0.000000e+00> : vector<8x32xf32>
    %39 = tpu.matmul %25, %29, %cst_27 {dimension_numbers = #tpu.dot_dimension_numbers<[1], [0], [0], [1], [0, 0, 1, 1], [], []>} : vector<8x32xf32>, vector<32x32xf32>, vector<8x32xf32> -> vector<8x32xf32>
    %40 = vector.broadcast %30 : vector<1x32xf32> to vector<8x32xf32>
    %41 = arith.addf %39, %40 : vector<8x32xf32>
    %42 = vector.extract_strided_slice %37 {offsets = [0, 0], sizes = [8, 8], strides = [1, 1]} : vector<8x32xf32> to vector<8x8xf32>
    %43 = vector.extract_strided_slice %38 {offsets = [0, 0], sizes = [8, 8], strides = [1, 1]} : vector<8x32xf32> to vector<8x8xf32>
    %44 = tpu.transpose %43, [1, 0] : vector<8x8xf32> -> vector<8x8xf32>
    %cst_28 = arith.constant dense<0.000000e+00> : vector<8x8xf32>
    %45 = tpu.matmul %42, %44, %cst_28 {dimension_numbers = #tpu.dot_dimension_numbers<[1], [0], [0], [1], [0, 0, 1, 1], [], []>} : vector<8x8xf32>, vector<8x8xf32>, vector<8x8xf32> -> vector<8x8xf32>
    %cst_29 = arith.constant dense<0xFF800000> : vector<8xf32>
    %46 = vector.multi_reduction <maximumf>, %45, %cst_29 [1] : vector<8x8xf32> to vector<8xf32>
    %47 = vector.shape_cast %46 : vector<8xf32> to vector<8x1xf32>
    %48 = vector.broadcast %47 : vector<8x1xf32> to vector<8x8xf32>
    %49 = arith.subf %45, %48 : vector<8x8xf32>
    %50 = math.exp %49 : vector<8x8xf32>
    %cst_30 = arith.constant dense<0.000000e+00> : vector<8xf32>
    %51 = vector.multi_reduction <add>, %50, %cst_30 [1] : vector<8x8xf32> to vector<8xf32>
    %52 = vector.shape_cast %51 : vector<8xf32> to vector<8x1xf32>
    %53 = tpu.reciprocal %52 {approx = true} : vector<8x1xf32> -> vector<8x1xf32>
    %54 = vector.broadcast %53 : vector<8x1xf32> to vector<8x8xf32>
    %55 = arith.mulf %50, %54 : vector<8x8xf32>
    %56 = vector.extract_strided_slice %41 {offsets = [0, 0], sizes = [8, 8], strides = [1, 1]} : vector<8x32xf32> to vector<8x8xf32>
    %cst_31 = arith.constant dense<0.000000e+00> : vector<8x8xf32>
    %57 = tpu.matmul %55, %56, %cst_31 {dimension_numbers = #tpu.dot_dimension_numbers<[1], [0], [0], [1], [0, 0, 1, 1], [], []>} : vector<8x8xf32>, vector<8x8xf32>, vector<8x8xf32> -> vector<8x8xf32>
    %58 = vector.extract_strided_slice %37 {offsets = [0, 8], sizes = [8, 8], strides = [1, 1]} : vector<8x32xf32> to vector<8x8xf32>
    %59 = vector.extract_strided_slice %38 {offsets = [0, 8], sizes = [8, 8], strides = [1, 1]} : vector<8x32xf32> to vector<8x8xf32>
    %60 = tpu.transpose %59, [1, 0] : vector<8x8xf32> -> vector<8x8xf32>
    %cst_32 = arith.constant dense<0.000000e+00> : vector<8x8xf32>
    %61 = tpu.matmul %58, %60, %cst_32 {dimension_numbers = #tpu.dot_dimension_numbers<[1], [0], [0], [1], [0, 0, 1, 1], [], []>} : vector<8x8xf32>, vector<8x8xf32>, vector<8x8xf32> -> vector<8x8xf32>
    %cst_33 = arith.constant dense<0xFF800000> : vector<8xf32>
    %62 = vector.multi_reduction <maximumf>, %61, %cst_33 [1] : vector<8x8xf32> to vector<8xf32>
    %63 = vector.shape_cast %62 : vector<8xf32> to vector<8x1xf32>
    %64 = vector.broadcast %63 : vector<8x1xf32> to vector<8x8xf32>
    %65 = arith.subf %61, %64 : vector<8x8xf32>
    %66 = math.exp %65 : vector<8x8xf32>
    %cst_34 = arith.constant dense<0.000000e+00> : vector<8xf32>
    %67 = vector.multi_reduction <add>, %66, %cst_34 [1] : vector<8x8xf32> to vector<8xf32>
    %68 = vector.shape_cast %67 : vector<8xf32> to vector<8x1xf32>
    %69 = tpu.reciprocal %68 {approx = true} : vector<8x1xf32> -> vector<8x1xf32>
    %70 = vector.broadcast %69 : vector<8x1xf32> to vector<8x8xf32>
    %71 = arith.mulf %66, %70 : vector<8x8xf32>
    %72 = vector.extract_strided_slice %41 {offsets = [0, 8], sizes = [8, 8], strides = [1, 1]} : vector<8x32xf32> to vector<8x8xf32>
    %cst_35 = arith.constant dense<0.000000e+00> : vector<8x8xf32>
    %73 = tpu.matmul %71, %72, %cst_35 {dimension_numbers = #tpu.dot_dimension_numbers<[1], [0], [0], [1], [0, 0, 1, 1], [], []>} : vector<8x8xf32>, vector<8x8xf32>, vector<8x8xf32> -> vector<8x8xf32>
    %74 = vector.extract_strided_slice %37 {offsets = [0, 16], sizes = [8, 8], strides = [1, 1]} : vector<8x32xf32> to vector<8x8xf32>
    %75 = vector.extract_strided_slice %38 {offsets = [0, 16], sizes = [8, 8], strides = [1, 1]} : vector<8x32xf32> to vector<8x8xf32>
    %76 = tpu.transpose %75, [1, 0] : vector<8x8xf32> -> vector<8x8xf32>
    %cst_36 = arith.constant dense<0.000000e+00> : vector<8x8xf32>
    %77 = tpu.matmul %74, %76, %cst_36 {dimension_numbers = #tpu.dot_dimension_numbers<[1], [0], [0], [1], [0, 0, 1, 1], [], []>} : vector<8x8xf32>, vector<8x8xf32>, vector<8x8xf32> -> vector<8x8xf32>
    %cst_37 = arith.constant dense<0xFF800000> : vector<8xf32>
    %78 = vector.multi_reduction <maximumf>, %77, %cst_37 [1] : vector<8x8xf32> to vector<8xf32>
    %79 = vector.shape_cast %78 : vector<8xf32> to vector<8x1xf32>
    %80 = vector.broadcast %79 : vector<8x1xf32> to vector<8x8xf32>
    %81 = arith.subf %77, %80 : vector<8x8xf32>
    %82 = math.exp %81 : vector<8x8xf32>
    %cst_38 = arith.constant dense<0.000000e+00> : vector<8xf32>
    %83 = vector.multi_reduction <add>, %82, %cst_38 [1] : vector<8x8xf32> to vector<8xf32>
    %84 = vector.shape_cast %83 : vector<8xf32> to vector<8x1xf32>
    %85 = tpu.reciprocal %84 {approx = true} : vector<8x1xf32> -> vector<8x1xf32>
    %86 = vector.broadcast %85 : vector<8x1xf32> to vector<8x8xf32>
    %87 = arith.mulf %82, %86 : vector<8x8xf32>
    %88 = vector.extract_strided_slice %41 {offsets = [0, 16], sizes = [8, 8], strides = [1, 1]} : vector<8x32xf32> to vector<8x8xf32>
    %cst_39 = arith.constant dense<0.000000e+00> : vector<8x8xf32>
    %89 = tpu.matmul %87, %88, %cst_39 {dimension_numbers = #tpu.dot_dimension_numbers<[1], [0], [0], [1], [0, 0, 1, 1], [], []>} : vector<8x8xf32>, vector<8x8xf32>, vector<8x8xf32> -> vector<8x8xf32>
    %90 = vector.extract_strided_slice %37 {offsets = [0, 24], sizes = [8, 8], strides = [1, 1]} : vector<8x32xf32> to vector<8x8xf32>
    %91 = vector.extract_strided_slice %38 {offsets = [0, 24], sizes = [8, 8], strides = [1, 1]} : vector<8x32xf32> to vector<8x8xf32>
    %92 = tpu.transpose %91, [1, 0] : vector<8x8xf32> -> vector<8x8xf32>
    %cst_40 = arith.constant dense<0.000000e+00> : vector<8x8xf32>
    %93 = tpu.matmul %90, %92, %cst_40 {dimension_numbers = #tpu.dot_dimension_numbers<[1], [0], [0], [1], [0, 0, 1, 1], [], []>} : vector<8x8xf32>, vector<8x8xf32>, vector<8x8xf32> -> vector<8x8xf32>
    %cst_41 = arith.constant dense<0xFF800000> : vector<8xf32>
    %94 = vector.multi_reduction <maximumf>, %93, %cst_41 [1] : vector<8x8xf32> to vector<8xf32>
    %95 = vector.shape_cast %94 : vector<8xf32> to vector<8x1xf32>
    %96 = vector.broadcast %95 : vector<8x1xf32> to vector<8x8xf32>
    %97 = arith.subf %93, %96 : vector<8x8xf32>
    %98 = math.exp %97 : vector<8x8xf32>
    %cst_42 = arith.constant dense<0.000000e+00> : vector<8xf32>
    %99 = vector.multi_reduction <add>, %98, %cst_42 [1] : vector<8x8xf32> to vector<8xf32>
    %100 = vector.shape_cast %99 : vector<8xf32> to vector<8x1xf32>
    %101 = tpu.reciprocal %100 {approx = true} : vector<8x1xf32> -> vector<8x1xf32>
    %102 = vector.broadcast %101 : vector<8x1xf32> to vector<8x8xf32>
    %103 = arith.mulf %98, %102 : vector<8x8xf32>
    %104 = vector.extract_strided_slice %41 {offsets = [0, 24], sizes = [8, 8], strides = [1, 1]} : vector<8x32xf32> to vector<8x8xf32>
    %cst_43 = arith.constant dense<0.000000e+00> : vector<8x8xf32>
    %105 = tpu.matmul %103, %104, %cst_43 {dimension_numbers = #tpu.dot_dimension_numbers<[1], [0], [0], [1], [0, 0, 1, 1], [], []>} : vector<8x8xf32>, vector<8x8xf32>, vector<8x8xf32> -> vector<8x8xf32>
    %106 = tpu.concatenate %57, %73, %89, %105 in 1 : vector<8x8xf32>, vector<8x8xf32>, vector<8x8xf32>, vector<8x8xf32> -> vector<8x32xf32>
    %cst_44 = arith.constant dense<0.000000e+00> : vector<8x32xf32>
    %107 = tpu.matmul %106, %31, %cst_44 {dimension_numbers = #tpu.dot_dimension_numbers<[1], [0], [0], [1], [0, 0, 1, 1], [], []>} : vector<8x32xf32>, vector<32x32xf32>, vector<8x32xf32> -> vector<8x32xf32>
    %108 = vector.broadcast %32 : vector<1x32xf32> to vector<8x32xf32>
    %109 = arith.addf %107, %108 : vector<8x32xf32>
    %110 = arith.addf %1, %109 : vector<8x32xf32>
    %c0_45 = arith.constant 0 : index
    %c0_46 = arith.constant 0 : index
    %111 = vector.load %arg11[%c0_45, %c0_46] : memref<1x32xf32, #tpu.memory_space<vmem>>, vector<1x32xf32>
    %c0_47 = arith.constant 0 : index
    %c0_48 = arith.constant 0 : index
    %112 = vector.load %arg12[%c0_47, %c0_48] : memref<1x32xf32, #tpu.memory_space<vmem>>, vector<1x32xf32>
    %cst_49 = arith.constant dense<0.000000e+00> : vector<8xf32>
    %113 = vector.multi_reduction <add>, %110, %cst_49 [1] : vector<8x32xf32> to vector<8xf32>
    %114 = vector.shape_cast %113 : vector<8xf32> to vector<8x1xf32>
    %cst_50 = arith.constant 3.200000e+01 : f32
    %115 = vector.broadcast %cst_50 : f32 to vector<8x1xf32>
    %116 = arith.divf %114, %115 : vector<8x1xf32>
    %117 = vector.broadcast %116 : vector<8x1xf32> to vector<8x32xf32>
    %118 = arith.subf %110, %117 : vector<8x32xf32>
    %119 = arith.mulf %118, %118 : vector<8x32xf32>
    %cst_51 = arith.constant dense<0.000000e+00> : vector<8xf32>
    %120 = vector.multi_reduction <add>, %119, %cst_51 [1] : vector<8x32xf32> to vector<8xf32>
    %121 = vector.shape_cast %120 : vector<8xf32> to vector<8x1xf32>
    %cst_52 = arith.constant 3.200000e+01 : f32
    %122 = vector.broadcast %cst_52 : f32 to vector<8x1xf32>
    %123 = arith.divf %121, %122 : vector<8x1xf32>
    %124 = vector.broadcast %116 : vector<8x1xf32> to vector<8x32xf32>
    %125 = arith.subf %110, %124 : vector<8x32xf32>
    %cst_53 = arith.constant 9.99999974E-6 : f32
    %126 = vector.broadcast %cst_53 : f32 to vector<8x1xf32>
    %127 = arith.addf %123, %126 : vector<8x1xf32>
    %128 = math.rsqrt %127 : vector<8x1xf32>
    %129 = vector.broadcast %128 : vector<8x1xf32> to vector<8x32xf32>
    %130 = arith.mulf %125, %129 : vector<8x32xf32>
    %131 = vector.broadcast %111 : vector<1x32xf32> to vector<8x32xf32>
    %132 = arith.mulf %130, %131 : vector<8x32xf32>
    %133 = vector.broadcast %112 : vector<1x32xf32> to vector<8x32xf32>
    %134 = arith.addf %132, %133 : vector<8x32xf32>
    %c0_54 = arith.constant 0 : index
    %c0_55 = arith.constant 0 : index
    %135 = vector.load %arg13[%c0_54, %c0_55] : memref<32x64xf32, #tpu.memory_space<vmem>>, vector<32x64xf32>
    %cst_56 = arith.constant dense<0.000000e+00> : vector<8x64xf32>
    %136 = tpu.matmul %134, %135, %cst_56 {dimension_numbers = #tpu.dot_dimension_numbers<[1], [0], [0], [1], [0, 0, 1, 1], [], []>} : vector<8x32xf32>, vector<32x64xf32>, vector<8x64xf32> -> vector<8x64xf32>
    %c0_57 = arith.constant 0 : index
    %c0_58 = arith.constant 0 : index
    %137 = vector.load %arg14[%c0_57, %c0_58] : memref<1x64xf32, #tpu.memory_space<vmem>>, vector<1x64xf32>
    %138 = vector.broadcast %137 : vector<1x64xf32> to vector<8x64xf32>
    %139 = arith.addf %136, %138 : vector<8x64xf32>
    %cst_59 = arith.constant 5.000000e-01 : f32
    %140 = vector.broadcast %cst_59 : f32 to vector<8x64xf32>
    %141 = arith.mulf %140, %139 : vector<8x64xf32>
    %cst_60 = arith.constant 0.707106769 : f32
    %142 = vector.broadcast %cst_60 : f32 to vector<8x64xf32>
    %143 = arith.mulf %139, %142 : vector<8x64xf32>
    %144 = math.erf %143 : vector<8x64xf32>
    %cst_61 = arith.constant 1.000000e+00 : f32
    %145 = vector.broadcast %cst_61 : f32 to vector<8x64xf32>
    %146 = arith.addf %145, %144 : vector<8x64xf32>
    %147 = arith.mulf %141, %146 : vector<8x64xf32>
    %c0_62 = arith.constant 0 : index
    %c0_63 = arith.constant 0 : index
    %148 = vector.load %arg15[%c0_62, %c0_63] : memref<64x32xf32, #tpu.memory_space<vmem>>, vector<64x32xf32>
    %cst_64 = arith.constant dense<0.000000e+00> : vector<8x32xf32>
    %149 = tpu.matmul %147, %148, %cst_64 {dimension_numbers = #tpu.dot_dimension_numbers<[1], [0], [0], [1], [0, 0, 1, 1], [], []>} : vector<8x64xf32>, vector<64x32xf32>, vector<8x32xf32> -> vector<8x32xf32>
    %c0_65 = arith.constant 0 : index
    %c0_66 = arith.constant 0 : index
    %150 = vector.load %arg16[%c0_65, %c0_66] : memref<1x32xf32, #tpu.memory_space<vmem>>, vector<1x32xf32>
    %151 = vector.broadcast %150 : vector<1x32xf32> to vector<8x32xf32>
    %152 = arith.addf %149, %151 : vector<8x32xf32>
    %153 = arith.addf %110, %152 : vector<8x32xf32>
    %c0_67 = arith.constant 0 : index
    %c0_68 = arith.constant 0 : index
    %154 = vector.load %arg17[%c0_67, %c0_68] : memref<1x32xf32, #tpu.memory_space<vmem>>, vector<1x32xf32>
    %c0_69 = arith.constant 0 : index
    %c0_70 = arith.constant 0 : index
    %155 = vector.load %arg18[%c0_69, %c0_70] : memref<1x32xf32, #tpu.memory_space<vmem>>, vector<1x32xf32>
    %cst_71 = arith.constant dense<0.000000e+00> : vector<8xf32>
    %156 = vector.multi_reduction <add>, %153, %cst_71 [1] : vector<8x32xf32> to vector<8xf32>
    %157 = vector.shape_cast %156 : vector<8xf32> to vector<8x1xf32>
    %cst_72 = arith.constant 3.200000e+01 : f32
    %158 = vector.broadcast %cst_72 : f32 to vector<8x1xf32>
    %159 = arith.divf %157, %158 : vector<8x1xf32>
    %160 = vector.broadcast %159 : vector<8x1xf32> to vector<8x32xf32>
    %161 = arith.subf %153, %160 : vector<8x32xf32>
    %162 = arith.mulf %161, %161 : vector<8x32xf32>
    %cst_73 = arith.constant dense<0.000000e+00> : vector<8xf32>
    %163 = vector.multi_reduction <add>, %162, %cst_73 [1] : vector<8x32xf32> to vector<8xf32>
    %164 = vector.shape_cast %163 : vector<8xf32> to vector<8x1xf32>
    %cst_74 = arith.constant 3.200000e+01 : f32
    %165 = vector.broadcast %cst_74 : f32 to vector<8x1xf32>
    %166 = arith.divf %164, %165 : vector<8x1xf32>
    %167 = vector.broadcast %159 : vector<8x1xf32> to vector<8x32xf32>
    %168 = arith.subf %153, %167 : vector<8x32xf32>
    %cst_75 = arith.constant 9.99999974E-6 : f32
    %169 = vector.broadcast %cst_75 : f32 to vector<8x1xf32>
    %170 = arith.addf %166, %169 : vector<8x1xf32>
    %171 = math.rsqrt %170 : vector<8x1xf32>
    %172 = vector.broadcast %171 : vector<8x1xf32> to vector<8x32xf32>
    %173 = arith.mulf %168, %172 : vector<8x32xf32>
    %174 = vector.broadcast %154 : vector<1x32xf32> to vector<8x32xf32>
    %175 = arith.mulf %173, %174 : vector<8x32xf32>
    %176 = vector.broadcast %155 : vector<1x32xf32> to vector<8x32xf32>
    %177 = arith.addf %175, %176 : vector<8x32xf32>
    %c0_76 = arith.constant 0 : index
    %c0_77 = arith.constant 0 : index
    %c0_78 = arith.constant 0 : index
    %178 = vector.load %arg19[%c0_76, %c0_77, %c0_78] : memref<1x8x32xf32, #tpu.memory_space<vmem>>, vector<1x8x32xf32>
    %179 = vector.shape_cast %178 : vector<1x8x32xf32> to vector<8x32xf32>
    %180 = vector.shape_cast %177 : vector<8x32xf32> to vector<1x8x32xf32>
    tpu.vector_store %arg19[%c0_76, %c0_77, %c0_78], %180 {strides = array<i32>} : memref<1x8x32xf32, #tpu.memory_space<vmem>>, vector<1x8x32xf32>,
    return
  }
  func.func @transform_0(%arg0: i32) -> (i32, i32, i32) {
    %c0_i32 = arith.constant 0 : i32
    %c0_i32_0 = arith.constant 0 : i32
    %c0_i32_1 = arith.constant 0 : i32
    return %arg0, %c0_i32, %c0_i32_0 : i32, i32, i32
  }
  func.func @transform_1(%arg0: i32) -> (i32, i32) {
    %c0_i32 = arith.constant 0 : i32
    %c0_i32_0 = arith.constant 0 : i32
    %c0_i32_1 = arith.constant 0 : i32
    return %c0_i32, %c0_i32_0 : i32, i32
  }
  func.func @transform_2(%arg0: i32) -> (i32, i32) {
    %c0_i32 = arith.constant 0 : i32
    %c0_i32_0 = arith.constant 0 : i32
    %c0_i32_1 = arith.constant 0 : i32
    return %c0_i32, %c0_i32_0 : i32, i32
  }
  func.func @transform_3(%arg0: i32) -> (i32, i32) {
    %c0_i32 = arith.constant 0 : i32
    %c0_i32_0 = arith.constant 0 : i32
    %c0_i32_1 = arith.constant 0 : i32
    return %c0_i32, %c0_i32_0 : i32, i32
  }
  func.func @transform_4(%arg0: i32) -> (i32, i32) {
    %c0_i32 = arith.constant 0 : i32
    %c0_i32_0 = arith.constant 0 : i32
    %c0_i32_1 = arith.constant 0 : i32
    return %c0_i32, %c0_i32_0 : i32, i32
  }
  func.func @transform_5(%arg0: i32) -> (i32, i32) {
    %c0_i32 = arith.constant 0 : i32
    %c0_i32_0 = arith.constant 0 : i32
    %c0_i32_1 = arith.constant 0 : i32
    return %c0_i32, %c0_i32_0 : i32, i32
  }
  func.func @transform_6(%arg0: i32) -> (i32, i32) {
    %c0_i32 = arith.constant 0 : i32
    %c0_i32_0 = arith.constant 0 : i32
    %c0_i32_1 = arith.constant 0 : i32
    return %c0_i32, %c0_i32_0 : i32, i32
  }
  func.func @transform_7(%arg0: i32) -> (i32, i32) {
    %c0_i32 = arith.constant 0 : i32
    %c0_i32_0 = arith.constant 0 : i32
    %c0_i32_1 = arith.constant 0 : i32
    return %c0_i32, %c0_i32_0 : i32, i32
  }
  func.func @transform_8(%arg0: i32) -> (i32, i32) {
    %c0_i32 = arith.constant 0 : i32
    %c0_i32_0 = arith.constant 0 : i32
    %c0_i32_1 = arith.constant 0 : i32
    return %c0_i32, %c0_i32_0 : i32, i32
  }
  func.func @transform_9(%arg0: i32) -> (i32, i32) {
    %c0_i32 = arith.constant 0 : i32
    %c0_i32_0 = arith.constant 0 : i32
    %c0_i32_1 = arith.constant 0 : i32
    return %c0_i32, %c0_i32_0 : i32, i32
  }
  func.func @transform_10(%arg0: i32) -> (i32, i32) {
    %c0_i32 = arith.constant 0 : i32
    %c0_i32_0 = arith.constant 0 : i32
    %c0_i32_1 = arith.constant 0 : i32
    return %c0_i32, %c0_i32_0 : i32, i32
  }
  func.func @transform_11(%arg0: i32) -> (i32, i32) {
    %c0_i32 = arith.constant 0 : i32
    %c0_i32_0 = arith.constant 0 : i32
    %c0_i32_1 = arith.constant 0 : i32
    return %c0_i32, %c0_i32_0 : i32, i32
  }
  func.func @transform_12(%arg0: i32) -> (i32, i32) {
    %c0_i32 = arith.constant 0 : i32
    %c0_i32_0 = arith.constant 0 : i32
    %c0_i32_1 = arith.constant 0 : i32
    return %c0_i32, %c0_i32_0 : i32, i32
  }
  func.func @transform_13(%arg0: i32) -> (i32, i32) {
    %c0_i32 = arith.constant 0 : i32
    %c0_i32_0 = arith.constant 0 : i32
    %c0_i32_1 = arith.constant 0 : i32
    return %c0_i32, %c0_i32_0 : i32, i32
  }
  func.func @transform_14(%arg0: i32) -> (i32, i32) {
    %c0_i32 = arith.constant 0 : i32
    %c0_i32_0 = arith.constant 0 : i32
    %c0_i32_1 = arith.constant 0 : i32
    return %c0_i32, %c0_i32_0 : i32, i32
  }
  func.func @transform_15(%arg0: i32) -> (i32, i32) {
    %c0_i32 = arith.constant 0 : i32
    %c0_i32_0 = arith.constant 0 : i32
    %c0_i32_1 = arith.constant 0 : i32
    return %c0_i32, %c0_i32_0 : i32, i32
  }
  func.func @transform_16(%arg0: i32) -> (i32, i32) {
    %c0_i32 = arith.constant 0 : i32
    %c0_i32_0 = arith.constant 0 : i32
    %c0_i32_1 = arith.constant 0 : i32
    return %c0_i32, %c0_i32_0 : i32, i32
  }
  func.func @transform_17(%arg0: i32) -> (i32, i32) {
    %c0_i32 = arith.constant 0 : i32
    %c0_i32_0 = arith.constant 0 : i32
    %c0_i32_1 = arith.constant 0 : i32
    return %c0_i32, %c0_i32_0 : i32, i32
  }
  func.func @transform_18(%arg0: i32) -> (i32, i32, i32) {
    %c0_i32 = arith.constant 0 : i32
    %c0_i32_0 = arith.constant 0 : i32
    %c0_i32_1 = arith.constant 0 : i32
    return %arg0, %c0_i32, %c0_i32_0 : i32, i32, i32
  }
}

module attributes {stable_mosaic.version = 11 : i64} {
  func.func @kernel(%arg0: i32, %arg1: memref<1x8x32xf32, #tpu.memory_space<vmem>>, %arg2: memref<1x8x32xf32, #tpu.memory_space<vmem>>, %arg3: memref<1x32xf32, #tpu.memory_space<vmem>>, %arg4: memref<1x32xf32, #tpu.memory_space<vmem>>, %arg5: memref<32x32xf32, #tpu.memory_space<vmem>>, %arg6: memref<1x32xf32, #tpu.memory_space<vmem>>, %arg7: memref<32x32xf32, #tpu.memory_space<vmem>>, %arg8: memref<32x32xf32, #tpu.memory_space<vmem>>, %arg9: memref<1x32xf32, #tpu.memory_space<vmem>>, %arg10: memref<32x32xf32, #tpu.memory_space<vmem>>, %arg11: memref<1x32xf32, #tpu.memory_space<vmem>>, %arg12: memref<1x32xf32, #tpu.memory_space<vmem>>, %arg13: memref<1x32xf32, #tpu.memory_space<vmem>>, %arg14: memref<32x32xf32, #tpu.memory_space<vmem>>, %arg15: memref<1x32xf32, #tpu.memory_space<vmem>>, %arg16: memref<32x32xf32, #tpu.memory_space<vmem>>, %arg17: memref<32x32xf32, #tpu.memory_space<vmem>>, %arg18: memref<1x32xf32, #tpu.memory_space<vmem>>, %arg19: memref<32x32xf32, #tpu.memory_space<vmem>>, %arg20: memref<1x32xf32, #tpu.memory_space<vmem>>, %arg21: memref<1x32xf32, #tpu.memory_space<vmem>>, %arg22: memref<1x32xf32, #tpu.memory_space<vmem>>, %arg23: memref<32x64xf32, #tpu.memory_space<vmem>>, %arg24: memref<1x64xf32, #tpu.memory_space<vmem>>, %arg25: memref<64x32xf32, #tpu.memory_space<vmem>>, %arg26: memref<1x32xf32, #tpu.memory_space<vmem>>, %arg27: memref<1x32xf32, #tpu.memory_space<vmem>>, %arg28: memref<1x32xf32, #tpu.memory_space<vmem>>, %arg29: memref<1x8x32xf32, #tpu.memory_space<vmem>>) attributes {dimension_semantics = [#tpu.dimension_semantics<parallel>], iteration_bounds = array<i64: 2>, scalar_prefetch = 0 : i64, scratch_operands = 0 : i64, tpu.core_type = #tpu.core_type<tc>, window_params = [{transform_indices = @transform_0, window_bounds = array<i64: 1, 8, 32>}, {transform_indices = @transform_1, window_bounds = array<i64: 1, 8, 32>}, {pipeline_mode = #tpu.pipeline_mode<synchronous>, transform_indices = @transform_2, window_bounds = array<i64: 1, 32>}, {pipeline_mode = #tpu.pipeline_mode<synchronous>, transform_indices = @transform_3, window_bounds = array<i64: 1, 32>}, {pipeline_mode = #tpu.pipeline_mode<synchronous>, transform_indices = @transform_4, window_bounds = array<i64: 32, 32>}, {pipeline_mode = #tpu.pipeline_mode<synchronous>, transform_indices = @transform_5, window_bounds = array<i64: 1, 32>}, {pipeline_mode = #tpu.pipeline_mode<synchronous>, transform_indices = @transform_6, window_bounds = array<i64: 32, 32>}, {pipeline_mode = #tpu.pipeline_mode<synchronous>, transform_indices = @transform_7, window_bounds = array<i64: 32, 32>}, {pipeline_mode = #tpu.pipeline_mode<synchronous>, transform_indices = @transform_8, window_bounds = array<i64: 1, 32>}, {pipeline_mode = #tpu.pipeline_mode<synchronous>, transform_indices = @transform_9, window_bounds = array<i64: 32, 32>}, {pipeline_mode = #tpu.pipeline_mode<synchronous>, transform_indices = @transform_10, window_bounds = array<i64: 1, 32>}, {pipeline_mode = #tpu.pipeline_mode<synchronous>, transform_indices = @transform_11, window_bounds = array<i64: 1, 32>}, {pipeline_mode = #tpu.pipeline_mode<synchronous>, transform_indices = @transform_12, window_bounds = array<i64: 1, 32>}, {pipeline_mode = #tpu.pipeline_mode<synchronous>, transform_indices = @transform_13, window_bounds = array<i64: 32, 32>}, {pipeline_mode = #tpu.pipeline_mode<synchronous>, transform_indices = @transform_14, window_bounds = array<i64: 1, 32>}, {pipeline_mode = #tpu.pipeline_mode<synchronous>, transform_indices = @transform_15, window_bounds = array<i64: 32, 32>}, {pipeline_mode = #tpu.pipeline_mode<synchronous>, transform_indices = @transform_16, window_bounds = array<i64: 32, 32>}, {pipeline_mode = #tpu.pipeline_mode<synchronous>, transform_indices = @transform_17, window_bounds = array<i64: 1, 32>}, {pipeline_mode = #tpu.pipeline_mode<synchronous>, transform_indices = @transform_18, window_bounds = array<i64: 32, 32>}, {pipeline_mode = #tpu.pipeline_mode<synchronous>, transform_indices = @transform_19, window_bounds = array<i64: 1, 32>}, {pipeline_mode = #tpu.pipeline_mode<synchronous>, transform_indices = @transform_20, window_bounds = array<i64: 1, 32>}, {pipeline_mode = #tpu.pipeline_mode<synchronous>, transform_indices = @transform_21, window_bounds = array<i64: 1, 32>}, {pipeline_mode = #tpu.pipeline_mode<synchronous>, transform_indices = @transform_22, window_bounds = array<i64: 32, 64>}, {pipeline_mode = #tpu.pipeline_mode<synchronous>, transform_indices = @transform_23, window_bounds = array<i64: 1, 64>}, {pipeline_mode = #tpu.pipeline_mode<synchronous>, transform_indices = @transform_24, window_bounds = array<i64: 64, 32>}, {pipeline_mode = #tpu.pipeline_mode<synchronous>, transform_indices = @transform_25, window_bounds = array<i64: 1, 32>}, {pipeline_mode = #tpu.pipeline_mode<synchronous>, transform_indices = @transform_26, window_bounds = array<i64: 1, 32>}, {pipeline_mode = #tpu.pipeline_mode<synchronous>, transform_indices = @transform_27, window_bounds = array<i64: 1, 32>}, {transform_indices = @transform_28, window_bounds = array<i64: 1, 8, 32>}]} {
    %c0 = arith.constant 0 : index
    %c0_0 = arith.constant 0 : index
    %c0_1 = arith.constant 0 : index
    %0 = vector.load %arg1[%c0, %c0_0, %c0_1] : memref<1x8x32xf32, #tpu.memory_space<vmem>>, vector<1x8x32xf32>
    %1 = vector.shape_cast %0 : vector<1x8x32xf32> to vector<8x32xf32>
    %c0_2 = arith.constant 0 : index
    %c0_3 = arith.constant 0 : index
    %c0_4 = arith.constant 0 : index
    %2 = vector.load %arg2[%c0_2, %c0_3, %c0_4] : memref<1x8x32xf32, #tpu.memory_space<vmem>>, vector<1x8x32xf32>
    %3 = vector.shape_cast %2 : vector<1x8x32xf32> to vector<8x32xf32>
    %4 = tpu.iota {dimensions = array<i32: 0>} : vector<8x8xi32>
    %5 = tpu.iota {dimensions = array<i32: 1>} : vector<8x8xi32>
    %6 = arith.cmpi sge, %4, %5 : vector<8x8xi32>
    %cst = arith.constant 0.000000e+00 : f32
    %cst_5 = arith.constant -1.000000e+09 : f32
    %7 = vector.broadcast %cst : f32 to vector<8x8xf32>
    %8 = vector.broadcast %cst_5 : f32 to vector<8x8xf32>
    %9 = arith.select %6, %7, %8 : vector<8x8xi1>, vector<8x8xf32>
    %c0_6 = arith.constant 0 : index
    %c0_7 = arith.constant 0 : index
    %10 = vector.load %arg3[%c0_6, %c0_7] : memref<1x32xf32, #tpu.memory_space<vmem>>, vector<1x32xf32>
    %c0_8 = arith.constant 0 : index
    %c0_9 = arith.constant 0 : index
    %11 = vector.load %arg4[%c0_8, %c0_9] : memref<1x32xf32, #tpu.memory_space<vmem>>, vector<1x32xf32>
    %cst_10 = arith.constant dense<0.000000e+00> : vector<8xf32>
    %12 = vector.multi_reduction <add>, %1, %cst_10 [1] : vector<8x32xf32> to vector<8xf32>
    %13 = vector.shape_cast %12 : vector<8xf32> to vector<8x1xf32>
    %cst_11 = arith.constant 3.200000e+01 : f32
    %14 = vector.broadcast %cst_11 : f32 to vector<8x1xf32>
    %15 = arith.divf %13, %14 : vector<8x1xf32>
    %16 = vector.broadcast %15 : vector<8x1xf32> to vector<8x32xf32>
    %17 = arith.subf %1, %16 : vector<8x32xf32>
    %18 = arith.mulf %17, %17 : vector<8x32xf32>
    %cst_12 = arith.constant dense<0.000000e+00> : vector<8xf32>
    %19 = vector.multi_reduction <add>, %18, %cst_12 [1] : vector<8x32xf32> to vector<8xf32>
    %20 = vector.shape_cast %19 : vector<8xf32> to vector<8x1xf32>
    %cst_13 = arith.constant 3.200000e+01 : f32
    %21 = vector.broadcast %cst_13 : f32 to vector<8x1xf32>
    %22 = arith.divf %20, %21 : vector<8x1xf32>
    %23 = vector.broadcast %15 : vector<8x1xf32> to vector<8x32xf32>
    %24 = arith.subf %1, %23 : vector<8x32xf32>
    %cst_14 = arith.constant 9.99999974E-6 : f32
    %25 = vector.broadcast %cst_14 : f32 to vector<8x1xf32>
    %26 = arith.addf %22, %25 : vector<8x1xf32>
    %27 = math.rsqrt %26 : vector<8x1xf32>
    %28 = vector.broadcast %27 : vector<8x1xf32> to vector<8x32xf32>
    %29 = arith.mulf %24, %28 : vector<8x32xf32>
    %30 = vector.broadcast %10 : vector<1x32xf32> to vector<8x32xf32>
    %31 = arith.mulf %29, %30 : vector<8x32xf32>
    %32 = vector.broadcast %11 : vector<1x32xf32> to vector<8x32xf32>
    %33 = arith.addf %31, %32 : vector<8x32xf32>
    %c0_15 = arith.constant 0 : index
    %c0_16 = arith.constant 0 : index
    %34 = vector.load %arg5[%c0_15, %c0_16] : memref<32x32xf32, #tpu.memory_space<vmem>>, vector<32x32xf32>
    %c0_17 = arith.constant 0 : index
    %c0_18 = arith.constant 0 : index
    %35 = vector.load %arg6[%c0_17, %c0_18] : memref<1x32xf32, #tpu.memory_space<vmem>>, vector<1x32xf32>
    %c0_19 = arith.constant 0 : index
    %c0_20 = arith.constant 0 : index
    %36 = vector.load %arg7[%c0_19, %c0_20] : memref<32x32xf32, #tpu.memory_space<vmem>>, vector<32x32xf32>
    %c0_21 = arith.constant 0 : index
    %c0_22 = arith.constant 0 : index
    %37 = vector.load %arg8[%c0_21, %c0_22] : memref<32x32xf32, #tpu.memory_space<vmem>>, vector<32x32xf32>
    %c0_23 = arith.constant 0 : index
    %c0_24 = arith.constant 0 : index
    %38 = vector.load %arg9[%c0_23, %c0_24] : memref<1x32xf32, #tpu.memory_space<vmem>>, vector<1x32xf32>
    %c0_25 = arith.constant 0 : index
    %c0_26 = arith.constant 0 : index
    %39 = vector.load %arg10[%c0_25, %c0_26] : memref<32x32xf32, #tpu.memory_space<vmem>>, vector<32x32xf32>
    %c0_27 = arith.constant 0 : index
    %c0_28 = arith.constant 0 : index
    %40 = vector.load %arg11[%c0_27, %c0_28] : memref<1x32xf32, #tpu.memory_space<vmem>>, vector<1x32xf32>
    %cst_29 = arith.constant dense<0.000000e+00> : vector<8x32xf32>
    %41 = tpu.matmul %33, %34, %cst_29 {dimension_numbers = #tpu.dot_dimension_numbers<[1], [0], [0], [1], [0, 0, 1, 1], [], []>} : vector<8x32xf32>, vector<32x32xf32>, vector<8x32xf32> -> vector<8x32xf32>
    %42 = vector.broadcast %35 : vector<1x32xf32> to vector<8x32xf32>
    %43 = arith.addf %41, %42 : vector<8x32xf32>
    %cst_30 = arith.constant 0.353553385 : f32
    %44 = vector.broadcast %cst_30 : f32 to vector<8x32xf32>
    %45 = arith.mulf %43, %44 : vector<8x32xf32>
    %cst_31 = arith.constant dense<0.000000e+00> : vector<8x32xf32>
    %46 = tpu.matmul %33, %36, %cst_31 {dimension_numbers = #tpu.dot_dimension_numbers<[1], [0], [0], [1], [0, 0, 1, 1], [], []>} : vector<8x32xf32>, vector<32x32xf32>, vector<8x32xf32> -> vector<8x32xf32>
    %cst_32 = arith.constant dense<0.000000e+00> : vector<8x32xf32>
    %47 = tpu.matmul %33, %37, %cst_32 {dimension_numbers = #tpu.dot_dimension_numbers<[1], [0], [0], [1], [0, 0, 1, 1], [], []>} : vector<8x32xf32>, vector<32x32xf32>, vector<8x32xf32> -> vector<8x32xf32>
    %48 = vector.broadcast %38 : vector<1x32xf32> to vector<8x32xf32>
    %49 = arith.addf %47, %48 : vector<8x32xf32>
    %50 = vector.extract_strided_slice %45 {offsets = [0, 0], sizes = [8, 8], strides = [1, 1]} : vector<8x32xf32> to vector<8x8xf32>
    %51 = vector.extract_strided_slice %46 {offsets = [0, 0], sizes = [8, 8], strides = [1, 1]} : vector<8x32xf32> to vector<8x8xf32>
    %52 = tpu.transpose %51, [1, 0] : vector<8x8xf32> -> vector<8x8xf32>
    %cst_33 = arith.constant dense<0.000000e+00> : vector<8x8xf32>
    %53 = tpu.matmul %50, %52, %cst_33 {dimension_numbers = #tpu.dot_dimension_numbers<[1], [0], [0], [1], [0, 0, 1, 1], [], []>} : vector<8x8xf32>, vector<8x8xf32>, vector<8x8xf32> -> vector<8x8xf32>
    %54 = arith.addf %53, %9 : vector<8x8xf32>
    %cst_34 = arith.constant dense<0xFF800000> : vector<8xf32>
    %55 = vector.multi_reduction <maximumf>, %54, %cst_34 [1] : vector<8x8xf32> to vector<8xf32>
    %56 = vector.shape_cast %55 : vector<8xf32> to vector<8x1xf32>
    %57 = vector.broadcast %56 : vector<8x1xf32> to vector<8x8xf32>
    %58 = arith.subf %54, %57 : vector<8x8xf32>
    %59 = math.exp %58 : vector<8x8xf32>
    %cst_35 = arith.constant dense<0.000000e+00> : vector<8xf32>
    %60 = vector.multi_reduction <add>, %59, %cst_35 [1] : vector<8x8xf32> to vector<8xf32>
    %61 = vector.shape_cast %60 : vector<8xf32> to vector<8x1xf32>
    %62 = tpu.reciprocal %61 {approx = true} : vector<8x1xf32> -> vector<8x1xf32>
    %63 = vector.broadcast %62 : vector<8x1xf32> to vector<8x8xf32>
    %64 = arith.mulf %59, %63 : vector<8x8xf32>
    %65 = vector.extract_strided_slice %49 {offsets = [0, 0], sizes = [8, 8], strides = [1, 1]} : vector<8x32xf32> to vector<8x8xf32>
    %cst_36 = arith.constant dense<0.000000e+00> : vector<8x8xf32>
    %66 = tpu.matmul %64, %65, %cst_36 {dimension_numbers = #tpu.dot_dimension_numbers<[1], [0], [0], [1], [0, 0, 1, 1], [], []>} : vector<8x8xf32>, vector<8x8xf32>, vector<8x8xf32> -> vector<8x8xf32>
    %67 = vector.extract_strided_slice %45 {offsets = [0, 8], sizes = [8, 8], strides = [1, 1]} : vector<8x32xf32> to vector<8x8xf32>
    %68 = vector.extract_strided_slice %46 {offsets = [0, 8], sizes = [8, 8], strides = [1, 1]} : vector<8x32xf32> to vector<8x8xf32>
    %69 = tpu.transpose %68, [1, 0] : vector<8x8xf32> -> vector<8x8xf32>
    %cst_37 = arith.constant dense<0.000000e+00> : vector<8x8xf32>
    %70 = tpu.matmul %67, %69, %cst_37 {dimension_numbers = #tpu.dot_dimension_numbers<[1], [0], [0], [1], [0, 0, 1, 1], [], []>} : vector<8x8xf32>, vector<8x8xf32>, vector<8x8xf32> -> vector<8x8xf32>
    %71 = arith.addf %70, %9 : vector<8x8xf32>
    %cst_38 = arith.constant dense<0xFF800000> : vector<8xf32>
    %72 = vector.multi_reduction <maximumf>, %71, %cst_38 [1] : vector<8x8xf32> to vector<8xf32>
    %73 = vector.shape_cast %72 : vector<8xf32> to vector<8x1xf32>
    %74 = vector.broadcast %73 : vector<8x1xf32> to vector<8x8xf32>
    %75 = arith.subf %71, %74 : vector<8x8xf32>
    %76 = math.exp %75 : vector<8x8xf32>
    %cst_39 = arith.constant dense<0.000000e+00> : vector<8xf32>
    %77 = vector.multi_reduction <add>, %76, %cst_39 [1] : vector<8x8xf32> to vector<8xf32>
    %78 = vector.shape_cast %77 : vector<8xf32> to vector<8x1xf32>
    %79 = tpu.reciprocal %78 {approx = true} : vector<8x1xf32> -> vector<8x1xf32>
    %80 = vector.broadcast %79 : vector<8x1xf32> to vector<8x8xf32>
    %81 = arith.mulf %76, %80 : vector<8x8xf32>
    %82 = vector.extract_strided_slice %49 {offsets = [0, 8], sizes = [8, 8], strides = [1, 1]} : vector<8x32xf32> to vector<8x8xf32>
    %cst_40 = arith.constant dense<0.000000e+00> : vector<8x8xf32>
    %83 = tpu.matmul %81, %82, %cst_40 {dimension_numbers = #tpu.dot_dimension_numbers<[1], [0], [0], [1], [0, 0, 1, 1], [], []>} : vector<8x8xf32>, vector<8x8xf32>, vector<8x8xf32> -> vector<8x8xf32>
    %84 = vector.extract_strided_slice %45 {offsets = [0, 16], sizes = [8, 8], strides = [1, 1]} : vector<8x32xf32> to vector<8x8xf32>
    %85 = vector.extract_strided_slice %46 {offsets = [0, 16], sizes = [8, 8], strides = [1, 1]} : vector<8x32xf32> to vector<8x8xf32>
    %86 = tpu.transpose %85, [1, 0] : vector<8x8xf32> -> vector<8x8xf32>
    %cst_41 = arith.constant dense<0.000000e+00> : vector<8x8xf32>
    %87 = tpu.matmul %84, %86, %cst_41 {dimension_numbers = #tpu.dot_dimension_numbers<[1], [0], [0], [1], [0, 0, 1, 1], [], []>} : vector<8x8xf32>, vector<8x8xf32>, vector<8x8xf32> -> vector<8x8xf32>
    %88 = arith.addf %87, %9 : vector<8x8xf32>
    %cst_42 = arith.constant dense<0xFF800000> : vector<8xf32>
    %89 = vector.multi_reduction <maximumf>, %88, %cst_42 [1] : vector<8x8xf32> to vector<8xf32>
    %90 = vector.shape_cast %89 : vector<8xf32> to vector<8x1xf32>
    %91 = vector.broadcast %90 : vector<8x1xf32> to vector<8x8xf32>
    %92 = arith.subf %88, %91 : vector<8x8xf32>
    %93 = math.exp %92 : vector<8x8xf32>
    %cst_43 = arith.constant dense<0.000000e+00> : vector<8xf32>
    %94 = vector.multi_reduction <add>, %93, %cst_43 [1] : vector<8x8xf32> to vector<8xf32>
    %95 = vector.shape_cast %94 : vector<8xf32> to vector<8x1xf32>
    %96 = tpu.reciprocal %95 {approx = true} : vector<8x1xf32> -> vector<8x1xf32>
    %97 = vector.broadcast %96 : vector<8x1xf32> to vector<8x8xf32>
    %98 = arith.mulf %93, %97 : vector<8x8xf32>
    %99 = vector.extract_strided_slice %49 {offsets = [0, 16], sizes = [8, 8], strides = [1, 1]} : vector<8x32xf32> to vector<8x8xf32>
    %cst_44 = arith.constant dense<0.000000e+00> : vector<8x8xf32>
    %100 = tpu.matmul %98, %99, %cst_44 {dimension_numbers = #tpu.dot_dimension_numbers<[1], [0], [0], [1], [0, 0, 1, 1], [], []>} : vector<8x8xf32>, vector<8x8xf32>, vector<8x8xf32> -> vector<8x8xf32>
    %101 = vector.extract_strided_slice %45 {offsets = [0, 24], sizes = [8, 8], strides = [1, 1]} : vector<8x32xf32> to vector<8x8xf32>
    %102 = vector.extract_strided_slice %46 {offsets = [0, 24], sizes = [8, 8], strides = [1, 1]} : vector<8x32xf32> to vector<8x8xf32>
    %103 = tpu.transpose %102, [1, 0] : vector<8x8xf32> -> vector<8x8xf32>
    %cst_45 = arith.constant dense<0.000000e+00> : vector<8x8xf32>
    %104 = tpu.matmul %101, %103, %cst_45 {dimension_numbers = #tpu.dot_dimension_numbers<[1], [0], [0], [1], [0, 0, 1, 1], [], []>} : vector<8x8xf32>, vector<8x8xf32>, vector<8x8xf32> -> vector<8x8xf32>
    %105 = arith.addf %104, %9 : vector<8x8xf32>
    %cst_46 = arith.constant dense<0xFF800000> : vector<8xf32>
    %106 = vector.multi_reduction <maximumf>, %105, %cst_46 [1] : vector<8x8xf32> to vector<8xf32>
    %107 = vector.shape_cast %106 : vector<8xf32> to vector<8x1xf32>
    %108 = vector.broadcast %107 : vector<8x1xf32> to vector<8x8xf32>
    %109 = arith.subf %105, %108 : vector<8x8xf32>
    %110 = math.exp %109 : vector<8x8xf32>
    %cst_47 = arith.constant dense<0.000000e+00> : vector<8xf32>
    %111 = vector.multi_reduction <add>, %110, %cst_47 [1] : vector<8x8xf32> to vector<8xf32>
    %112 = vector.shape_cast %111 : vector<8xf32> to vector<8x1xf32>
    %113 = tpu.reciprocal %112 {approx = true} : vector<8x1xf32> -> vector<8x1xf32>
    %114 = vector.broadcast %113 : vector<8x1xf32> to vector<8x8xf32>
    %115 = arith.mulf %110, %114 : vector<8x8xf32>
    %116 = vector.extract_strided_slice %49 {offsets = [0, 24], sizes = [8, 8], strides = [1, 1]} : vector<8x32xf32> to vector<8x8xf32>
    %cst_48 = arith.constant dense<0.000000e+00> : vector<8x8xf32>
    %117 = tpu.matmul %115, %116, %cst_48 {dimension_numbers = #tpu.dot_dimension_numbers<[1], [0], [0], [1], [0, 0, 1, 1], [], []>} : vector<8x8xf32>, vector<8x8xf32>, vector<8x8xf32> -> vector<8x8xf32>
    %118 = tpu.concatenate %66, %83, %100, %117 in 1 : vector<8x8xf32>, vector<8x8xf32>, vector<8x8xf32>, vector<8x8xf32> -> vector<8x32xf32>
    %cst_49 = arith.constant dense<0.000000e+00> : vector<8x32xf32>
    %119 = tpu.matmul %118, %39, %cst_49 {dimension_numbers = #tpu.dot_dimension_numbers<[1], [0], [0], [1], [0, 0, 1, 1], [], []>} : vector<8x32xf32>, vector<32x32xf32>, vector<8x32xf32> -> vector<8x32xf32>
    %120 = vector.broadcast %40 : vector<1x32xf32> to vector<8x32xf32>
    %121 = arith.addf %119, %120 : vector<8x32xf32>
    %122 = arith.addf %1, %121 : vector<8x32xf32>
    %c0_50 = arith.constant 0 : index
    %c0_51 = arith.constant 0 : index
    %123 = vector.load %arg12[%c0_50, %c0_51] : memref<1x32xf32, #tpu.memory_space<vmem>>, vector<1x32xf32>
    %c0_52 = arith.constant 0 : index
    %c0_53 = arith.constant 0 : index
    %124 = vector.load %arg13[%c0_52, %c0_53] : memref<1x32xf32, #tpu.memory_space<vmem>>, vector<1x32xf32>
    %cst_54 = arith.constant dense<0.000000e+00> : vector<8xf32>
    %125 = vector.multi_reduction <add>, %122, %cst_54 [1] : vector<8x32xf32> to vector<8xf32>
    %126 = vector.shape_cast %125 : vector<8xf32> to vector<8x1xf32>
    %cst_55 = arith.constant 3.200000e+01 : f32
    %127 = vector.broadcast %cst_55 : f32 to vector<8x1xf32>
    %128 = arith.divf %126, %127 : vector<8x1xf32>
    %129 = vector.broadcast %128 : vector<8x1xf32> to vector<8x32xf32>
    %130 = arith.subf %122, %129 : vector<8x32xf32>
    %131 = arith.mulf %130, %130 : vector<8x32xf32>
    %cst_56 = arith.constant dense<0.000000e+00> : vector<8xf32>
    %132 = vector.multi_reduction <add>, %131, %cst_56 [1] : vector<8x32xf32> to vector<8xf32>
    %133 = vector.shape_cast %132 : vector<8xf32> to vector<8x1xf32>
    %cst_57 = arith.constant 3.200000e+01 : f32
    %134 = vector.broadcast %cst_57 : f32 to vector<8x1xf32>
    %135 = arith.divf %133, %134 : vector<8x1xf32>
    %136 = vector.broadcast %128 : vector<8x1xf32> to vector<8x32xf32>
    %137 = arith.subf %122, %136 : vector<8x32xf32>
    %cst_58 = arith.constant 9.99999974E-6 : f32
    %138 = vector.broadcast %cst_58 : f32 to vector<8x1xf32>
    %139 = arith.addf %135, %138 : vector<8x1xf32>
    %140 = math.rsqrt %139 : vector<8x1xf32>
    %141 = vector.broadcast %140 : vector<8x1xf32> to vector<8x32xf32>
    %142 = arith.mulf %137, %141 : vector<8x32xf32>
    %143 = vector.broadcast %123 : vector<1x32xf32> to vector<8x32xf32>
    %144 = arith.mulf %142, %143 : vector<8x32xf32>
    %145 = vector.broadcast %124 : vector<1x32xf32> to vector<8x32xf32>
    %146 = arith.addf %144, %145 : vector<8x32xf32>
    %c0_59 = arith.constant 0 : index
    %c0_60 = arith.constant 0 : index
    %147 = vector.load %arg14[%c0_59, %c0_60] : memref<32x32xf32, #tpu.memory_space<vmem>>, vector<32x32xf32>
    %c0_61 = arith.constant 0 : index
    %c0_62 = arith.constant 0 : index
    %148 = vector.load %arg15[%c0_61, %c0_62] : memref<1x32xf32, #tpu.memory_space<vmem>>, vector<1x32xf32>
    %c0_63 = arith.constant 0 : index
    %c0_64 = arith.constant 0 : index
    %149 = vector.load %arg16[%c0_63, %c0_64] : memref<32x32xf32, #tpu.memory_space<vmem>>, vector<32x32xf32>
    %c0_65 = arith.constant 0 : index
    %c0_66 = arith.constant 0 : index
    %150 = vector.load %arg17[%c0_65, %c0_66] : memref<32x32xf32, #tpu.memory_space<vmem>>, vector<32x32xf32>
    %c0_67 = arith.constant 0 : index
    %c0_68 = arith.constant 0 : index
    %151 = vector.load %arg18[%c0_67, %c0_68] : memref<1x32xf32, #tpu.memory_space<vmem>>, vector<1x32xf32>
    %c0_69 = arith.constant 0 : index
    %c0_70 = arith.constant 0 : index
    %152 = vector.load %arg19[%c0_69, %c0_70] : memref<32x32xf32, #tpu.memory_space<vmem>>, vector<32x32xf32>
    %c0_71 = arith.constant 0 : index
    %c0_72 = arith.constant 0 : index
    %153 = vector.load %arg20[%c0_71, %c0_72] : memref<1x32xf32, #tpu.memory_space<vmem>>, vector<1x32xf32>
    %cst_73 = arith.constant dense<0.000000e+00> : vector<8x32xf32>
    %154 = tpu.matmul %146, %147, %cst_73 {dimension_numbers = #tpu.dot_dimension_numbers<[1], [0], [0], [1], [0, 0, 1, 1], [], []>} : vector<8x32xf32>, vector<32x32xf32>, vector<8x32xf32> -> vector<8x32xf32>
    %155 = vector.broadcast %148 : vector<1x32xf32> to vector<8x32xf32>
    %156 = arith.addf %154, %155 : vector<8x32xf32>
    %cst_74 = arith.constant 0.353553385 : f32
    %157 = vector.broadcast %cst_74 : f32 to vector<8x32xf32>
    %158 = arith.mulf %156, %157 : vector<8x32xf32>
    %cst_75 = arith.constant dense<0.000000e+00> : vector<8x32xf32>
    %159 = tpu.matmul %3, %149, %cst_75 {dimension_numbers = #tpu.dot_dimension_numbers<[1], [0], [0], [1], [0, 0, 1, 1], [], []>} : vector<8x32xf32>, vector<32x32xf32>, vector<8x32xf32> -> vector<8x32xf32>
    %cst_76 = arith.constant dense<0.000000e+00> : vector<8x32xf32>
    %160 = tpu.matmul %3, %150, %cst_76 {dimension_numbers = #tpu.dot_dimension_numbers<[1], [0], [0], [1], [0, 0, 1, 1], [], []>} : vector<8x32xf32>, vector<32x32xf32>, vector<8x32xf32> -> vector<8x32xf32>
    %161 = vector.broadcast %151 : vector<1x32xf32> to vector<8x32xf32>
    %162 = arith.addf %160, %161 : vector<8x32xf32>
    %163 = vector.extract_strided_slice %158 {offsets = [0, 0], sizes = [8, 8], strides = [1, 1]} : vector<8x32xf32> to vector<8x8xf32>
    %164 = vector.extract_strided_slice %159 {offsets = [0, 0], sizes = [8, 8], strides = [1, 1]} : vector<8x32xf32> to vector<8x8xf32>
    %165 = tpu.transpose %164, [1, 0] : vector<8x8xf32> -> vector<8x8xf32>
    %cst_77 = arith.constant dense<0.000000e+00> : vector<8x8xf32>
    %166 = tpu.matmul %163, %165, %cst_77 {dimension_numbers = #tpu.dot_dimension_numbers<[1], [0], [0], [1], [0, 0, 1, 1], [], []>} : vector<8x8xf32>, vector<8x8xf32>, vector<8x8xf32> -> vector<8x8xf32>
    %cst_78 = arith.constant dense<0xFF800000> : vector<8xf32>
    %167 = vector.multi_reduction <maximumf>, %166, %cst_78 [1] : vector<8x8xf32> to vector<8xf32>
    %168 = vector.shape_cast %167 : vector<8xf32> to vector<8x1xf32>
    %169 = vector.broadcast %168 : vector<8x1xf32> to vector<8x8xf32>
    %170 = arith.subf %166, %169 : vector<8x8xf32>
    %171 = math.exp %170 : vector<8x8xf32>
    %cst_79 = arith.constant dense<0.000000e+00> : vector<8xf32>
    %172 = vector.multi_reduction <add>, %171, %cst_79 [1] : vector<8x8xf32> to vector<8xf32>
    %173 = vector.shape_cast %172 : vector<8xf32> to vector<8x1xf32>
    %174 = tpu.reciprocal %173 {approx = true} : vector<8x1xf32> -> vector<8x1xf32>
    %175 = vector.broadcast %174 : vector<8x1xf32> to vector<8x8xf32>
    %176 = arith.mulf %171, %175 : vector<8x8xf32>
    %177 = vector.extract_strided_slice %162 {offsets = [0, 0], sizes = [8, 8], strides = [1, 1]} : vector<8x32xf32> to vector<8x8xf32>
    %cst_80 = arith.constant dense<0.000000e+00> : vector<8x8xf32>
    %178 = tpu.matmul %176, %177, %cst_80 {dimension_numbers = #tpu.dot_dimension_numbers<[1], [0], [0], [1], [0, 0, 1, 1], [], []>} : vector<8x8xf32>, vector<8x8xf32>, vector<8x8xf32> -> vector<8x8xf32>
    %179 = vector.extract_strided_slice %158 {offsets = [0, 8], sizes = [8, 8], strides = [1, 1]} : vector<8x32xf32> to vector<8x8xf32>
    %180 = vector.extract_strided_slice %159 {offsets = [0, 8], sizes = [8, 8], strides = [1, 1]} : vector<8x32xf32> to vector<8x8xf32>
    %181 = tpu.transpose %180, [1, 0] : vector<8x8xf32> -> vector<8x8xf32>
    %cst_81 = arith.constant dense<0.000000e+00> : vector<8x8xf32>
    %182 = tpu.matmul %179, %181, %cst_81 {dimension_numbers = #tpu.dot_dimension_numbers<[1], [0], [0], [1], [0, 0, 1, 1], [], []>} : vector<8x8xf32>, vector<8x8xf32>, vector<8x8xf32> -> vector<8x8xf32>
    %cst_82 = arith.constant dense<0xFF800000> : vector<8xf32>
    %183 = vector.multi_reduction <maximumf>, %182, %cst_82 [1] : vector<8x8xf32> to vector<8xf32>
    %184 = vector.shape_cast %183 : vector<8xf32> to vector<8x1xf32>
    %185 = vector.broadcast %184 : vector<8x1xf32> to vector<8x8xf32>
    %186 = arith.subf %182, %185 : vector<8x8xf32>
    %187 = math.exp %186 : vector<8x8xf32>
    %cst_83 = arith.constant dense<0.000000e+00> : vector<8xf32>
    %188 = vector.multi_reduction <add>, %187, %cst_83 [1] : vector<8x8xf32> to vector<8xf32>
    %189 = vector.shape_cast %188 : vector<8xf32> to vector<8x1xf32>
    %190 = tpu.reciprocal %189 {approx = true} : vector<8x1xf32> -> vector<8x1xf32>
    %191 = vector.broadcast %190 : vector<8x1xf32> to vector<8x8xf32>
    %192 = arith.mulf %187, %191 : vector<8x8xf32>
    %193 = vector.extract_strided_slice %162 {offsets = [0, 8], sizes = [8, 8], strides = [1, 1]} : vector<8x32xf32> to vector<8x8xf32>
    %cst_84 = arith.constant dense<0.000000e+00> : vector<8x8xf32>
    %194 = tpu.matmul %192, %193, %cst_84 {dimension_numbers = #tpu.dot_dimension_numbers<[1], [0], [0], [1], [0, 0, 1, 1], [], []>} : vector<8x8xf32>, vector<8x8xf32>, vector<8x8xf32> -> vector<8x8xf32>
    %195 = vector.extract_strided_slice %158 {offsets = [0, 16], sizes = [8, 8], strides = [1, 1]} : vector<8x32xf32> to vector<8x8xf32>
    %196 = vector.extract_strided_slice %159 {offsets = [0, 16], sizes = [8, 8], strides = [1, 1]} : vector<8x32xf32> to vector<8x8xf32>
    %197 = tpu.transpose %196, [1, 0] : vector<8x8xf32> -> vector<8x8xf32>
    %cst_85 = arith.constant dense<0.000000e+00> : vector<8x8xf32>
    %198 = tpu.matmul %195, %197, %cst_85 {dimension_numbers = #tpu.dot_dimension_numbers<[1], [0], [0], [1], [0, 0, 1, 1], [], []>} : vector<8x8xf32>, vector<8x8xf32>, vector<8x8xf32> -> vector<8x8xf32>
    %cst_86 = arith.constant dense<0xFF800000> : vector<8xf32>
    %199 = vector.multi_reduction <maximumf>, %198, %cst_86 [1] : vector<8x8xf32> to vector<8xf32>
    %200 = vector.shape_cast %199 : vector<8xf32> to vector<8x1xf32>
    %201 = vector.broadcast %200 : vector<8x1xf32> to vector<8x8xf32>
    %202 = arith.subf %198, %201 : vector<8x8xf32>
    %203 = math.exp %202 : vector<8x8xf32>
    %cst_87 = arith.constant dense<0.000000e+00> : vector<8xf32>
    %204 = vector.multi_reduction <add>, %203, %cst_87 [1] : vector<8x8xf32> to vector<8xf32>
    %205 = vector.shape_cast %204 : vector<8xf32> to vector<8x1xf32>
    %206 = tpu.reciprocal %205 {approx = true} : vector<8x1xf32> -> vector<8x1xf32>
    %207 = vector.broadcast %206 : vector<8x1xf32> to vector<8x8xf32>
    %208 = arith.mulf %203, %207 : vector<8x8xf32>
    %209 = vector.extract_strided_slice %162 {offsets = [0, 16], sizes = [8, 8], strides = [1, 1]} : vector<8x32xf32> to vector<8x8xf32>
    %cst_88 = arith.constant dense<0.000000e+00> : vector<8x8xf32>
    %210 = tpu.matmul %208, %209, %cst_88 {dimension_numbers = #tpu.dot_dimension_numbers<[1], [0], [0], [1], [0, 0, 1, 1], [], []>} : vector<8x8xf32>, vector<8x8xf32>, vector<8x8xf32> -> vector<8x8xf32>
    %211 = vector.extract_strided_slice %158 {offsets = [0, 24], sizes = [8, 8], strides = [1, 1]} : vector<8x32xf32> to vector<8x8xf32>
    %212 = vector.extract_strided_slice %159 {offsets = [0, 24], sizes = [8, 8], strides = [1, 1]} : vector<8x32xf32> to vector<8x8xf32>
    %213 = tpu.transpose %212, [1, 0] : vector<8x8xf32> -> vector<8x8xf32>
    %cst_89 = arith.constant dense<0.000000e+00> : vector<8x8xf32>
    %214 = tpu.matmul %211, %213, %cst_89 {dimension_numbers = #tpu.dot_dimension_numbers<[1], [0], [0], [1], [0, 0, 1, 1], [], []>} : vector<8x8xf32>, vector<8x8xf32>, vector<8x8xf32> -> vector<8x8xf32>
    %cst_90 = arith.constant dense<0xFF800000> : vector<8xf32>
    %215 = vector.multi_reduction <maximumf>, %214, %cst_90 [1] : vector<8x8xf32> to vector<8xf32>
    %216 = vector.shape_cast %215 : vector<8xf32> to vector<8x1xf32>
    %217 = vector.broadcast %216 : vector<8x1xf32> to vector<8x8xf32>
    %218 = arith.subf %214, %217 : vector<8x8xf32>
    %219 = math.exp %218 : vector<8x8xf32>
    %cst_91 = arith.constant dense<0.000000e+00> : vector<8xf32>
    %220 = vector.multi_reduction <add>, %219, %cst_91 [1] : vector<8x8xf32> to vector<8xf32>
    %221 = vector.shape_cast %220 : vector<8xf32> to vector<8x1xf32>
    %222 = tpu.reciprocal %221 {approx = true} : vector<8x1xf32> -> vector<8x1xf32>
    %223 = vector.broadcast %222 : vector<8x1xf32> to vector<8x8xf32>
    %224 = arith.mulf %219, %223 : vector<8x8xf32>
    %225 = vector.extract_strided_slice %162 {offsets = [0, 24], sizes = [8, 8], strides = [1, 1]} : vector<8x32xf32> to vector<8x8xf32>
    %cst_92 = arith.constant dense<0.000000e+00> : vector<8x8xf32>
    %226 = tpu.matmul %224, %225, %cst_92 {dimension_numbers = #tpu.dot_dimension_numbers<[1], [0], [0], [1], [0, 0, 1, 1], [], []>} : vector<8x8xf32>, vector<8x8xf32>, vector<8x8xf32> -> vector<8x8xf32>
    %227 = tpu.concatenate %178, %194, %210, %226 in 1 : vector<8x8xf32>, vector<8x8xf32>, vector<8x8xf32>, vector<8x8xf32> -> vector<8x32xf32>
    %cst_93 = arith.constant dense<0.000000e+00> : vector<8x32xf32>
    %228 = tpu.matmul %227, %152, %cst_93 {dimension_numbers = #tpu.dot_dimension_numbers<[1], [0], [0], [1], [0, 0, 1, 1], [], []>} : vector<8x32xf32>, vector<32x32xf32>, vector<8x32xf32> -> vector<8x32xf32>
    %229 = vector.broadcast %153 : vector<1x32xf32> to vector<8x32xf32>
    %230 = arith.addf %228, %229 : vector<8x32xf32>
    %231 = arith.addf %122, %230 : vector<8x32xf32>
    %c0_94 = arith.constant 0 : index
    %c0_95 = arith.constant 0 : index
    %232 = vector.load %arg21[%c0_94, %c0_95] : memref<1x32xf32, #tpu.memory_space<vmem>>, vector<1x32xf32>
    %c0_96 = arith.constant 0 : index
    %c0_97 = arith.constant 0 : index
    %233 = vector.load %arg22[%c0_96, %c0_97] : memref<1x32xf32, #tpu.memory_space<vmem>>, vector<1x32xf32>
    %cst_98 = arith.constant dense<0.000000e+00> : vector<8xf32>
    %234 = vector.multi_reduction <add>, %231, %cst_98 [1] : vector<8x32xf32> to vector<8xf32>
    %235 = vector.shape_cast %234 : vector<8xf32> to vector<8x1xf32>
    %cst_99 = arith.constant 3.200000e+01 : f32
    %236 = vector.broadcast %cst_99 : f32 to vector<8x1xf32>
    %237 = arith.divf %235, %236 : vector<8x1xf32>
    %238 = vector.broadcast %237 : vector<8x1xf32> to vector<8x32xf32>
    %239 = arith.subf %231, %238 : vector<8x32xf32>
    %240 = arith.mulf %239, %239 : vector<8x32xf32>
    %cst_100 = arith.constant dense<0.000000e+00> : vector<8xf32>
    %241 = vector.multi_reduction <add>, %240, %cst_100 [1] : vector<8x32xf32> to vector<8xf32>
    %242 = vector.shape_cast %241 : vector<8xf32> to vector<8x1xf32>
    %cst_101 = arith.constant 3.200000e+01 : f32
    %243 = vector.broadcast %cst_101 : f32 to vector<8x1xf32>
    %244 = arith.divf %242, %243 : vector<8x1xf32>
    %245 = vector.broadcast %237 : vector<8x1xf32> to vector<8x32xf32>
    %246 = arith.subf %231, %245 : vector<8x32xf32>
    %cst_102 = arith.constant 9.99999974E-6 : f32
    %247 = vector.broadcast %cst_102 : f32 to vector<8x1xf32>
    %248 = arith.addf %244, %247 : vector<8x1xf32>
    %249 = math.rsqrt %248 : vector<8x1xf32>
    %250 = vector.broadcast %249 : vector<8x1xf32> to vector<8x32xf32>
    %251 = arith.mulf %246, %250 : vector<8x32xf32>
    %252 = vector.broadcast %232 : vector<1x32xf32> to vector<8x32xf32>
    %253 = arith.mulf %251, %252 : vector<8x32xf32>
    %254 = vector.broadcast %233 : vector<1x32xf32> to vector<8x32xf32>
    %255 = arith.addf %253, %254 : vector<8x32xf32>
    %c0_103 = arith.constant 0 : index
    %c0_104 = arith.constant 0 : index
    %256 = vector.load %arg23[%c0_103, %c0_104] : memref<32x64xf32, #tpu.memory_space<vmem>>, vector<32x64xf32>
    %cst_105 = arith.constant dense<0.000000e+00> : vector<8x64xf32>
    %257 = tpu.matmul %255, %256, %cst_105 {dimension_numbers = #tpu.dot_dimension_numbers<[1], [0], [0], [1], [0, 0, 1, 1], [], []>} : vector<8x32xf32>, vector<32x64xf32>, vector<8x64xf32> -> vector<8x64xf32>
    %c0_106 = arith.constant 0 : index
    %c0_107 = arith.constant 0 : index
    %258 = vector.load %arg24[%c0_106, %c0_107] : memref<1x64xf32, #tpu.memory_space<vmem>>, vector<1x64xf32>
    %259 = vector.broadcast %258 : vector<1x64xf32> to vector<8x64xf32>
    %260 = arith.addf %257, %259 : vector<8x64xf32>
    %cst_108 = arith.constant 5.000000e-01 : f32
    %261 = vector.broadcast %cst_108 : f32 to vector<8x64xf32>
    %262 = arith.mulf %261, %260 : vector<8x64xf32>
    %cst_109 = arith.constant 0.707106769 : f32
    %263 = vector.broadcast %cst_109 : f32 to vector<8x64xf32>
    %264 = arith.mulf %260, %263 : vector<8x64xf32>
    %265 = math.erf %264 : vector<8x64xf32>
    %cst_110 = arith.constant 1.000000e+00 : f32
    %266 = vector.broadcast %cst_110 : f32 to vector<8x64xf32>
    %267 = arith.addf %266, %265 : vector<8x64xf32>
    %268 = arith.mulf %262, %267 : vector<8x64xf32>
    %c0_111 = arith.constant 0 : index
    %c0_112 = arith.constant 0 : index
    %269 = vector.load %arg25[%c0_111, %c0_112] : memref<64x32xf32, #tpu.memory_space<vmem>>, vector<64x32xf32>
    %cst_113 = arith.constant dense<0.000000e+00> : vector<8x32xf32>
    %270 = tpu.matmul %268, %269, %cst_113 {dimension_numbers = #tpu.dot_dimension_numbers<[1], [0], [0], [1], [0, 0, 1, 1], [], []>} : vector<8x64xf32>, vector<64x32xf32>, vector<8x32xf32> -> vector<8x32xf32>
    %c0_114 = arith.constant 0 : index
    %c0_115 = arith.constant 0 : index
    %271 = vector.load %arg26[%c0_114, %c0_115] : memref<1x32xf32, #tpu.memory_space<vmem>>, vector<1x32xf32>
    %272 = vector.broadcast %271 : vector<1x32xf32> to vector<8x32xf32>
    %273 = arith.addf %270, %272 : vector<8x32xf32>
    %274 = arith.addf %231, %273 : vector<8x32xf32>
    %c0_116 = arith.constant 0 : index
    %c0_117 = arith.constant 0 : index
    %275 = vector.load %arg27[%c0_116, %c0_117] : memref<1x32xf32, #tpu.memory_space<vmem>>, vector<1x32xf32>
    %c0_118 = arith.constant 0 : index
    %c0_119 = arith.constant 0 : index
    %276 = vector.load %arg28[%c0_118, %c0_119] : memref<1x32xf32, #tpu.memory_space<vmem>>, vector<1x32xf32>
    %cst_120 = arith.constant dense<0.000000e+00> : vector<8xf32>
    %277 = vector.multi_reduction <add>, %274, %cst_120 [1] : vector<8x32xf32> to vector<8xf32>
    %278 = vector.shape_cast %277 : vector<8xf32> to vector<8x1xf32>
    %cst_121 = arith.constant 3.200000e+01 : f32
    %279 = vector.broadcast %cst_121 : f32 to vector<8x1xf32>
    %280 = arith.divf %278, %279 : vector<8x1xf32>
    %281 = vector.broadcast %280 : vector<8x1xf32> to vector<8x32xf32>
    %282 = arith.subf %274, %281 : vector<8x32xf32>
    %283 = arith.mulf %282, %282 : vector<8x32xf32>
    %cst_122 = arith.constant dense<0.000000e+00> : vector<8xf32>
    %284 = vector.multi_reduction <add>, %283, %cst_122 [1] : vector<8x32xf32> to vector<8xf32>
    %285 = vector.shape_cast %284 : vector<8xf32> to vector<8x1xf32>
    %cst_123 = arith.constant 3.200000e+01 : f32
    %286 = vector.broadcast %cst_123 : f32 to vector<8x1xf32>
    %287 = arith.divf %285, %286 : vector<8x1xf32>
    %288 = vector.broadcast %280 : vector<8x1xf32> to vector<8x32xf32>
    %289 = arith.subf %274, %288 : vector<8x32xf32>
    %cst_124 = arith.constant 9.99999974E-6 : f32
    %290 = vector.broadcast %cst_124 : f32 to vector<8x1xf32>
    %291 = arith.addf %287, %290 : vector<8x1xf32>
    %292 = math.rsqrt %291 : vector<8x1xf32>
    %293 = vector.broadcast %292 : vector<8x1xf32> to vector<8x32xf32>
    %294 = arith.mulf %289, %293 : vector<8x32xf32>
    %295 = vector.broadcast %275 : vector<1x32xf32> to vector<8x32xf32>
    %296 = arith.mulf %294, %295 : vector<8x32xf32>
    %297 = vector.broadcast %276 : vector<1x32xf32> to vector<8x32xf32>
    %298 = arith.addf %296, %297 : vector<8x32xf32>
    %c0_125 = arith.constant 0 : index
    %c0_126 = arith.constant 0 : index
    %c0_127 = arith.constant 0 : index
    %299 = vector.load %arg29[%c0_125, %c0_126, %c0_127] : memref<1x8x32xf32, #tpu.memory_space<vmem>>, vector<1x8x32xf32>
    %300 = vector.shape_cast %299 : vector<1x8x32xf32> to vector<8x32xf32>
    %301 = vector.shape_cast %298 : vector<8x32xf32> to vector<1x8x32xf32>
    tpu.vector_store %arg29[%c0_125, %c0_126, %c0_127], %301 {strides = array<i32>} : memref<1x8x32xf32, #tpu.memory_space<vmem>>, vector<1x8x32xf32>,
    return
  }
  func.func @transform_0(%arg0: i32) -> (i32, i32, i32) {
    %c0_i32 = arith.constant 0 : i32
    %c0_i32_0 = arith.constant 0 : i32
    %c0_i32_1 = arith.constant 0 : i32
    return %arg0, %c0_i32, %c0_i32_0 : i32, i32, i32
  }
  func.func @transform_1(%arg0: i32) -> (i32, i32, i32) {
    %c0_i32 = arith.constant 0 : i32
    %c0_i32_0 = arith.constant 0 : i32
    %c0_i32_1 = arith.constant 0 : i32
    return %arg0, %c0_i32, %c0_i32_0 : i32, i32, i32
  }
  func.func @transform_2(%arg0: i32) -> (i32, i32) {
    %c0_i32 = arith.constant 0 : i32
    %c0_i32_0 = arith.constant 0 : i32
    %c0_i32_1 = arith.constant 0 : i32
    return %c0_i32, %c0_i32_0 : i32, i32
  }
  func.func @transform_3(%arg0: i32) -> (i32, i32) {
    %c0_i32 = arith.constant 0 : i32
    %c0_i32_0 = arith.constant 0 : i32
    %c0_i32_1 = arith.constant 0 : i32
    return %c0_i32, %c0_i32_0 : i32, i32
  }
  func.func @transform_4(%arg0: i32) -> (i32, i32) {
    %c0_i32 = arith.constant 0 : i32
    %c0_i32_0 = arith.constant 0 : i32
    %c0_i32_1 = arith.constant 0 : i32
    return %c0_i32, %c0_i32_0 : i32, i32
  }
  func.func @transform_5(%arg0: i32) -> (i32, i32) {
    %c0_i32 = arith.constant 0 : i32
    %c0_i32_0 = arith.constant 0 : i32
    %c0_i32_1 = arith.constant 0 : i32
    return %c0_i32, %c0_i32_0 : i32, i32
  }
  func.func @transform_6(%arg0: i32) -> (i32, i32) {
    %c0_i32 = arith.constant 0 : i32
    %c0_i32_0 = arith.constant 0 : i32
    %c0_i32_1 = arith.constant 0 : i32
    return %c0_i32, %c0_i32_0 : i32, i32
  }
  func.func @transform_7(%arg0: i32) -> (i32, i32) {
    %c0_i32 = arith.constant 0 : i32
    %c0_i32_0 = arith.constant 0 : i32
    %c0_i32_1 = arith.constant 0 : i32
    return %c0_i32, %c0_i32_0 : i32, i32
  }
  func.func @transform_8(%arg0: i32) -> (i32, i32) {
    %c0_i32 = arith.constant 0 : i32
    %c0_i32_0 = arith.constant 0 : i32
    %c0_i32_1 = arith.constant 0 : i32
    return %c0_i32, %c0_i32_0 : i32, i32
  }
  func.func @transform_9(%arg0: i32) -> (i32, i32) {
    %c0_i32 = arith.constant 0 : i32
    %c0_i32_0 = arith.constant 0 : i32
    %c0_i32_1 = arith.constant 0 : i32
    return %c0_i32, %c0_i32_0 : i32, i32
  }
  func.func @transform_10(%arg0: i32) -> (i32, i32) {
    %c0_i32 = arith.constant 0 : i32
    %c0_i32_0 = arith.constant 0 : i32
    %c0_i32_1 = arith.constant 0 : i32
    return %c0_i32, %c0_i32_0 : i32, i32
  }
  func.func @transform_11(%arg0: i32) -> (i32, i32) {
    %c0_i32 = arith.constant 0 : i32
    %c0_i32_0 = arith.constant 0 : i32
    %c0_i32_1 = arith.constant 0 : i32
    return %c0_i32, %c0_i32_0 : i32, i32
  }
  func.func @transform_12(%arg0: i32) -> (i32, i32) {
    %c0_i32 = arith.constant 0 : i32
    %c0_i32_0 = arith.constant 0 : i32
    %c0_i32_1 = arith.constant 0 : i32
    return %c0_i32, %c0_i32_0 : i32, i32
  }
  func.func @transform_13(%arg0: i32) -> (i32, i32) {
    %c0_i32 = arith.constant 0 : i32
    %c0_i32_0 = arith.constant 0 : i32
    %c0_i32_1 = arith.constant 0 : i32
    return %c0_i32, %c0_i32_0 : i32, i32
  }
  func.func @transform_14(%arg0: i32) -> (i32, i32) {
    %c0_i32 = arith.constant 0 : i32
    %c0_i32_0 = arith.constant 0 : i32
    %c0_i32_1 = arith.constant 0 : i32
    return %c0_i32, %c0_i32_0 : i32, i32
  }
  func.func @transform_15(%arg0: i32) -> (i32, i32) {
    %c0_i32 = arith.constant 0 : i32
    %c0_i32_0 = arith.constant 0 : i32
    %c0_i32_1 = arith.constant 0 : i32
    return %c0_i32, %c0_i32_0 : i32, i32
  }
  func.func @transform_16(%arg0: i32) -> (i32, i32) {
    %c0_i32 = arith.constant 0 : i32
    %c0_i32_0 = arith.constant 0 : i32
    %c0_i32_1 = arith.constant 0 : i32
    return %c0_i32, %c0_i32_0 : i32, i32
  }
  func.func @transform_17(%arg0: i32) -> (i32, i32) {
    %c0_i32 = arith.constant 0 : i32
    %c0_i32_0 = arith.constant 0 : i32
    %c0_i32_1 = arith.constant 0 : i32
    return %c0_i32, %c0_i32_0 : i32, i32
  }
  func.func @transform_18(%arg0: i32) -> (i32, i32) {
    %c0_i32 = arith.constant 0 : i32
    %c0_i32_0 = arith.constant 0 : i32
    %c0_i32_1 = arith.constant 0 : i32
    return %c0_i32, %c0_i32_0 : i32, i32
  }
  func.func @transform_19(%arg0: i32) -> (i32, i32) {
    %c0_i32 = arith.constant 0 : i32
    %c0_i32_0 = arith.constant 0 : i32
    %c0_i32_1 = arith.constant 0 : i32
    return %c0_i32, %c0_i32_0 : i32, i32
  }
  func.func @transform_20(%arg0: i32) -> (i32, i32) {
    %c0_i32 = arith.constant 0 : i32
    %c0_i32_0 = arith.constant 0 : i32
    %c0_i32_1 = arith.constant 0 : i32
    return %c0_i32, %c0_i32_0 : i32, i32
  }
  func.func @transform_21(%arg0: i32) -> (i32, i32) {
    %c0_i32 = arith.constant 0 : i32
    %c0_i32_0 = arith.constant 0 : i32
    %c0_i32_1 = arith.constant 0 : i32
    return %c0_i32, %c0_i32_0 : i32, i32
  }
  func.func @transform_22(%arg0: i32) -> (i32, i32) {
    %c0_i32 = arith.constant 0 : i32
    %c0_i32_0 = arith.constant 0 : i32
    %c0_i32_1 = arith.constant 0 : i32
    return %c0_i32, %c0_i32_0 : i32, i32
  }
  func.func @transform_23(%arg0: i32) -> (i32, i32) {
    %c0_i32 = arith.constant 0 : i32
    %c0_i32_0 = arith.constant 0 : i32
    %c0_i32_1 = arith.constant 0 : i32
    return %c0_i32, %c0_i32_0 : i32, i32
  }
  func.func @transform_24(%arg0: i32) -> (i32, i32) {
    %c0_i32 = arith.constant 0 : i32
    %c0_i32_0 = arith.constant 0 : i32
    %c0_i32_1 = arith.constant 0 : i32
    return %c0_i32, %c0_i32_0 : i32, i32
  }
  func.func @transform_25(%arg0: i32) -> (i32, i32) {
    %c0_i32 = arith.constant 0 : i32
    %c0_i32_0 = arith.constant 0 : i32
    %c0_i32_1 = arith.constant 0 : i32
    return %c0_i32, %c0_i32_0 : i32, i32
  }
  func.func @transform_26(%arg0: i32) -> (i32, i32) {
    %c0_i32 = arith.constant 0 : i32
    %c0_i32_0 = arith.constant 0 : i32
    %c0_i32_1 = arith.constant 0 : i32
    return %c0_i32, %c0_i32_0 : i32, i32
  }
  func.func @transform_27(%arg0: i32) -> (i32, i32) {
    %c0_i32 = arith.constant 0 : i32
    %c0_i32_0 = arith.constant 0 : i32
    %c0_i32_1 = arith.constant 0 : i32
    return %c0_i32, %c0_i32_0 : i32, i32
  }
  func.func @transform_28(%arg0: i32) -> (i32, i32, i32) {
    %c0_i32 = arith.constant 0 : i32
    %c0_i32_0 = arith.constant 0 : i32
    %c0_i32_1 = arith.constant 0 : i32
    return %arg0, %c0_i32, %c0_i32_0 : i32, i32, i32
  }
}

module attributes {stable_mosaic.version = 11 : i64} {
  func.func @_lm_head_ce_kernel(%arg0: i32, %arg1: memref<16x32xf32, #tpu.memory_space<vmem>>, %arg2: memref<32x128xf32, #tpu.memory_space<vmem>>, %arg3: memref<16x128xf32, #tpu.memory_space<vmem>>, %arg4: memref<16x1xf32, #tpu.memory_space<vmem>>, %arg5: memref<16x128xf32, #tpu.memory_space<vmem>>, %arg6: memref<1x1xf32, #tpu.memory_space<vmem>>) attributes {dimension_semantics = [#tpu.dimension_semantics<arbitrary>], iteration_bounds = array<i64: 1>, scalar_prefetch = 0 : i64, scratch_operands = 0 : i64, tpu.core_type = #tpu.core_type<tc>, window_params = [{pipeline_mode = #tpu.pipeline_mode<synchronous>, transform_indices = @transform_0, window_bounds = array<i64: 16, 32>}, {pipeline_mode = #tpu.pipeline_mode<synchronous>, transform_indices = @transform_1, window_bounds = array<i64: 32, 128>}, {pipeline_mode = #tpu.pipeline_mode<synchronous>, transform_indices = @transform_2, window_bounds = array<i64: 16, 128>}, {pipeline_mode = #tpu.pipeline_mode<synchronous>, transform_indices = @transform_3, window_bounds = array<i64: 16, 1>}, {pipeline_mode = #tpu.pipeline_mode<synchronous>, transform_indices = @transform_4, window_bounds = array<i64: 16, 128>}, {pipeline_mode = #tpu.pipeline_mode<synchronous>, transform_indices = @transform_5, window_bounds = array<i64: 1, 1>}]} {
    %c0 = arith.constant 0 : index
    %c0_0 = arith.constant 0 : index
    %0 = vector.load %arg1[%c0, %c0_0] : memref<16x32xf32, #tpu.memory_space<vmem>>, vector<16x32xf32>
    %c0_1 = arith.constant 0 : index
    %c0_2 = arith.constant 0 : index
    %1 = vector.load %arg2[%c0_1, %c0_2] : memref<32x128xf32, #tpu.memory_space<vmem>>, vector<32x128xf32>
    %cst = arith.constant dense<0.000000e+00> : vector<16x128xf32>
    %2 = tpu.matmul %0, %1, %cst {dimension_numbers = #tpu.dot_dimension_numbers<[1], [0], [0], [1], [0, 0, 1, 1], [], []>} : vector<16x32xf32>, vector<32x128xf32>, vector<16x128xf32> -> vector<16x128xf32>
    %c0_3 = arith.constant 0 : index
    %c0_4 = arith.constant 0 : index
    %3 = vector.load %arg5[%c0_3, %c0_4] : memref<16x128xf32, #tpu.memory_space<vmem>>, vector<16x128xf32>
    tpu.vector_store %arg5[%c0_3, %c0_4], %2 {strides = array<i32>} : memref<16x128xf32, #tpu.memory_space<vmem>>, vector<16x128xf32>,
    %4 = tpu.iota {dimensions = array<i32: 1>} : vector<16x128xi32>
    %c64_i32 = arith.constant 64 : i32
    %5 = vector.broadcast %c64_i32 : i32 to vector<16x128xi32>
    %6 = arith.cmpi slt, %4, %5 : vector<16x128xi32>
    %cst_5 = arith.constant -1.000000e+09 : f32
    %7 = vector.broadcast %cst_5 : f32 to vector<16x128xf32>
    %8 = arith.select %6, %2, %7 : vector<16x128xi1>, vector<16x128xf32>
    %cst_6 = arith.constant dense<0xFF800000> : vector<16xf32>
    %9 = vector.multi_reduction <maximumf>, %8, %cst_6 [1] : vector<16x128xf32> to vector<16xf32>
    %10 = vector.shape_cast %9 : vector<16xf32> to vector<16x1xf32>
    %11 = vector.broadcast %10 : vector<16x1xf32> to vector<16x128xf32>
    %12 = arith.subf %8, %11 : vector<16x128xf32>
    %13 = math.exp %12 : vector<16x128xf32>
    %cst_7 = arith.constant dense<0.000000e+00> : vector<16xf32>
    %14 = vector.multi_reduction <add>, %13, %cst_7 [1] : vector<16x128xf32> to vector<16xf32>
    %15 = vector.shape_cast %14 : vector<16xf32> to vector<16x1xf32>
    %16 = math.log %15 : vector<16x1xf32>
    %17 = arith.addf %16, %10 : vector<16x1xf32>
    %c0_8 = arith.constant 0 : index
    %c0_9 = arith.constant 0 : index
    %18 = vector.load %arg3[%c0_8, %c0_9] : memref<16x128xf32, #tpu.memory_space<vmem>>, vector<16x128xf32>
    %19 = arith.mulf %2, %18 : vector<16x128xf32>
    %cst_10 = arith.constant dense<0.000000e+00> : vector<16xf32>
    %20 = vector.multi_reduction <add>, %19, %cst_10 [1] : vector<16x128xf32> to vector<16xf32>
    %21 = vector.shape_cast %20 : vector<16xf32> to vector<16x1xf32>
    %22 = arith.subf %17, %21 : vector<16x1xf32>
    %c0_11 = arith.constant 0 : index
    %c0_12 = arith.constant 0 : index
    %23 = vector.load %arg4[%c0_11, %c0_12] : memref<16x1xf32, #tpu.memory_space<vmem>>, vector<16x1xf32>
    %24 = arith.mulf %22, %23 : vector<16x1xf32>
    %25 = vector.shape_cast %24 : vector<16x1xf32> to vector<1x16x1xf32>
    %cst_13 = arith.constant dense<0.000000e+00> : vector<1xf32>
    %26 = vector.multi_reduction <add>, %25, %cst_13 [1, 2] : vector<1x16x1xf32> to vector<1xf32>
    %27 = vector.shape_cast %26 : vector<1xf32> to vector<1x1x1xf32>
    %28 = vector.extract %27[0, 0, 0] : f32 from vector<1x1x1xf32>
    %29 = vector.broadcast %28 : f32 to vector<1x1xf32>
    %c0_14 = arith.constant 0 : index
    %c0_15 = arith.constant 0 : index
    %30 = vector.load %arg4[%c0_14, %c0_15] : memref<16x1xf32, #tpu.memory_space<vmem>>, vector<16x1xf32>
    %31 = vector.shape_cast %30 : vector<16x1xf32> to vector<1x16x1xf32>
    %cst_16 = arith.constant dense<0.000000e+00> : vector<1xf32>
    %32 = vector.multi_reduction <add>, %31, %cst_16 [1, 2] : vector<1x16x1xf32> to vector<1xf32>
    %33 = vector.shape_cast %32 : vector<1xf32> to vector<1x1x1xf32>
    %34 = vector.extract %33[0, 0, 0] : f32 from vector<1x1x1xf32>
    %cst_17 = arith.constant 1.000000e+00 : f32
    %35 = arith.maximumf %34, %cst_17 : f32
    %36 = vector.broadcast %35 : f32 to vector<1x1xf32>
    %37 = arith.divf %29, %36 : vector<1x1xf32>
    %c0_18 = arith.constant 0 : index
    %c0_19 = arith.constant 0 : index
    %38 = vector.load %arg6[%c0_18, %c0_19] : memref<1x1xf32, #tpu.memory_space<vmem>>, vector<1x1xf32>
    tpu.vector_store %arg6[%c0_18, %c0_19], %37 {strides = array<i32>} : memref<1x1xf32, #tpu.memory_space<vmem>>, vector<1x1xf32>,
    return
  }
  func.func @transform_0(%arg0: i32) -> (i32, i32) {
    %c0_i32 = arith.constant 0 : i32
    %c0_i32_0 = arith.constant 0 : i32
    %c0_i32_1 = arith.constant 0 : i32
    return %c0_i32, %c0_i32_0 : i32, i32
  }
  func.func @transform_1(%arg0: i32) -> (i32, i32) {
    %c0_i32 = arith.constant 0 : i32
    %c0_i32_0 = arith.constant 0 : i32
    %c0_i32_1 = arith.constant 0 : i32
    return %c0_i32, %c0_i32_0 : i32, i32
  }
  func.func @transform_2(%arg0: i32) -> (i32, i32) {
    %c0_i32 = arith.constant 0 : i32
    %c0_i32_0 = arith.constant 0 : i32
    %c0_i32_1 = arith.constant 0 : i32
    return %c0_i32, %c0_i32_0 : i32, i32
  }
  func.func @transform_3(%arg0: i32) -> (i32, i32) {
    %c0_i32 = arith.constant 0 : i32
    %c0_i32_0 = arith.constant 0 : i32
    %c0_i32_1 = arith.constant 0 : i32
    return %c0_i32, %c0_i32_0 : i32, i32
  }
  func.func @transform_4(%arg0: i32) -> (i32, i32) {
    %c0_i32 = arith.constant 0 : i32
    %c0_i32_0 = arith.constant 0 : i32
    %c0_i32_1 = arith.constant 0 : i32
    return %c0_i32, %c0_i32_0 : i32, i32
  }
  func.func @transform_5(%arg0: i32) -> (i32, i32) {
    %c0_i32 = arith.constant 0 : i32
    %c0_i32_0 = arith.constant 0 : i32
    %c0_i32_1 = arith.constant 0 : i32
    return %c0_i32, %c0_i32_0 : i32, i32
  }
}

</mosaic_0001>

<bundles_post_ra>
// kernel: whisper_forward.6
= control target key start
LH: loop header
LB: loop body
LE: loop exit
PB: predicated region body
PF: predicated region fallthrough
CT: control target
= control target key end

     0   :  { %vm35_vm0 = vcmask 785408   ;;  %vm127_vm1 = vcmask 261120   ;;  %s279_s1 = inlined_call_operand.vmem [shape: f32[96,32], index: 1, kind: input, shape index: {}]   ;;  %s280_s0 = inlined_call_operand.vmem [shape: f32[16,96], index: 0, kind: input, shape index: {}]   ;;  %s281_s2 = inlined_call_operand.vmem [shape: f32[1,32], index: 2, kind: input, shape index: {}]   ;;  %s282_s3 = inlined_call_operand.vmem [shape: f32[16,32], index: 3, kind: output, shape index: {}]  }
   0x1   :  { %v16_v0 = vld [vmem:[%s279_s1] sm:$0xff]  ;;  %v17_v1 = vld [vmem:[%s279_s1 + $0x8] sm:$0xff]  ;;  %v18_v2 = vld [vmem:[%s279_s1 + $0x10] sm:$0xff] }
   0x2   :  { %v178_v3 = vpack.c.bf16 %v17_v1, %v16_v0  ;;  %v19_v4 = vld [vmem:[%s279_s1 + $0x18] sm:$0xff]  ;;  %v20_v6 = vld [vmem:[%s279_s1 + $0x20] sm:$0xff]  ;;  %v21_v7 = vld [vmem:[%s279_s1 + $0x28] sm:$0xff] }
   0x3   :  { %v182_v5 = vpack.c.bf16 %v19_v4, %v18_v2  ;;  %v14_v8 = vld [vmem:[%s280_s0] sm:$0xff]  ;;  %v186_v9 = vpack.c.bf16 %v21_v7, %v20_v6  ;;  %v22_v10 = vld [vmem:[%s279_s1 + $0x30] sm:$0xff]  ;;  %v23_v11 = vld [vmem:[%s279_s1 + $0x38] sm:$0xff] }
   0x4   :  { %179 = vmatprep.subr.bf16.mxu0 %v178_v3  ;;  %175 = vmatprep.mubr.msk.f32.mxu0 %vm35_vm0, %v14_v8  ;;  %v190_v12 = vpack.c.bf16 %v23_v11, %v22_v10  ;;  %v24_v13 = vld [vmem:[%s279_s1 + $0x40] sm:$0xff]  ;;  %v25_v14 = vld [vmem:[%s279_s1 + $0x48] sm:$0xff]  ;;  %v26_v16 = vld [vmem:[%s279_s1 + $0x50] sm:$0xff] }
   0x5   :  { %181 = vmatpush3.bf16.msra.mxu0 %v178_v3  ;;  %v194_v15 = vpack.c.bf16 %v25_v14, %v24_v13  ;;  %v27_v17 = vld [vmem:[%s279_s1 + $0x58] sm:$0xff]  ;;  %v15_v19 = vld [vmem:[%s280_s0 + $0x8] sm:$0xff]  ;;  %v134_v20 = vld [vmem:[%s281_s2] ss:$0 sm:$0xff] }
   0x6   :  { %183 = vmatprep.subr.bf16.mxu0 %v182_v5  ;;  %v198_v18 = vpack.c.bf16 %v27_v17, %v26_v16 }
   0x9   :  { %185 = vmatpush3.bf16.msra.mxu0 %v182_v5 }
   0xa   :  { %187 = vmatprep.subr.bf16.mxu0 %v186_v9 }
   0xd   :  { %189 = vmatpush3.bf16.msra.mxu0 %v186_v9 }
   0xe   :  { %191 = vmatprep.subr.bf16.mxu0 %v190_v12 }
  0x11   :  { %193 = vmatpush3.bf16.msra.mxu0 %v190_v12 }
  0x12   :  { %195 = vmatprep.subr.bf16.mxu0 %v194_v15 }
  0x15   :  { %197 = vmatpush3.bf16.msra.mxu0 %v194_v15 }
  0x16   :  { %199 = vmatprep.subr.bf16.mxu0 %v198_v18 }
  0x19   :  { %201 = vmatpush3.bf16.msra.mxu0 %v198_v18 }
  0x1c   :  { %176 = vmatmul.mubr.msk.f32.vlgmr.msra.gmra.mrb[0].mxu0 %vm35_vm0, %v15_v19 }
  0xef   :  { %v177_v21 = vpop.f32.mrb[0].mxu0 }
  0xf0   :  { %v114_v22 = vadd.f32 %v177_v21, %v134_v20  ;;  %v108_v23 = vpop.f32.mrb[1].mxu0 }
  0xf1   :  { %v109_v24 = vadd.f32 %v134_v20, %v108_v23 }
  0xf2   :  { %v120_v25 = vmul.f32 0.70710677, %v114_v22  ;;  %v118_v29 = vmul.f32 0.5, %v114_v22 }
  0xf3   :  { %v119_v26 = vmul.f32 0.70710677, %v109_v24  ;;  %v117_v31 = vmul.f32 0.5, %v109_v24 }
  0xf4   :  { %202 = verf.f32 %v120_v25 }
  0xf5   :  { %204 = verf.f32 %v119_v26 }
  0xfe   :  { %v203_v27 = vpop.eup %202 }
  0xff   :  { %v205_v28 = vpop.eup %204  ;;  %v124_v30 = vadd.f32 1.0, %v203_v27 }
 0x100   :  { %v123_v32 = vadd.f32 1.0, %v205_v28 }
 0x101   :  { %v126_v33 = vmul.f32 %v124_v30, %v118_v29 }
 0x102   :  { %v125_v34 = vmul.f32 %v123_v32, %v117_v31 }
 0x103   :  { %129 = vst.msk [vmem:[%s282_s3 + $0x8] sm:$0xff] %vm127_vm1, %v126_v33 }
 0x104   :  { %128 = vst.msk [vmem:[%s282_s3] sm:$0xff] %vm127_vm1, %v125_v34 }

// kernel: whisper_forward.5
= control target key start
LH: loop header
LB: loop body
LE: loop exit
PB: predicated region body
PF: predicated region fallthrough
CT: control target
= control target key end

     0   :  { %vm31_vm0 = vcmask 392192   ;;  %vm149_vm1 = vcmask 261120   ;;  %s286_s1 = inlined_call_operand.vmem [shape: f32[48,32], index: 1, kind: input, shape index: {}]   ;;  %s287_s0 = inlined_call_operand.vmem [shape: f32[32,48], index: 0, kind: input, shape index: {}]   ;;  %s288_s2 = inlined_call_operand.vmem [shape: f32[1,32], index: 2, kind: input, shape index: {}]   ;;  %s289_s3 = inlined_call_operand.vmem [shape: f32[32,32], index: 3, kind: output, shape index: {}]  }
   0x1   :  { %v18_v0 = vld [vmem:[%s286_s1] sm:$0xff]  ;;  %v19_v1 = vld [vmem:[%s286_s1 + $0x8] sm:$0xff]  ;;  %v20_v2 = vld [vmem:[%s286_s1 + $0x10] sm:$0xff] }
   0x2   :  { %v191_v3 = vpack.c.bf16 %v19_v1, %v18_v0  ;;  %v21_v4 = vld [vmem:[%s286_s1 + $0x18] sm:$0xff]  ;;  %v22_v6 = vld [vmem:[%s286_s1 + $0x20] sm:$0xff]  ;;  %v23_v7 = vld [vmem:[%s286_s1 + $0x28] sm:$0xff] }
   0x3   :  { %v195_v5 = vpack.c.bf16 %v21_v4, %v20_v2  ;;  %v14_v8 = vld [vmem:[%s287_s0] sm:$0xff]  ;;  %v16_v9 = vld [vmem:[%s287_s0 + $0x10] sm:$0xff]  ;;  %v199_v10 = vpack.c.bf16 %v23_v7, %v22_v6  ;;  %v15_v11 = vld [vmem:[%s287_s0 + $0x8] sm:$0xff] }
   0x4   :  { %192 = vmatprep.subr.bf16.mxu0 %v191_v3  ;;  %203 = vmatprep.subr.bf16.mxu1 %v191_v3  ;;  %v17_v12 = vld [vmem:[%s287_s0 + $0x18] sm:$0xff]  ;;  %v158_v13 = vld [vmem:[%s288_s2] ss:$0 sm:$0xff] }
   0x5   :  { %194 = vmatpush3.bf16.msra.mxu0 %v191_v3  ;;  %206 = vmatpush3.bf16.msra.mxu1 %v191_v3 }
   0x6   :  { %196 = vmatprep.subr.bf16.mxu0 %v195_v5  ;;  %204 = vmatprep.subr.bf16.mxu1 %v195_v5 }
   0x7   :  { %185 = vmatprep.mubr.msk.f32.mxu0 %vm31_vm0, %v14_v8  ;;  %188 = vmatprep.mubr.msk.f32.mxu1 %vm31_vm0, %v16_v9 }
   0x9   :  { %198 = vmatpush3.bf16.msra.mxu0 %v195_v5  ;;  %207 = vmatpush3.bf16.msra.mxu1 %v195_v5 }
   0xa   :  { %200 = vmatprep.subr.bf16.mxu0 %v199_v10  ;;  %205 = vmatprep.subr.bf16.mxu1 %v199_v10 }
   0xd   :  { %202 = vmatpush3.bf16.msra.mxu0 %v199_v10  ;;  %208 = vmatpush3.bf16.msra.mxu1 %v199_v10 }
  0x10   :  { %186 = vmatmul.mubr.msk.f32.vlgmr.msra.gmra.mrb[0].mxu0 %vm31_vm0, %v15_v11  ;;  %189 = vmatmul.mubr.msk.f32.vlgmr.msra.gmra.mrb[0].mxu1 %vm31_vm0, %v17_v12 }
  0xe3   :  { %v187_v14 = vpop.f32.mrb[0].mxu0  ;;  %v190_v15 = vpop.f32.mrb[0].mxu1 }
  0xe4   :  { %v116_v16 = vadd.f32 %v187_v14, %v158_v13  ;;  %v126_v17 = vadd.f32 %v190_v15, %v158_v13  ;;  %v110_v18 = vpop.f32.mrb[1].mxu0  ;;  %v120_v19 = vpop.f32.mrb[1].mxu1 }
  0xe5   :  { %v111_v20 = vadd.f32 %v158_v13, %v110_v18  ;;  %v121_v21 = vadd.f32 %v158_v13, %v120_v19 }
  0xe6   :  { %v134_v22 = vmul.f32 0.70710677, %v116_v16  ;;  %v136_v23 = vmul.f32 0.70710677, %v126_v17  ;;  %v130_v28 = vmul.f32 0.5, %v116_v16  ;;  %v132_v31 = vmul.f32 0.5, %v126_v17 }
  0xe7   :  { %v133_v24 = vmul.f32 0.70710677, %v111_v20  ;;  %v135_v25 = vmul.f32 0.70710677, %v121_v21  ;;  %v129_v35 = vmul.f32 0.5, %v111_v20  ;;  %v131_v38 = vmul.f32 0.5, %v121_v21 }
  0xe8   :  { %209 = verf.f32 %v134_v22 }
  0xe9   :  { %211 = verf.f32 %v136_v23 }
  0xea   :  { %213 = verf.f32 %v133_v24 }
  0xeb   :  { %215 = verf.f32 %v135_v25 }
  0xf2   :  { %v210_v26 = vpop.eup %209 }
  0xf3   :  { %v212_v27 = vpop.eup %211  ;;  %v142_v29 = vadd.f32 1.0, %v210_v26 }
  0xf4   :  { %v214_v30 = vpop.eup %213  ;;  %v144_v32 = vadd.f32 1.0, %v212_v27 }
  0xf5   :  { %v216_v33 = vpop.eup %215  ;;  %v146_v34 = vmul.f32 %v142_v29, %v130_v28  ;;  %v141_v36 = vadd.f32 1.0, %v214_v30 }
  0xf6   :  { %v148_v37 = vmul.f32 %v144_v32, %v132_v31  ;;  %v143_v39 = vadd.f32 1.0, %v216_v33 }
  0xf7   :  { %151 = vst.msk [vmem:[%s289_s3 + $0x8] sm:$0xff] %vm149_vm1, %v146_v34  ;;  %v145_v40 = vmul.f32 %v141_v36, %v129_v35 }
  0xf8   :  { %153 = vst.msk [vmem:[%s289_s3 + $0x18] sm:$0xff] %vm149_vm1, %v148_v37  ;;  %v147_v41 = vmul.f32 %v143_v39, %v131_v38 }
  0xf9   :  { %150 = vst.msk [vmem:[%s289_s3] sm:$0xff] %vm149_vm1, %v145_v40 }
  0xfa   :  { %152 = vst.msk [vmem:[%s289_s3 + $0x10] sm:$0xff] %vm149_vm1, %v147_v41 }

// kernel: whisper_forward.7
= control target key start
LH: loop header
LB: loop body
LE: loop exit
PB: predicated region body
PF: predicated region fallthrough
CT: control target
= control target key end

     0   :  { %s2290_s27 = smov 0   ;;  %s2539_s0 = inlined_call_operand.vmem [shape: f32[2,8,32], index: 0, kind: input, shape index: {}]   ;;  %s2540_s1 = inlined_call_operand.vmem [shape: f32[1,32], index: 1, kind: input, shape index: {}]   ;;  %s2541_s2 = inlined_call_operand.vmem [shape: f32[1,32], index: 2, kind: input, shape index: {}]   ;;  %s2542_s3 = inlined_call_operand.vmem [shape: f32[32,32], index: 3, kind: input, shape index: {}]   ;;  %s2543_s4 = inlined_call_operand.vmem [shape: f32[1,32], index: 4, kind: input, shape index: {}]   ;;  %s2544_s5 = inlined_call_operand.vmem [shape: f32[32,32], index: 5, kind: input, shape index: {}]   ;;  %s2545_s6 = inlined_call_operand.vmem [shape: f32[32,32], index: 6, kind: input, shape index: {}]   ;;  %s2546_s7 = inlined_call_operand.vmem [shape: f32[1,32], index: 7, kind: input, shape index: {}]   ;;  %s2547_s8 = inlined_call_operand.vmem [shape: f32[32,32], index: 8, kind: input, shape index: {}]   ;;  %s2548_s9 = inlined_call_operand.vmem [shape: f32[1,32], index: 9, kind: input, shape index: {}]   ;;  %s2549_s10 = inlined_call_operand.vmem [shape: f32[1,32], index: 10, kind: input, shape index: {}]   ;;  %s2550_s11 = inlined_call_operand.vmem [shape: f32[1,32], index: 11, kind: input, shape index: {}]   ;;  %s2551_s12 = inlined_call_operand.vmem [shape: f32[32,64], index: 12, kind: input, shape index: {}]   ;;  %s2552_s13 = inlined_call_operand.vmem [shape: f32[1,64], index: 13, kind: input, shape index: {}]   ;;  %s2553_s14 = inlined_call_operand.vmem [shape: f32[64,32], index: 14, kind: input, shape index: {}]   ;;  %s2554_s15 = inlined_call_operand.vmem [shape: f32[1,32], index: 15, kind: input, shape index: {}]   ;;  %s2555_s16 = inlined_call_operand.vmem [shape: f32[1,32], index: 16, kind: input, shape index: {}]   ;;  %s2556_s17 = inlined_call_operand.vmem [shape: f32[1,32], index: 17, kind: input, shape index: {}]   ;;  %s2557_s18 = inlined_call_operand.vmem [shape: f32[2,8,32], index: 18, kind: output, shape index: {}]  }
   0x1   :  { %2558 = sst [smem:[#allocation2_spill]] %s2539_s0 }
   0x2   :  { %2559 = sst [smem:[#allocation3_spill]] %s2540_s1 }
   0x3   :  { %2560 = sst [smem:[#allocation4_spill]] %s2541_s2 }
   0x4 LB: > { %s1893_s28 = sadd.s32 4294967295, %s2184_s27   ;;  %p1897_p0 = scmp.ge.s32.totalorder %s2184_s27, 1  ;;  %s2184_s27 = sphi %s2290_s27, %s28_s27  }
   0x5   : > { %p511_p1 = scmp.lt.s32.totalorder %s2184_s27, 3 }
   0x7   : > { %p512_p2 = pnand %p1897_p0, %p511_p1 }
   0x8   : > { %p563_p3 = scmp.lt.s32.totalorder (!%p512_p2), %s1893_s28, 1  ;;  %vm574_vm0 = vcmask (!%p512_p2), 261120   ;;  %s2561_s19 = sld [smem:[#allocation2_spill]] (!%p512_p2)  ;;  %v603_v7 = vld [vmem:[%s2542_s3] sm:$0xff] (!%p512_p2)  ;;  %v604_v8 = vld [vmem:[%s2542_s3 + $0x8] sm:$0xff] (!%p512_p2)  ;;  %v2186_v10 = vmov (!%p512_p2), 0.0|0.0  }
   0x9   : > { %515 = sbr.rel (%p512_p2) target bundleno = 2869 (0xb35), region = 92  ;;  %v612_v9 = vld [vmem:[%s2545_s6] sm:$0xff] (!%p512_p2)  ;;  %2095 = vmatprep.subr.bf16.mxu1 (!%p512_p2), %v2186_v10  ;;  %v2096_v11 = vpack.c.bf16 (!%p512_p2), %v604_v8, %v603_v7  ;;  %2107 = vmatprep.subr.bf16.mxu0 (!%p512_p2), %v2186_v10  ;;  %v613_v12 = vld [vmem:[%s2545_s6 + $0x8] sm:$0xff] (!%p512_p2)  ;;  %v605_v13 = vld [vmem:[%s2542_s3 + $0x10] sm:$0xff] (!%p512_p2)  ;;  %vm2187_vm1 = vmmov (!%p512_p2), 0   ;;  %v2188_v18 = vmov (!%p512_p2), 0.0  }
   0xa   : > { %v606_v14 = vld [vmem:[%s2542_s3 + $0x18] sm:$0xff] (!%p512_p2)  ;;  %v2108_v15 = vpack.c.bf16 (!%p512_p2), %v613_v12, %v612_v9  ;;  %v614_v16 = vld [vmem:[%s2545_s6 + $0x10] sm:$0xff] (!%p512_p2)  ;;  %1989 = vmatprep.mubr.msk.f32.mxu1 (!%p512_p2), %vm2187_vm1, %v2188_v18  ;;  %2011 = vmatprep.mubr.msk.f32.mxu0 (!%p512_p2), %vm2187_vm1, %v2188_v18  ;;  %s2562_s25 = sld [smem:[#allocation3_spill]] (!%p512_p2)  ;;  %v608_v27 = vld [vmem:[%s2544_s5] sm:$0xff] (!%p512_p2)  ;;  %s2563_s21 = sld [smem:[#allocation4_spill]] (!%p512_p2)  ;;  %vm848_vm2 = vcmask (!%p512_p2), 64512  }
   0xb   : > { %v615_v17 = vld [vmem:[%s2545_s6 + $0x18] sm:$0xff] (!%p512_p2)  ;;  %2097 = vmatpush3.bf16.msra.mxu1 (!%p512_p2), %v2096_v11  ;;  %v2099_v19 = vpack.c.bf16 (!%p512_p2), %v606_v14, %v605_v13  ;;  %v609_v28 = vld [vmem:[%s2544_s5 + $0x8] sm:$0xff] (!%p512_p2)  ;;  %v610_v33 = vld [vmem:[%s2544_s5 + $0x10] sm:$0xff] (!%p512_p2)  ;;  %s2189_s30 = smov (!%p512_p2), 120   ;;  %s2191_s20 = smov (!%p512_p2), 104   ;;  %vm1518_vm3 = vcmask (!%p512_p2), 130048  }
   0xc   : > { %2109 = vmatpush3.bf16.msra.mxu0 (!%p512_p2), %v2108_v15  ;;  %2098 = vmatprep.subr.bf16.mxu1 (!%p512_p2), %v2186_v10  ;;  %v2111_v20 = vpack.c.bf16 (!%p512_p2), %v615_v17, %v614_v16  ;;  %v2102_v31 = vpack.c.bf16 (!%p512_p2), %v609_v28, %v608_v27  ;;  %v611_v34 = vld [vmem:[%s2544_s5 + $0x18] sm:$0xff] (!%p512_p2)  ;;  %v1902_v36 = vld [vmem:[%s2543_s4] ss:$0 sm:$0xff] (!%p512_p2)  ;;  %s2192_s0 = smov (!%p512_p2), 8   ;;  %vm1520_vm4 = vcmask (!%p512_p2), 195584   ;;  %vm1735_vm5 = vcmask (!%p512_p2), 523264  }
   0xd   : > { %2110 = vmatprep.subr.bf16.mxu0 (!%p512_p2), %v2186_v10  ;;  %v2105_v35 = vpack.c.bf16 (!%p512_p2), %v611_v34, %v610_v33  ;;  %v1905_v43 = vld [vmem:[%s2546_s7] ss:$0 sm:$0xff] (!%p512_p2) }
   0xf   : > { %2100 = vmatpush3.bf16.msra.mxu1 (!%p512_p2), %v2099_v19 }
  0x10   : > { %s2565_s28 = smov (!%p563_p3, %s1893_s28), 1  ;;  %2112 = vmatpush3.bf16.msra.mxu0 %v2111_v20  ;;  %2101 = vmatprep.subr.bf16.mxu1 %v2186_v10  ;;  %v1900_v25 = vld [vmem:[%s2562_s25] ss:$0 sm:$0xff] }
  0x11   : > { %s1898_s29 = sshll.u32 %s2565_s28, 3  ;;  %2024 = vmatprep.subr.mxu0 %v2188_v18  ;;  %v1901_v29 = vld [vmem:[%s2563_s21] ss:$0 sm:$0xff] }
  0x12   : > { %s566_s1 = scalar_lea.vmem %s2561_s19, %s1898_s29  ;;  %s2193_s19 = smov 16  }
  0x13   : > { %v2306_v0 = vld [vmem:[%s566_s1] sm:$0xff]  ;;  %s2190_s1 = smov 112   ;;  %s570_s23 = scalar_lea.vmem %s2557_s18, %s1898_s29 }
  0x14   : > { %v575_v1 = vsel %vm574_vm0, %v2306_v0, 0.0 }
  0x15   : > { %576 = vadd.xlane.f32.xlu0 %v575_v1 }
  0xa2   : > { %v577_v2 = vpop.xlane.xlu0 %576 }
  0xa3   : > { %v579_v3 = vmul.f32 0.03125, %v577_v2 }
  0xa5   : > { %v580_v4 = vsub.f32 %v2306_v0, %v579_v3 }
  0xa7   : > { %v581_v5 = vmul.f32 %v580_v4, %v580_v4 }
  0xa9   : > { %v582_v6 = vsel %vm574_vm0, %v581_v5, 0.0 }
  0xaa   : > { %583 = vadd.xlane.f32.xlu0 %v582_v6 }
 0x137   : > { %v584_v21 = vpop.xlane.xlu0 %583 }
 0x138   : > { %v585_v22 = vmul.f32 0.03125, %v584_v21 }
 0x13a   : > { %v586_v23 = vadd.f32 1e-05, %v585_v22 }
 0x13c   : > { %2154 = vrsqrt.f32 %v586_v23 }
 0x146   : > { %v2155_v24 = vpop.eup %2154 }
 0x147   : > { %v588_v26 = vmul.f32 %v2155_v24, %v580_v4 }
 0x149   : > { %v595_v30 = vmul.f32 %v1900_v25, %v588_v26 }
 0x14b   : > { %v602_v32 = vadd.f32 %v1901_v29, %v595_v30 }
 0x14d   : > { %1990 = vmatmul.mubr.msk.f32.vlgmr.msra.gmra.mrb[0].mxu1 %vm574_vm0, %v602_v32  ;;  %2012 = vmatmul.mubr.msk.f32.vlgmr.msra.gmra.mrb[0].mxu0 %vm574_vm0, %v602_v32 }
 0x14e   : > { %2103 = vmatpush3.bf16.msra.mxu1 %v2102_v31  ;;  %2000 = vmatprep.mubr.msk.f32.mxu1 %vm2187_vm1, %v2188_v18 }
 0x14f   : > { %2104 = vmatprep.subr.bf16.mxu1 %v2186_v10  ;;  %2026 = vmatprep.mubr.msk.f32.mxu0 %vm2187_vm1, %v2188_v18 }
 0x152   : > { %2106 = vmatpush3.bf16.msra.mxu1 %v2105_v35 }
 0x153   : > { %2014 = vmatprep.subr.mxu1 %v2188_v18 }
 0x155   : > { %2001 = vmatmul.mubr.msk.f32.vlgmr.msra.gmra.mrb[2].mxu1 %vm574_vm0, %v602_v32 }
 0x156   : > { %2016 = vmatprep.mubr.msk.f32.mxu1 %vm2187_vm1, %v2188_v18 }
 0x220   : > { %v697_v37 = vpop.f32.mrb[0].mxu1  ;;  %v844_v38 = vpop.f32.mrb[0].mxu0 }
 0x221   : > { %v698_v39 = vadd.f32 %v1902_v36, %v697_v37  ;;  %v1991_v40 = vpop.f32.mrb[1].mxu1  ;;  %v2013_v41 = vpop.f32.mrb[1].mxu0  ;;  %v2386_v46 = vadd.f32 %v1905_v43, %v844_v38  ;;  %v619_v43 = vld [vmem:[%s2547_s8 + $0x10] sm:$0xff] }
 0x222   : > { %v617_v41 = vld [vmem:[%s2547_s8] sm:$0xff] }
 0x223   : > { %v701_v42 = vmul.f32 0.35355338, %v698_v39 }
 0x225   : > { %1009 = vrot.lane.b32.xlu1 %v701_v42, %s2189_s30 }
 0x228   : > { %v768_v44 = vpop.f32.mrb[2].mxu1 }
 0x229   : > { %1177 = vrot.lane.b32.xlu0 %v768_v44, %s2190_s1  ;;  %v2002_v45 = vpop.f32.mrb[3].mxu1  ;;  %2015 = vmatpush3.xpose.msk.msra.mxu1 %vm848_vm2, %v768_v44 }
 0x22a   : > { %1011 = vrot.lane.b32.xlu1 %v768_v44, %s2189_s30  ;;  %2019 = vmatprep.subr.mxu1 %v2188_v18  ;;  %v620_v45 = vld [vmem:[%s2547_s8 + $0x18] sm:$0xff] }
 0x22c   : > { %2017 = vmatmul.mubr.msk.f32.vlgmr.msra.gmra.mrb[4].mxu1 %vm848_vm2, %v701_v42 }
 0x22d   : > { %2020 = vmatpush3.msra.mxu1 %v2386_v46  ;;  %2021 = vmatprep.mubr.msk.f32.mxu1 %vm2187_vm1, %v2188_v18 }
 0x22e   : > { %1175 = vrot.lane.b32.xlu1 %v701_v42, %s2190_s1  ;;  %2029 = vmatprep.subr.mxu1 %v2188_v18 }
 0x232   : > { %1342 = vrot.lane.b32.xlu1 %v768_v44, %s2191_s20 }
 0x236   : > { %1340 = vrot.lane.b32.xlu1 %v701_v42, %s2191_s20  ;;  %v618_v42 = vld [vmem:[%s2547_s8 + $0x8] sm:$0xff] }
 0x237   : > { %v2114_v44 = vpack.c.bf16 %v618_v42, %v617_v41  ;;  %v1925_v42 = vld [vmem:[%s2554_s15] ss:$0 sm:$0xff] }
 0x297   : > { %v1010_v47 = vpop.permute.xlu1 %1009 }
 0x29b   : > { %v1178_v49 = vpop.permute.xlu0 %1177 }
 0x29c   : > { %v1012_v48 = vpop.permute.xlu1 %1011 }
 0x29d   : > { %2025 = vmatpush3.xpose.msk.msra.mxu0 %vm848_vm2, %v1012_v48 }
 0x29e   : > { %2034 = vmatprep.subr.mxu0 %v2188_v18 }
 0x2a0   : > { %2027 = vmatmul.mubr.msk.f32.vlgmr.msra.gmra.mrb[2].mxu0 %vm848_vm2, %v1010_v47  ;;  %v1176_v50 = vpop.permute.xlu1 %1175 }
 0x2a1   : > { %2035 = vmatpush3.xpose.msk.msra.mxu0 %vm848_vm2, %v1178_v49  ;;  %2036 = vmatprep.mubr.msk.f32.mxu0 %vm2187_vm1, %v2188_v18 }
 0x2a2   : > { %2044 = vmatprep.subr.mxu0 %v2188_v18 }
 0x2a4   : > { %2037 = vmatmul.mubr.msk.f32.vlgmr.msra.gmra.mrb[4].mxu0 %vm848_vm2, %v1176_v50  ;;  %v1343_v51 = vpop.permute.xlu1 %1342 }
 0x2a5   : > { %2045 = vmatpush3.xpose.msk.msra.mxu0 %vm848_vm2, %v1343_v51  ;;  %2046 = vmatprep.mubr.msk.f32.mxu0 %vm2187_vm1, %v2188_v18 }
 0x2a6   : > { %2113 = vmatprep.subr.bf16.mxu0 %v2186_v10 }
 0x2a8   : > { %v1341_v52 = vpop.permute.xlu1 %1340 }
 0x2a9   : > { %2047 = vmatmul.mubr.msk.f32.vlgmr.msra.gmra.mrb[6].mxu0 %vm848_vm2, %v1341_v52 }
 0x2aa   : > { %2062 = vmatprep.mubr.msk.f32.mxu0 %vm2187_vm1, %v2188_v18  ;;  %2115 = vmatpush3.bf16.msra.mxu0 %v2114_v44 }
 0x2ab   : > { %2116 = vmatprep.subr.bf16.mxu0 %v2186_v10 }
 0x2ff   : > { %v921_v53 = vpop.f32.mrb[4].mxu1 }
 0x300   : > { %v2018_v54 = vpop.f32.mrb[5].mxu1  ;;  %v925_v55 = vsel %vm848_vm2, %v921_v53, -inf }
 0x301   : > { %926 = vmax.xlane.f32.xlu1 %v925_v55 }
 0x373   : > { %v1083_v56 = vpop.f32.mrb[2].mxu0 }
 0x374   : > { %v2028_v57 = vpop.f32.mrb[3].mxu0  ;;  %v1087_v58 = vsel %vm848_vm2, %v1083_v56, -inf }
 0x375   : > { %1088 = vmax.xlane.f32.xlu0 %v1087_v58 }
 0x377   : > { %v1249_v59 = vpop.f32.mrb[4].mxu0 }
 0x378   : > { %v2038_v60 = vpop.f32.mrb[5].mxu0  ;;  %v1253_v61 = vsel %vm848_vm2, %v1249_v59, -inf }
 0x379   : > { %1254 = vmax.xlane.f32.xlu1 %v1253_v61 }
 0x37c   : > { %v1414_v62 = vpop.f32.mrb[6].mxu0 }
 0x37d   : > { %v2048_v63 = vpop.f32.mrb[7].mxu0  ;;  %v1418_v1 = vsel %vm848_vm2, %v1414_v62, -inf }
 0x37e   : > { %1419 = vmax.xlane.f32.xlu1 %v1418_v1 }
 0x38e   : > { %v927_v2 = vpop.xlane.xlu1 %926 }
 0x38f   : > { %v928_v3 = vsub.f32 %v921_v53, %v927_v2 }
 0x391   : > { %v929_v4 = vmul.f32 1.442695, %v928_v3 }
 0x393   : > { %2156 = vpow2.f32 %v929_v4 }
 0x39d   : > { %v2157_v5 = vpop.eup %2156 }
 0x39e   : > { %v931_v6 = vsel %vm848_vm2, %v2157_v5, 0.0 }
 0x39f   : > { %932 = vadd.xlane.f32.xlu0 %v931_v6  ;;  %v1631_v6 = vld [vmem:[%s2551_s12] sm:$0xff] }
 0x402   : > { %v1089_v7 = vpop.xlane.xlu0 %1088 }
 0x403   : > { %v1090_v8 = vsub.f32 %v1083_v56, %v1089_v7 }
 0x405   : > { %v1091_v9 = vmul.f32 1.442695, %v1090_v8  ;;  %v1633_v8 = vld [vmem:[%s2551_s12 + $0x10] sm:$0xff] }
 0x406   : > { %v1255_v11 = vpop.xlane.xlu1 %1254 }
 0x407   : > { %2158 = vpow2.f32 %v1091_v9  ;;  %v1256_v12 = vsub.f32 %v1249_v59, %v1255_v11  ;;  %v1919_v59 = vld [vmem:[%s2548_s9] ss:$0 sm:$0xff]  ;;  %v1634_v9 = vld [vmem:[%s2551_s12 + $0x18] sm:$0xff] }
 0x408   : > { %v2123_v11 = vpack.c.bf16 %v1634_v9, %v1633_v8 }
 0x409   : > { %v1257_v13 = vmul.f32 1.442695, %v1256_v12 }
 0x40b   : > { %2160 = vpow2.f32 %v1257_v13  ;;  %v1420_v20 = vpop.xlane.xlu1 %1419 }
 0x40c   : > { %v1421_v21 = vsub.f32 %v1414_v62, %v1420_v20 }
 0x40e   : > { %v1422_v22 = vmul.f32 1.442695, %v1421_v21 }
 0x411   : > { %v2159_v14 = vpop.eup %2158 }
 0x412   : > { %v1093_v15 = vsel %vm848_vm2, %v2159_v14, 0.0 }
 0x413   : > { %1094 = vadd.xlane.f32.xlu1 %v1093_v15 }
 0x415   : > { %v2161_v16 = vpop.eup %2160 }
 0x416   : > { %v1259_v17 = vsel %vm848_vm2, %v2161_v16, 0.0 }
 0x417   : > { %1260 = vadd.xlane.f32.xlu0 %v1259_v17 }
 0x424   : > { %1264 = vrot.lane.b32.xlu1 %v2386_v46, %s2190_s1  ;;  %s2194_s1 = smov 24  }
 0x42c   : > { %v933_v19 = vpop.xlane.xlu0 %932 }
 0x42d   : > { %2162 = vrcp.f32 %v933_v19  ;;  %1099 = vrot.lane.b32.xlu0 %v2386_v46, %s2189_s30  ;;  %v1922_v19 = vld [vmem:[%s2550_s11] ss:$0 sm:$0xff] }
 0x42e   : > { %2164 = vpow2.f32 %v1422_v22  ;;  %v1720_v22 = vld [vmem:[%s2553_s14] sm:$0xff] }
 0x437   : > { %v2163_v23 = vpop.eup %2162 }
 0x438   : > { %v935_v24 = vmul.f32 %v2163_v23, %v2157_v5  ;;  %v2165_v25 = vpop.eup %2164  ;;  %v1721_v23 = vld [vmem:[%s2553_s14 + $0x8] sm:$0xff] }
 0x439   : > { %v1424_v26 = vsel %vm848_vm2, %v2165_v25, 0.0 }
 0x43a   : > { %2022 = vmatmul.mubr.msk.f32.vlgmr.msra.gmra.mrb[6].mxu1 %vm848_vm2, %v935_v24  ;;  %v2126_v24 = vpack.c.bf16 %v1721_v23, %v1720_v22 }
 0x43b   : > { %2031 = vmatprep.mubr.msk.f32.mxu1 %vm2187_vm1, %v2188_v18 }
 0x448   : > { %1425 = vadd.xlane.f32.xlu1 %v1424_v26  ;;  %v1723_v26 = vld [vmem:[%s2553_s14 + $0x18] sm:$0xff] }
 0x459   : > { %1429 = vrot.lane.b32.xlu1 %v2386_v46, %s2191_s20  ;;  %v2117_v46 = vpack.c.bf16 %v620_v45, %v619_v43 }
 0x45b   : > { %2118 = vmatpush3.bf16.msra.mxu0 %v2117_v46 }
 0x45c   : > { %2125 = vmatprep.subr.bf16.mxu0 %v2186_v10 }
 0x4a0   : > { %v1095_v27 = vpop.xlane.xlu1 %1094 }
 0x4a1   : > { %2166 = vrcp.f32 %v1095_v27 }
 0x4a4   : > { %v1261_v28 = vpop.xlane.xlu0 %1260  ;;  %v1265_v32 = vpop.permute.xlu1 %1264 }
 0x4a5   : > { %2168 = vrcp.f32 %v1261_v28  ;;  %v1724_v28 = vld [vmem:[%s2553_s14 + $0x20] sm:$0xff] }
 0x4a8   : > { %v1100_v29 = vpop.permute.xlu0 %1099 }
 0x4a9   : > { %2030 = vmatpush3.msra.mxu1 %v1100_v29  ;;  %v1725_v29 = vld [vmem:[%s2553_s14 + $0x28] sm:$0xff] }
 0x4aa   : > { %2039 = vmatprep.subr.mxu1 %v2188_v18 }
 0x4ab   : > { %v2167_v30 = vpop.eup %2166 }
 0x4ac   : > { %v1097_v31 = vmul.f32 %v2167_v30, %v2159_v14  ;;  %v2132_v30 = vpack.c.bf16 %v1725_v29, %v1724_v28 }
 0x4ae   : > { %2032 = vmatmul.mubr.msk.f32.vlgmr.msra.gmra.mrb[8].mxu1 %vm848_vm2, %v1097_v31  ;;  %v1726_v31 = vld [vmem:[%s2553_s14 + $0x30] sm:$0xff] }
 0x4af   : > { %v2169_v33 = vpop.eup %2168  ;;  %2040 = vmatpush3.msra.mxu1 %v1265_v32  ;;  %2041 = vmatprep.mubr.msk.f32.mxu1 %vm2187_vm1, %v2188_v18  ;;  %v1727_v32 = vld [vmem:[%s2553_s14 + $0x38] sm:$0xff] }
 0x4b0   : > { %v1263_v34 = vmul.f32 %v2169_v33, %v2161_v16  ;;  %2049 = vmatprep.subr.mxu1 %v2188_v18  ;;  %v1921_v16 = vld [vmem:[%s2549_s10] ss:$0 sm:$0xff]  ;;  %v2135_v33 = vpack.c.bf16 %v1727_v32, %v1726_v31 }
 0x4b2   : > { %2042 = vmatmul.mubr.msk.f32.vlgmr.msra.gmra.mrb[10].mxu1 %vm848_vm2, %v1263_v34  ;;  %v1923_v34 = vld [vmem:[%s2552_s13] ss:$0 sm:$0xff] }
 0x4b3   : > { %2051 = vmatprep.mubr.msk.f32.mxu1 %vm2187_vm1, %v2188_v18 }
 0x4d5   : > { %v1426_v35 = vpop.xlane.xlu1 %1425 }
 0x4d6   : > { %2170 = vrcp.f32 %v1426_v35 }
 0x4d9   : > { %v1430_v36 = vpop.permute.xlu1 %1429 }
 0x4da   : > { %2050 = vmatpush3.msra.mxu1 %v1430_v36 }
 0x4db   : > { %2119 = vmatprep.subr.bf16.mxu1 %v2186_v10 }
 0x4e0   : > { %v2171_v37 = vpop.eup %2170 }
 0x4e1   : > { %v1428_v38 = vmul.f32 %v2171_v37, %v2165_v25  ;;  %v1722_v25 = vld [vmem:[%s2553_s14 + $0x10] sm:$0xff] }
 0x4e2   : > { %v2129_v27 = vpack.c.bf16 %v1723_v26, %v1722_v25 }
 0x4e3   : > { %2052 = vmatmul.mubr.msk.f32.vlgmr.msra.gmra.mrb[12].mxu1 %vm848_vm2, %v1428_v38 }
 0x4e4   : > { %2073 = vmatprep.mubr.msk.f32.mxu1 %vm2187_vm1, %v2188_v18 }
 0x50d   : > { %v1005_v39 = vpop.f32.mrb[6].mxu1 }
 0x50e   : > { %v2023_v40 = vpop.f32.mrb[7].mxu1 }
 0x581   : > { %v1171_v47 = vpop.f32.mrb[8].mxu1 }
 0x582   : > { %1506 = vrot.lane.b32.xlu0 %v1171_v47, %s2192_s0  ;;  %v2033_v48 = vpop.f32.mrb[9].mxu1 }
 0x585   : > { %v1336_v49 = vpop.f32.mrb[10].mxu1 }
 0x586   : > { %1510 = vrot.lane.b32.xlu1 %v1336_v49, %s2193_s19  ;;  %v2043_v50 = vpop.f32.mrb[11].mxu1 }
 0x5b6   : > { %v1501_v51 = vpop.f32.mrb[12].mxu1 }
 0x5b7   : > { %1514 = vrot.lane.b32.xlu0 %v1501_v51, %s2194_s1  ;;  %v2053_v52 = vpop.f32.mrb[13].mxu1 }
 0x5f4   : > { %v1507_v53 = vpop.permute.xlu0 %1506 }
 0x5f5   : > { %v1517_v55 = vsel %vm848_vm2, %v1005_v39, %v1507_v53 }
 0x5f8   : > { %v1511_v54 = vpop.permute.xlu1 %1510 }
 0x5f9   : > { %v1519_v56 = vsel %vm1518_vm3, %v1517_v55, %v1511_v54 }
 0x629   : > { %v1515_v57 = vpop.permute.xlu0 %1514 }
 0x62a   : > { %v1521_v58 = vsel %vm1520_vm4, %v1519_v56, %v1515_v57  ;;  %v1927_v57 = vld [vmem:[%s2555_s16] ss:$0 sm:$0xff] }
 0x62b   : > { %2063 = vmatmul.mubr.msk.f32.vlgmr.msra.gmra.mrb[8].mxu0 %vm574_vm0, %v1521_v58 }
 0x62c   : > { %2092 = vmatprep.mubr.msk.f32.mxu0 %vm2187_vm1, %v2188_v18  ;;  %2127 = vmatpush3.bf16.msra.mxu0 %v2126_v24 }
 0x62d   : > { %2128 = vmatprep.subr.bf16.mxu0 %v2186_v10 }
 0x630   : > { %2130 = vmatpush3.bf16.msra.mxu0 %v2129_v27 }
 0x631   : > { %2131 = vmatprep.subr.bf16.mxu0 %v2186_v10 }
 0x634   : > { %2133 = vmatpush3.bf16.msra.mxu0 %v2132_v30 }
 0x635   : > { %2134 = vmatprep.subr.bf16.mxu0 %v2186_v10 }
 0x638   : > { %2136 = vmatpush3.bf16.msra.mxu0 %v2135_v33 }
 0x6fe   : > { %v1597_v60 = vpop.f32.mrb[8].mxu0 }
 0x6ff   : > { %v1598_v61 = vadd.f32 %v1919_v59, %v1597_v60  ;;  %v2064_v62 = vpop.f32.mrb[9].mxu0  ;;  %v1928_v59 = vld [vmem:[%s2556_s17] ss:$0 sm:$0xff] }
 0x701   : > { %v2462_v63 = vadd.f32 %v1598_v61, %v2306_v0  ;;  %v1632_v0 = vld [vmem:[%s2551_s12 + $0x8] sm:$0xff] }
 0x702   : > { %v2120_v7 = vpack.c.bf16 %v1632_v0, %v1631_v6 }
 0x703   : > { %v1604_v1 = vsel %vm574_vm0, %v2462_v63, 0.0 }
 0x704   : > { %1605 = vadd.xlane.f32.xlu1 %v1604_v1  ;;  %2121 = vmatpush3.bf16.msra.mxu1 %v2120_v7 }
 0x705   : > { %2122 = vmatprep.subr.bf16.mxu1 %v2186_v10 }
 0x708   : > { %2124 = vmatpush3.bf16.msra.mxu1 %v2123_v11 }
 0x791   : > { %v1606_v2 = vpop.xlane.xlu1 %1605 }
 0x792   : > { %v1607_v3 = vmul.f32 0.03125, %v1606_v2 }
 0x794   : > { %v1608_v4 = vsub.f32 %v2462_v63, %v1607_v3 }
 0x796   : > { %v1609_v5 = vmul.f32 %v1608_v4, %v1608_v4 }
 0x798   : > { %v1610_v18 = vsel %vm574_vm0, %v1609_v5, 0.0 }
 0x799   : > { %1611 = vadd.xlane.f32.xlu0 %v1610_v18 }
 0x826   : > { %v1612_v12 = vpop.xlane.xlu0 %1611 }
 0x827   : > { %v1613_v13 = vmul.f32 0.03125, %v1612_v12 }
 0x829   : > { %v1614_v14 = vadd.f32 1e-05, %v1613_v13 }
 0x82b   : > { %2172 = vrsqrt.f32 %v1614_v14 }
 0x835   : > { %v2173_v15 = vpop.eup %2172 }
 0x836   : > { %v1616_v17 = vmul.f32 %v2173_v15, %v1608_v4 }
 0x838   : > { %v1623_v20 = vmul.f32 %v1921_v16, %v1616_v17 }
 0x83a   : > { %v1630_v21 = vadd.f32 %v1922_v19, %v1623_v20 }
 0x83c   : > { %2074 = vmatmul.mubr.msk.f32.vlgmr.msra.gmra.mrb[14].mxu1 %vm574_vm0, %v1630_v21 }
 0x90f   : > { %v1711_v35 = vpop.f32.mrb[14].mxu1 }
 0x910   : > { %v1712_v36 = vadd.f32 %v1923_v34, %v1711_v35  ;;  %v2075_v37 = vpop.f32.mrb[15].mxu1 }
 0x912   : > { %v1716_v38 = vmul.f32 0.70710677, %v1712_v36  ;;  %v1715_v39 = vmul.f32 0.5, %v1712_v36 }
 0x914   : > { %2174 = verf.f32 %v1716_v38 }
 0x91e   : > { %v2175_v10 = vpop.eup %2174 }
 0x91f   : > { %v1718_v40 = vadd.f32 1.0, %v2175_v10 }
 0x921   : > { %v1719_v41 = vmul.f32 %v1718_v40, %v1715_v39 }
 0x923   : > { %2093 = vmatmul.mubr.msk.f32.vlgmr.msra.gmra.mrb[10].mxu0 %vm1735_vm5, %v1719_v41 }
 0x9f6   : > { %v1805_v43 = vpop.f32.mrb[10].mxu0 }
 0x9f7   : > { %v1806_v44 = vadd.f32 %v1925_v42, %v1805_v43  ;;  %v2094_v45 = vpop.f32.mrb[11].mxu0 }
 0x9f9   : > { %v1809_v46 = vadd.f32 %v1806_v44, %v2462_v63 }
 0x9fb   : > { %v1812_v47 = vsel %vm574_vm0, %v1809_v46, 0.0 }
 0x9fc   : > { %1813 = vadd.xlane.f32.xlu0 %v1812_v47 }
 0xa89   : > { %v1814_v48 = vpop.xlane.xlu0 %1813 }
 0xa8a   : > { %v1815_v49 = vmul.f32 0.03125, %v1814_v48 }
 0xa8c   : > { %v1816_v50 = vsub.f32 %v1809_v46, %v1815_v49 }
 0xa8e   : > { %v1817_v51 = vmul.f32 %v1816_v50, %v1816_v50 }
 0xa90   : > { %v1818_v52 = vsel %vm574_vm0, %v1817_v51, 0.0 }
 0xa91   : > { %1819 = vadd.xlane.f32.xlu1 %v1818_v52 }
 0xb1e   : > { %v1820_v53 = vpop.xlane.xlu1 %1819 }
 0xb1f   : > { %v1821_v54 = vmul.f32 0.03125, %v1820_v53 }
 0xb21   : > { %v1822_v55 = vadd.f32 1e-05, %v1821_v54 }
 0xb23   : > { %2176 = vrsqrt.f32 %v1822_v55 }
 0xb2d   : > { %v2177_v56 = vpop.eup %2176 }
 0xb2e   : > { %v1824_v58 = vmul.f32 %v2177_v56, %v1816_v50 }
 0xb30   : > { %v1831_v60 = vmul.f32 %v1927_v57, %v1824_v58 }
 0xb32   : > { %v1838_v61 = vadd.f32 %v1928_v59, %v1831_v60 }
 0xb34   : > { %1839 = vst.msk [vmem:[%s570_s23] sm:$0xff] %vm574_vm0, %v1838_v61 }
 0xb35 PF: > { %s28_s27 = sadd.s32 1, %s2184_s27  }
 0xb36   : > { %p25_p4 = scmp.ge.s32.totalorder %s28_s27, 4  }
 0xb38   :  { %27 = sbr.rel (!%p25_p4) target bundleno = 4 (0x4), region = 122 }

// kernel: whisper_forward.9
= control target key start
LH: loop header
LB: loop body
LE: loop exit
PB: predicated region body
PF: predicated region fallthrough
CT: control target
= control target key end

     0   :  { %vm26_vm0 = vcmask 261120   ;;  %s350_s0 = inlined_call_operand.vmem [shape: f32[16,32], index: 0, kind: input, shape index: {}]   ;;  %s351_s1 = inlined_call_operand.vmem [shape: f32[32,128], index: 1, kind: input, shape index: {}]   ;;  %s352_s2 = inlined_call_operand.vmem [shape: f32[16,128], index: 2, kind: input, shape index: {}]   ;;  %s353_s3 = inlined_call_operand.vmem [shape: f32[16,1], index: 3, kind: input, shape index: {}]   ;;  %s354_s4 = inlined_call_operand.vmem [shape: f32[16,128], index: 4, kind: output, shape index: {0}]   ;;  %s355_s5 = inlined_call_operand.hbm [shape: f32[1,1], index: 5, kind: output, shape index: {1}]  }
   0x1   :  { %v22_v0 = vld [vmem:[%s351_s1] sm:$0xff]  ;;  %v23_v1 = vld [vmem:[%s351_s1 + $0x8] sm:$0xff]  ;;  %v24_v2 = vld [vmem:[%s351_s1 + $0x10] sm:$0xff] }
   0x2   :  { %v218_v3 = vpack.c.bf16 %v23_v1, %v22_v0  ;;  %v25_v4 = vld [vmem:[%s351_s1 + $0x18] sm:$0xff]  ;;  %v20_v5 = vld [vmem:[%s350_s0] sm:$0xff] }
   0x3   :  { %v222_v6 = vpack.c.bf16 %v25_v4, %v24_v2  ;;  %215 = vmatprep.mubr.msk.f32.mxu0 %vm26_vm0, %v20_v5 }
   0x4   :  { %11 = vsyncpa [#allocation3], 0  ;;  %219 = vmatprep.subr.bf16.mxu0 %v218_v3  ;;  %v21_v7 = vld [vmem:[%s350_s0 + $0x8] sm:$0xff]  ;;  %v110_v8 = vlaneseq  ;;  %v135_v14 = vld [vmem:[%s352_s2] sm:$0xff]  ;;  %vm149_vm2 = vcmask 7168   ;;  %s266_s14 = smov 1.0  }
   0x5   :  { %221 = vmatpush3.bf16.msra.mxu0 %v218_v3  ;;  %v136_v24 = vld [vmem:[%s352_s2 + $0x8] sm:$0xff]  ;;  %v145_v27 = vld [vmem:[%s353_s3] sm:$0xff]  ;;  %s267_s16 = smov [#allocation2]   ;;  %vm179_vm3 = vcmask 0  }
   0x6   :  { %223 = vmatprep.subr.bf16.mxu0 %v222_v6  ;;  %v111_v9 = vand.u32 127, %v110_v8  ;;  %v146_v26 = vld [vmem:[%s353_s3 + $0x8] sm:$0xff]  ;;  %v163_v28 = vsel %vm149_vm2, %v145_v27, 0.0  ;;  %s189_s17 = sshll.u32 %s267_s16, 4  ;;  %s190_s17 = int_to_ptr.vmem [resolvable:$true] %s189_s17 }
   0x7   :  { %v164_v29 = vsel %vm149_vm2, %v146_v26, 0.0  ;;  %s242_s18 = scalar_lea.vmem %s190_s17, 16  ;;  %s246_s19 = scalar_lea.vmem %s190_s17, 32 }
   0x8   :  { %vm112_vm1 = vcmp.lt.s32.totalorder %v111_v9, 64  ;;  %v165_v30 = vadd.f32 %v164_v29, %v163_v28  ;;  %p243_p0 = scmp.ne.s32.totalorder %s190_s17, %s242_s18  ;;  %p247_p1 = scmp.lt.s32.totalorder %s190_s17, %s190_s17 }
   0x9   :  { %225 = vmatpush3.bf16.msra.mxu0 %v222_v6  ;;  %p248_p2 = scmp.lt.s32.totalorder %s246_s19, %s242_s18 }
   0xb   :  { %p249_p3 = por %p248_p2, %p247_p1 }
   0xc   :  { %216 = vmatmul.mubr.msk.f32.vlgmr.msra.gmra.mrb[0].mxu0 %vm26_vm0, %v21_v7 }
   0xd   :  { %p250_p4 = pnand %p249_p3, %p243_p0 }
  0xdf   :  { %v217_v10 = vpop.f32.mrb[0].mxu0 }
  0xe0   :  { %109 = vst [vmem:[%s354_s4 + $0x8] sm:$0xff] %v217_v10  ;;  %v99_v11 = vpop.f32.mrb[1].mxu0  ;;  %v114_v13 = vsel %vm112_vm1, %v217_v10, -1e+09  ;;  %v138_v25 = vmul.f32 %v217_v10, %v136_v24 }
  0xe1   :  { %108 = vst [vmem:[%s354_s4] sm:$0xff] %v99_v11  ;;  %v113_v12 = vsel %vm112_vm1, %v99_v11, -1e+09  ;;  %v137_v15 = vmul.f32 %v135_v14, %v99_v11 }
  0xe2   :  { %115 = vmax.xlane.f32.xlu0 %v113_v12 }
  0xe6   :  { %117 = vmax.xlane.f32.xlu0 %v114_v13 }
  0xea   :  { %139 = vadd.xlane.f32.xlu0 %v137_v15 }
 0x16f   :  { %v116_v16 = vpop.xlane.xlu0 %115 }
 0x170   :  { %v119_v17 = vsub.f32 %v113_v12, %v116_v16 }
 0x172   :  { %v121_v18 = vmul.f32 1.442695, %v119_v17 }
 0x173   :  { %v118_v19 = vpop.xlane.xlu0 %117 }
 0x174   :  { %v120_v20 = vsub.f32 %v114_v13, %v118_v19  ;;  %232 = vpow2.f32 %v121_v18 }
 0x176   :  { %v123_v21 = vmul.f32 1.442695, %v120_v20 }
 0x177   :  { %v140_v37 = vpop.xlane.xlu0 %139 }
 0x178   :  { %234 = vpow2.f32 %v123_v21 }
 0x17e   :  { %v233_v22 = vpop.eup %232 }
 0x17f   :  { %125 = vadd.xlane.f32.xlu1 %v233_v22 }
 0x182   :  { %v235_v23 = vpop.eup %234 }
 0x183   :  { %127 = vadd.xlane.f32.xlu1 %v235_v23 }
 0x187   :  { %141 = vadd.xlane.f32.xlu1 %v138_v25 }
 0x18b   :  { %166 = vadd.xlane.f32.xlu1 %v165_v30 }
 0x20c   :  { %v126_v31 = vpop.xlane.xlu1 %125 }
 0x20d   :  { %236 = vlog2.f32 %v126_v31 }
 0x210   :  { %v128_v32 = vpop.xlane.xlu1 %127 }
 0x211   :  { %238 = vlog2.f32 %v128_v32 }
 0x214   :  { %v142_v41 = vpop.xlane.xlu1 %141 }
 0x217   :  { %v237_v33 = vpop.eup %236 }
 0x218   :  { %v130_v34 = vmul.f32 0.6931472, %v237_v33  ;;  %v167_v48 = vpop.xlane.xlu1 %166 }
 0x219   :  { %v168_v49 = vrot.slane %v167_v48, 4 }
 0x21a   :  { %v133_v35 = vadd.f32 %v130_v34, %v116_v16 }
 0x21b   :  { %v239_v36 = vpop.eup %238  ;;  %v169_v50 = vadd.f32 %v168_v49, %v167_v48 }
 0x21c   :  { %v132_v38 = vmul.f32 0.6931472, %v239_v36  ;;  %v143_v39 = vsub.f32 %v133_v35, %v140_v37 }
 0x21d   :  { %v170_v51 = vrot.slane %v169_v50, 2 }
 0x21e   :  { %v134_v40 = vadd.f32 %v132_v38, %v118_v19  ;;  %v147_v43 = vmul.f32 %v145_v27, %v143_v39 }
 0x21f   :  { %v171_v55 = vadd.f32 %v170_v51, %v169_v50 }
 0x220   :  { %v144_v42 = vsub.f32 %v134_v40, %v142_v41  ;;  %v150_v45 = vsel %vm149_vm2, %v147_v43, 0.0 }
 0x221   :  { %v172_v58 = vrot.slane %v171_v55, 1 }
 0x222   :  { %v148_v44 = vmul.f32 %v146_v26, %v144_v42 }
 0x223   :  { %v173_v61 = vadd.f32 %v172_v58, %v171_v55 }
 0x224   :  { %v151_v46 = vsel %vm149_vm2, %v148_v44, 0.0 }
 0x225   :  { %v152_v47 = vadd.f32 %v151_v46, %v150_v45 }
 0x227   :  { %153 = vadd.xlane.f32.xlu0 %v152_v47 }
 0x2b4   :  { %v154_v52 = vpop.xlane.xlu0 %153 }
 0x2b5   :  { %v155_v53 = vrot.slane %v154_v52, 4 }
 0x2b7   :  { %v156_v54 = vadd.f32 %v155_v53, %v154_v52 }
 0x2b9   :  { %v157_v56 = vrot.slane %v156_v54, 2 }
 0x2bb   :  { %v158_v57 = vadd.f32 %v157_v56, %v156_v54 }
 0x2bd   :  { %v159_v59 = vrot.slane %v158_v57, 1 }
 0x2bf   :  { %v160_v60 = vadd.f32 %v159_v59, %v158_v57 }
 0x2c1   :  { %226 = vpush %v160_v60 }
 0x2c2   :  { %228 = vpush %v173_v61 }
 0x2f2   :  { %s227_s2 = spop %226 }
 0x2f3   :  { %s229_s3 = spop %228  ;;  %v162_v0 = vstv %s227_s2 }
 0x2f4   :  { %s175_s15 = smax.f32 %s266_s14, %s229_s3 }
 0x2f5   :  { %v176_v62 = vstv %s175_s15 }
 0x2f6   :  { %240 = vrcp.f32 %v176_v62 }
 0x300   :  { %v241_v63 = vpop.eup %240 }
 0x301   :  { %v178_v1 = vmul.f32 %v241_v63, %v162_v0 }
 0x303   :  { %180 = vst.msk [vmem:[#allocation2] sm:$0x1] %vm179_vm3, %v178_v1 }
 0x304   :  { %253 = shalt.err (!%p250_p4)
}
 0x305   :  { %s254_s22 = scalar_lea.hbm %s355_s5, 16 }
 0x306   :  { %p255_p5 = scmp.ne.s32.totalorder %s355_s5, %s254_s22  ;;  %p258_p6 = scmp.lt.u32.totalorder %s254_s22, %s355_s5 }
 0x308   :  { %p260_p7 = pnand %p258_p6, %p255_p5 }
 0x30a   :  { %263 = shalt.err (!%p260_p7)
}
 0x30b   :  { %192 = dma.vmem_to_hbm [thread:$0]  %s190_s17, 16, %s355_s5, [#allocation3]  }
 0x30c   :  { %264 = dma.done.wait [#allocation3], 16  }
 0x30d   :  { %265 = vsyncadd [#allocation3], 4294967280 }
 0x30e   :  { %198 = vsyncpa [#allocation3], 1 }

// kernel: whisper_forward.8
= control target key start
LH: loop header
LB: loop body
LE: loop exit
PB: predicated region body
PF: predicated region fallthrough
CT: control target
= control target key end

     0   :  { %s4264_s0 = inlined_call_operand.vmem [shape: f32[2,8,32], index: 0, kind: input, shape index: {}]   ;;  %s4265_s1 = inlined_call_operand.vmem [shape: f32[2,8,32], index: 1, kind: input, shape index: {}]   ;;  %s4266_s2 = inlined_call_operand.vmem [shape: f32[1,32], index: 2, kind: input, shape index: {}]   ;;  %s4267_s3 = inlined_call_operand.vmem [shape: f32[1,32], index: 3, kind: input, shape index: {}]   ;;  %s4268_s4 = inlined_call_operand.vmem [shape: f32[32,32], index: 4, kind: input, shape index: {}]   ;;  %s4269_s5 = inlined_call_operand.vmem [shape: f32[1,32], index: 5, kind: input, shape index: {}]   ;;  %s4270_s6 = inlined_call_operand.vmem [shape: f32[32,32], index: 6, kind: input, shape index: {}]   ;;  %s4271_s7 = inlined_call_operand.vmem [shape: f32[32,32], index: 7, kind: input, shape index: {}]   ;;  %s4272_s8 = inlined_call_operand.vmem [shape: f32[1,32], index: 8, kind: input, shape index: {}]   ;;  %s4273_s9 = inlined_call_operand.vmem [shape: f32[32,32], index: 9, kind: input, shape index: {}]   ;;  %s4274_s10 = inlined_call_operand.vmem [shape: f32[1,32], index: 10, kind: input, shape index: {}]   ;;  %s4275_s11 = inlined_call_operand.vmem [shape: f32[1,32], index: 11, kind: input, shape index: {}]   ;;  %s4276_s12 = inlined_call_operand.vmem [shape: f32[1,32], index: 12, kind: input, shape index: {}]   ;;  %s4277_s13 = inlined_call_operand.vmem [shape: f32[32,32], index: 13, kind: input, shape index: {}]   ;;  %s4278_s14 = inlined_call_operand.vmem [shape: f32[1,32], index: 14, kind: input, shape index: {}]   ;;  %s4279_s15 = inlined_call_operand.vmem [shape: f32[32,32], index: 15, kind: input, shape index: {}]   ;;  %s4280_s16 = inlined_call_operand.vmem [shape: f32[32,32], index: 16, kind: input, shape index: {}]   ;;  %s4281_s17 = inlined_call_operand.vmem [shape: f32[1,32], index: 17, kind: input, shape index: {}]   ;;  %s4282_s18 = inlined_call_operand.vmem [shape: f32[32,32], index: 18, kind: input, shape index: {}]   ;;  %s4283_s19 = inlined_call_operand.vmem [shape: f32[1,32], index: 19, kind: input, shape index: {}]   ;;  %s4284_s20 = inlined_call_operand.vmem [shape: f32[1,32], index: 20, kind: input, shape index: {}]   ;;  %s4285_s21 = inlined_call_operand.vmem [shape: f32[1,32], index: 21, kind: input, shape index: {}]   ;;  %s4286_s22 = inlined_call_operand.vmem [shape: f32[32,64], index: 22, kind: input, shape index: {}]   ;;  %s4287_s23 = inlined_call_operand.vmem [shape: f32[1,64], index: 23, kind: input, shape index: {}]   ;;  %s4288_s24 = inlined_call_operand.vmem [shape: f32[64,32], index: 24, kind: input, shape index: {}]   ;;  %s4289_s25 = inlined_call_operand.vmem [shape: f32[1,32], index: 25, kind: input, shape index: {}]   ;;  %s4290_s26 = inlined_call_operand.vmem [shape: f32[1,32], index: 26, kind: input, shape index: {}]   ;;  %s4291_s27 = inlined_call_operand.vmem [shape: f32[1,32], index: 27, kind: input, shape index: {}]   ;;  %s4292_s28 = inlined_call_operand.vmem [shape: f32[2,8,32], index: 28, kind: output, shape index: {}]  }
   0x1   :  { %4306 = sst [smem:[#allocation2_spill]] %s4264_s0 }
   0x2   :  { %4307 = sst [smem:[#allocation3_spill]] %s4265_s1 }
   0x3   :  { %4308 = sst [smem:[#allocation4_spill]] %s4266_s2 }
   0x4   :  { %4309 = sst [smem:[#allocation5_spill]] %s4267_s3 }
   0x5   :  { %4310 = sst [smem:[#allocation6_spill]] %s4268_s4 }
   0x6   :  { %4311 = sst [smem:[#allocation7_spill]] %s4269_s5 }
   0x7   :  { %4312 = sst [smem:[#allocation8_spill]] %s4270_s6 }
   0x8   :  { %4313 = sst [smem:[#allocation9_spill]] %s4271_s7 }
   0x9   :  { %4314 = sst [smem:[#allocation10_spill]] %s4272_s8  ;;  %s3860_s8 = smov 0  }
   0xa   :  { %4315 = sst [smem:[#allocation11_spill]] %s4273_s9 }
   0xb   :  { %4316 = sst [smem:[#allocation12_spill]] %s4274_s10 }
   0xc   :  { %4317 = sst [smem:[#allocation13_spill]] %s4275_s11 }
   0xd   :  { %4318 = sst [smem:[#allocation14_spill]] %s4276_s12 }
   0xe LB: > { %s3227_s5 = sadd.s32 4294967295, %s3703_s8   ;;  %p3231_p0 = scmp.ge.s32.totalorder %s3703_s8, 1  ;;  %s3703_s8 = sphi %s3860_s8, %s38_s8  }
   0xf   : > { %p770_p1 = scmp.lt.s32.totalorder %s3703_s8, 3 }
  0x11   : > { %p771_p2 = pnand %p3231_p0, %p770_p1 }
  0x12   : > { %p846_p3 = scmp.lt.s32.totalorder (!%p771_p2), %s3227_s5, 1  ;;  %vm868_vm0 = vcmask (!%p771_p2), 261120   ;;  %s4319_s6 = sld [smem:[#allocation2_spill]] (!%p771_p2)  ;;  %v3705_v10 = vmov (!%p771_p2), 0.0|0.0   ;;  %vm3706_vm1 = vmmov (!%p771_p2), 0   ;;  %v3707_v18 = vmov (!%p771_p2), 0.0  }
  0x13   : > { %774 = sbr.rel (%p771_p2) target bundleno = 4648 (0x1228), region = 132  ;;  %s4320_s29 = sld [smem:[#allocation6_spill]] (!%p771_p2)  ;;  %3571 = vmatprep.subr.bf16.mxu1 (!%p771_p2), %v3705_v10  ;;  %3583 = vmatprep.subr.bf16.mxu0 (!%p771_p2), %v3705_v10  ;;  %vm1142_vm2 = vcmask (!%p771_p2), 64512   ;;  %v860_v53 = vlaneseq (!%p771_p2)  ;;  %v3711_v56 = vmov (!%p771_p2), -1e+09   ;;  %vm1812_vm4 = vcmask (!%p771_p2), 130048  }
  0x14   : > { %s4321_s4 = sld [smem:[#allocation9_spill]] (!%p771_p2)  ;;  %3381 = vmatprep.mubr.msk.f32.mxu1 (!%p771_p2), %vm3706_vm1, %v3707_v18  ;;  %3403 = vmatprep.mubr.msk.f32.mxu0 (!%p771_p2), %vm3706_vm1, %v3707_v18  ;;  %s4322_s30 = sld [smem:[#allocation4_spill]] (!%p771_p2)  ;;  %vm1814_vm5 = vcmask (!%p771_p2), 195584   ;;  %vm3057_vm6 = vcmask (!%p771_p2), 523264  }
  0x15   : > { %s4324_s12 = sld [smem:[#allocation5_spill]] (!%p771_p2)  ;;  %s3708_s3 = smov (!%p771_p2), 120   ;;  %v861_v54 = vshrl.u32 (!%p771_p2), %v860_v53, 7  ;;  %v863_v55 = vand.u32 (!%p771_p2), 127, %v860_v53 }
  0x16   : > { %s4326_s11 = sld [smem:[#allocation10_spill]] (!%p771_p2)  ;;  %s4304_s2 = smov (!%p771_p2), 112  }
  0x17   : > { %s4302_s7 = smov (!%p771_p2), 104   ;;  %vm864_vm3 = vcmp.ge.s32.totalorder (!%p771_p2), %v861_v54, %v863_v55  ;;  %s4300_s1 = smov (!%p771_p2), 16  }
  0x18   : > { %v865_v57 = vsel (!%p771_p2), %vm864_vm3, 0.0, %v3711_v56  ;;  %s4335_s0 = smov (!%p771_p2), 16  }
  0x19   : > { %v897_v7 = vld [vmem:[%s4320_s29] sm:$0xff] (!%p771_p2)  ;;  %v898_v8 = vld [vmem:[%s4320_s29 + $0x8] sm:$0xff] (!%p771_p2)  ;;  %v899_v13 = vld [vmem:[%s4320_s29 + $0x10] sm:$0xff] (!%p771_p2) }
  0x1a   : > { %s4338_s5 = smov (!%p846_p3, %s3227_s5), 1  ;;  %v906_v9 = vld [vmem:[%s4321_s4] sm:$0xff]  ;;  %v3572_v11 = vpack.c.bf16 %v898_v8, %v897_v7  ;;  %v907_v12 = vld [vmem:[%s4321_s4 + $0x8] sm:$0xff]  ;;  %v900_v14 = vld [vmem:[%s4320_s29 + $0x18] sm:$0xff]  ;;  %s4299_s29 = smov 24  }
  0x1b   : > { %s3868_s9 = sshll.u32 %s4338_s5, 3  ;;  %v3584_v15 = vpack.c.bf16 %v907_v12, %v906_v9  ;;  %v908_v16 = vld [vmem:[%s4321_s4 + $0x10] sm:$0xff]  ;;  %v909_v17 = vld [vmem:[%s4321_s4 + $0x18] sm:$0xff]  ;;  %v3575_v19 = vpack.c.bf16 %v900_v14, %v899_v13  ;;  %v3235_v25 = vld [vmem:[%s4322_s30] ss:$0 sm:$0xff]  ;;  %s4325_s30 = sld [smem:[#allocation7_spill]] }
  0x1c   : > { %s849_s10 = scalar_lea.vmem %s4319_s6, %s3868_s9  ;;  %3573 = vmatpush3.bf16.msra.mxu1 %v3572_v11  ;;  %v3587_v20 = vpack.c.bf16 %v909_v17, %v908_v16  ;;  %v3236_v29 = vld [vmem:[%s4324_s12] ss:$0 sm:$0xff]  ;;  %s4327_s5 = sld [smem:[#allocation11_spill]] }
  0x1d   : > { %v3874_v0 = vld [vmem:[%s849_s10] sm:$0xff]  ;;  %3585 = vmatpush3.bf16.msra.mxu0 %v3584_v15  ;;  %3574 = vmatprep.subr.bf16.mxu1 %v3705_v10  ;;  %s4323_s10 = sld [smem:[#allocation8_spill]]  ;;  %s4301_s12 = smov 8  }
  0x1e   : > { %v869_v1 = vsel %vm868_vm0, %v3874_v0, 0.0  ;;  %3586 = vmatprep.subr.bf16.mxu0 %v3705_v10  ;;  %v3240_v43 = vld [vmem:[%s4326_s11] ss:$0 sm:$0xff]  ;;  %s4328_s6 = sld [smem:[#allocation12_spill]]  ;;  %s4330_s4 = sld [smem:[#allocation13_spill]] }
  0x1f   : > { %870 = vadd.xlane.f32.xlu0 %v869_v1  ;;  %s4336_s11 = smov 24  }
  0x20   : > { %3576 = vmatpush3.bf16.msra.mxu1 %v3575_v19 }
  0x21   : > { %3588 = vmatpush3.bf16.msra.mxu0 %v3587_v20  ;;  %3577 = vmatprep.subr.bf16.mxu1 %v3705_v10  ;;  %v3237_v36 = vld [vmem:[%s4325_s30] ss:$0 sm:$0xff] }
  0x22   : > { %3416 = vmatprep.subr.mxu0 %v3707_v18  ;;  %v914_v54 = vld [vmem:[%s4327_s5 + $0x18] sm:$0xff] }
  0x23   : > { %v902_v27 = vld [vmem:[%s4323_s10] sm:$0xff]  ;;  %v903_v28 = vld [vmem:[%s4323_s10 + $0x8] sm:$0xff]  ;;  %v904_v33 = vld [vmem:[%s4323_s10 + $0x10] sm:$0xff] }
  0x24   : > { %v3578_v31 = vpack.c.bf16 %v903_v28, %v902_v27  ;;  %v905_v34 = vld [vmem:[%s4323_s10 + $0x18] sm:$0xff] }
  0x25   : > { %v3581_v35 = vpack.c.bf16 %v905_v34, %v904_v33 }
  0xac   : > { %v871_v2 = vpop.xlane.xlu0 %870 }
  0xad   : > { %v873_v3 = vmul.f32 0.03125, %v871_v2 }
  0xaf   : > { %v874_v4 = vsub.f32 %v3874_v0, %v873_v3 }
  0xb1   : > { %v875_v5 = vmul.f32 %v874_v4, %v874_v4 }
  0xb3   : > { %v876_v6 = vsel %vm868_vm0, %v875_v5, 0.0 }
  0xb4   : > { %877 = vadd.xlane.f32.xlu0 %v876_v6 }
 0x141   : > { %v878_v21 = vpop.xlane.xlu0 %877 }
 0x142   : > { %v879_v22 = vmul.f32 0.03125, %v878_v21 }
 0x144   : > { %v880_v23 = vadd.f32 1e-05, %v879_v22 }
 0x146   : > { %3655 = vrsqrt.f32 %v880_v23 }
 0x150   : > { %v3656_v24 = vpop.eup %3655 }
 0x151   : > { %v882_v26 = vmul.f32 %v3656_v24, %v874_v4 }
 0x153   : > { %v889_v30 = vmul.f32 %v3235_v25, %v882_v26 }
 0x155   : > { %v896_v32 = vadd.f32 %v3236_v29, %v889_v30 }
 0x157   : > { %3382 = vmatmul.mubr.msk.f32.vlgmr.msra.gmra.mrb[0].mxu1 %vm868_vm0, %v896_v32  ;;  %3404 = vmatmul.mubr.msk.f32.vlgmr.msra.gmra.mrb[0].mxu0 %vm868_vm0, %v896_v32 }
 0x158   : > { %3579 = vmatpush3.bf16.msra.mxu1 %v3578_v31  ;;  %3392 = vmatprep.mubr.msk.f32.mxu1 %vm3706_vm1, %v3707_v18 }
 0x159   : > { %3580 = vmatprep.subr.bf16.mxu1 %v3705_v10  ;;  %3418 = vmatprep.mubr.msk.f32.mxu0 %vm3706_vm1, %v3707_v18 }
 0x15c   : > { %3582 = vmatpush3.bf16.msra.mxu1 %v3581_v35 }
 0x15d   : > { %3406 = vmatprep.subr.mxu1 %v3707_v18 }
 0x15f   : > { %3393 = vmatmul.mubr.msk.f32.vlgmr.msra.gmra.mrb[2].mxu1 %vm868_vm0, %v896_v32 }
 0x160   : > { %3408 = vmatprep.mubr.msk.f32.mxu1 %vm3706_vm1, %v3707_v18 }
 0x22a   : > { %v991_v37 = vpop.f32.mrb[0].mxu1  ;;  %v1138_v38 = vpop.f32.mrb[0].mxu0 }
 0x22b   : > { %v992_v39 = vadd.f32 %v3237_v36, %v991_v37  ;;  %v3383_v40 = vpop.f32.mrb[1].mxu1  ;;  %v3405_v41 = vpop.f32.mrb[1].mxu0  ;;  %v3954_v46 = vadd.f32 %v3240_v43, %v1138_v38 }
 0x22d   : > { %v995_v42 = vmul.f32 0.35355338, %v992_v39 }
 0x22f   : > { %1303 = vrot.lane.b32.xlu1 %v995_v42, %s3708_s3 }
 0x232   : > { %v1062_v44 = vpop.f32.mrb[2].mxu1 }
 0x233   : > { %1471 = vrot.lane.b32.xlu0 %v1062_v44, %s4304_s2  ;;  %v3394_v45 = vpop.f32.mrb[3].mxu1  ;;  %3407 = vmatpush3.xpose.msk.msra.mxu1 %vm1142_vm2, %v1062_v44 }
 0x234   : > { %1305 = vrot.lane.b32.xlu1 %v1062_v44, %s3708_s3  ;;  %3411 = vmatprep.subr.mxu1 %v3707_v18 }
 0x236   : > { %3409 = vmatmul.mubr.msk.f32.vlgmr.msra.gmra.mrb[4].mxu1 %vm1142_vm2, %v995_v42 }
 0x237   : > { %3412 = vmatpush3.msra.mxu1 %v3954_v46  ;;  %3413 = vmatprep.mubr.msk.f32.mxu1 %vm3706_vm1, %v3707_v18 }
 0x238   : > { %1469 = vrot.lane.b32.xlu1 %v995_v42, %s4304_s2  ;;  %3421 = vmatprep.subr.mxu1 %v3707_v18 }
 0x23c   : > { %1636 = vrot.lane.b32.xlu1 %v1062_v44, %s4302_s7 }
 0x240   : > { %1634 = vrot.lane.b32.xlu1 %v995_v42, %s4302_s7 }
 0x2a1   : > { %v1304_v47 = vpop.permute.xlu1 %1303 }
 0x2a5   : > { %v1472_v49 = vpop.permute.xlu0 %1471 }
 0x2a6   : > { %v1306_v48 = vpop.permute.xlu1 %1305 }
 0x2a7   : > { %3417 = vmatpush3.xpose.msk.msra.mxu0 %vm1142_vm2, %v1306_v48 }
 0x2a8   : > { %3426 = vmatprep.subr.mxu0 %v3707_v18 }
 0x2aa   : > { %3419 = vmatmul.mubr.msk.f32.vlgmr.msra.gmra.mrb[2].mxu0 %vm1142_vm2, %v1304_v47  ;;  %v1470_v50 = vpop.permute.xlu1 %1469 }
 0x2ab   : > { %3427 = vmatpush3.xpose.msk.msra.mxu0 %vm1142_vm2, %v1472_v49  ;;  %3428 = vmatprep.mubr.msk.f32.mxu0 %vm3706_vm1, %v3707_v18 }
 0x2ac   : > { %3436 = vmatprep.subr.mxu0 %v3707_v18 }
 0x2ae   : > { %3429 = vmatmul.mubr.msk.f32.vlgmr.msra.gmra.mrb[4].mxu0 %vm1142_vm2, %v1470_v50  ;;  %v1637_v51 = vpop.permute.xlu1 %1636  ;;  %v911_v50 = vld [vmem:[%s4327_s5] sm:$0xff] }
 0x2af   : > { %3437 = vmatpush3.xpose.msk.msra.mxu0 %vm1142_vm2, %v1637_v51  ;;  %3438 = vmatprep.mubr.msk.f32.mxu0 %vm3706_vm1, %v3707_v18  ;;  %v912_v51 = vld [vmem:[%s4327_s5 + $0x8] sm:$0xff] }
 0x2b0   : > { %3589 = vmatprep.subr.bf16.mxu0 %v3705_v10  ;;  %v3590_v53 = vpack.c.bf16 %v912_v51, %v911_v50  ;;  %v1937_v51 = vld [vmem:[%s4280_s16 + $0x18] sm:$0xff] }
 0x2b2   : > { %v1635_v52 = vpop.permute.xlu1 %1634 }
 0x2b3   : > { %3439 = vmatmul.mubr.msk.f32.vlgmr.msra.gmra.mrb[6].mxu0 %vm1142_vm2, %v1635_v52  ;;  %v913_v52 = vld [vmem:[%s4327_s5 + $0x10] sm:$0xff] }
 0x2b4   : > { %3454 = vmatprep.mubr.msk.f32.mxu0 %vm3706_vm1, %v3707_v18  ;;  %3591 = vmatpush3.bf16.msra.mxu0 %v3590_v53  ;;  %v3593_v55 = vpack.c.bf16 %v914_v54, %v913_v52 }
 0x2b5   : > { %3592 = vmatprep.subr.bf16.mxu0 %v3705_v10 }
 0x2b8   : > { %3594 = vmatpush3.bf16.msra.mxu0 %v3593_v55 }
 0x2b9   : > { %3601 = vmatprep.subr.bf16.mxu0 %v3705_v10 }
 0x309   : > { %v1215_v58 = vpop.f32.mrb[4].mxu1 }
 0x30a   : > { %v1216_v59 = vadd.f32 %v1215_v58, %v865_v57  ;;  %v3410_v60 = vpop.f32.mrb[5].mxu1 }
 0x30c   : > { %v1219_v61 = vsel %vm1142_vm2, %v1216_v59, -inf }
 0x30d   : > { %1220 = vmax.xlane.f32.xlu1 %v1219_v61 }
 0x37d   : > { %v1377_v62 = vpop.f32.mrb[2].mxu0 }
 0x37e   : > { %v1378_v63 = vadd.f32 %v1377_v62, %v865_v57  ;;  %v3420_v1 = vpop.f32.mrb[3].mxu0 }
 0x380   : > { %v1381_v2 = vsel %vm1142_vm2, %v1378_v63, -inf }
 0x381   : > { %1382 = vmax.xlane.f32.xlu0 %v1381_v2  ;;  %v1543_v3 = vpop.f32.mrb[4].mxu0 }
 0x382   : > { %v1544_v4 = vadd.f32 %v1543_v3, %v865_v57  ;;  %v3430_v5 = vpop.f32.mrb[5].mxu0 }
 0x383   : > { %v3254_v5 = vld [vmem:[%s4328_s6] ss:$0 sm:$0xff] }
 0x384   : > { %v1547_v6 = vsel %vm1142_vm2, %v1544_v4, -inf }
 0x385   : > { %1548 = vmax.xlane.f32.xlu1 %v1547_v6 }
 0x386   : > { %v1708_v7 = vpop.f32.mrb[6].mxu0 }
 0x387   : > { %v1709_v8 = vadd.f32 %v1708_v7, %v865_v57  ;;  %v3440_v9 = vpop.f32.mrb[7].mxu0 }
 0x389   : > { %v1712_v11 = vsel %vm1142_vm2, %v1709_v8, -inf }
 0x38a   : > { %1713 = vmax.xlane.f32.xlu1 %v1712_v11 }
 0x39a   : > { %v1221_v12 = vpop.xlane.xlu1 %1220 }
 0x39b   : > { %v1222_v13 = vsub.f32 %v1216_v59, %v1221_v12 }
 0x39d   : > { %v1223_v14 = vmul.f32 1.442695, %v1222_v13 }
 0x39f   : > { %3657 = vpow2.f32 %v1223_v14 }
 0x3a9   : > { %v3658_v15 = vpop.eup %3657 }
 0x3aa   : > { %v1225_v16 = vsel %vm1142_vm2, %v3658_v15, 0.0 }
 0x3ab   : > { %1226 = vadd.xlane.f32.xlu0 %v1225_v16 }
 0x40e   : > { %v1383_v17 = vpop.xlane.xlu0 %1382 }
 0x40f   : > { %v1384_v19 = vsub.f32 %v1378_v63, %v1383_v17  ;;  %v1925_v17 = vld [vmem:[%s4277_s13] sm:$0xff] }
 0x411   : > { %v1385_v20 = vmul.f32 1.442695, %v1384_v19  ;;  %v1930_v19 = vld [vmem:[%s4279_s15] sm:$0xff] }
 0x412   : > { %v1549_v21 = vpop.xlane.xlu1 %1548 }
 0x413   : > { %3659 = vpow2.f32 %v1385_v20  ;;  %v1550_v22 = vsub.f32 %v1544_v4, %v1549_v21  ;;  %v1931_v21 = vld [vmem:[%s4279_s15 + $0x8] sm:$0xff] }
 0x415   : > { %v1551_v23 = vmul.f32 1.442695, %v1550_v22  ;;  %v3602_v22 = vpack.c.bf16 %v1931_v21, %v1930_v19 }
 0x417   : > { %3661 = vpow2.f32 %v1551_v23  ;;  %v1714_v29 = vpop.xlane.xlu1 %1713  ;;  %v1927_v23 = vld [vmem:[%s4277_s13 + $0x10] sm:$0xff] }
 0x418   : > { %v1715_v30 = vsub.f32 %v1709_v8, %v1714_v29 }
 0x41a   : > { %v1716_v31 = vmul.f32 1.442695, %v1715_v30 }
 0x41d   : > { %v3660_v24 = vpop.eup %3659 }
 0x41e   : > { %v1387_v25 = vsel %vm1142_vm2, %v3660_v24, 0.0 }
 0x41f   : > { %1388 = vadd.xlane.f32.xlu1 %v1387_v25  ;;  %v1932_v25 = vld [vmem:[%s4279_s15 + $0x10] sm:$0xff] }
 0x421   : > { %v3662_v26 = vpop.eup %3661 }
 0x422   : > { %v1553_v27 = vsel %vm1142_vm2, %v3662_v26, 0.0 }
 0x423   : > { %1554 = vadd.xlane.f32.xlu0 %v1553_v27  ;;  %v1933_v27 = vld [vmem:[%s4279_s15 + $0x18] sm:$0xff] }
 0x430   : > { %1558 = vrot.lane.b32.xlu1 %v3954_v46, %s4304_s2  ;;  %s857_s2 = scalar_lea.vmem %s4292_s28, %s3868_s9 }
 0x438   : > { %v1227_v28 = vpop.xlane.xlu0 %1226 }
 0x439   : > { %3663 = vrcp.f32 %v1227_v28  ;;  %1393 = vrot.lane.b32.xlu0 %v3954_v46, %s3708_s3  ;;  %v3605_v28 = vpack.c.bf16 %v1933_v27, %v1932_v25 }
 0x43a   : > { %3665 = vpow2.f32 %v1716_v31 }
 0x443   : > { %v3664_v32 = vpop.eup %3663 }
 0x444   : > { %v1229_v33 = vmul.f32 %v3664_v32, %v3658_v15  ;;  %v3666_v34 = vpop.eup %3665 }
 0x445   : > { %v1718_v35 = vsel %vm1142_vm2, %v3666_v34, 0.0 }
 0x446   : > { %3414 = vmatmul.mubr.msk.f32.vlgmr.msra.gmra.mrb[6].mxu1 %vm1142_vm2, %v1229_v33 }
 0x447   : > { %3423 = vmatprep.mubr.msk.f32.mxu1 %vm3706_vm1, %v3707_v18 }
 0x454   : > { %1719 = vadd.xlane.f32.xlu1 %v1718_v35 }
 0x465   : > { %1723 = vrot.lane.b32.xlu1 %v3954_v46, %s4302_s7  ;;  %s4334_s7 = smov 8  }
 0x4ac   : > { %v1389_v36 = vpop.xlane.xlu1 %1388 }
 0x4ad   : > { %3667 = vrcp.f32 %v1389_v36 }
 0x4b0   : > { %v1555_v37 = vpop.xlane.xlu0 %1554  ;;  %v1559_v41 = vpop.permute.xlu1 %1558 }
 0x4b1   : > { %3669 = vrcp.f32 %v1555_v37 }
 0x4b4   : > { %v1394_v38 = vpop.permute.xlu0 %1393 }
 0x4b5   : > { %3422 = vmatpush3.msra.mxu1 %v1394_v38 }
 0x4b6   : > { %3431 = vmatprep.subr.mxu1 %v3707_v18 }
 0x4b7   : > { %v3668_v39 = vpop.eup %3667 }
 0x4b8   : > { %v1391_v40 = vmul.f32 %v3668_v39, %v3660_v24  ;;  %v1928_v24 = vld [vmem:[%s4277_s13 + $0x18] sm:$0xff] }
 0x4ba   : > { %3424 = vmatmul.mubr.msk.f32.vlgmr.msra.gmra.mrb[8].mxu1 %vm1142_vm2, %v1391_v40 }
 0x4bb   : > { %v3670_v42 = vpop.eup %3669  ;;  %3432 = vmatpush3.msra.mxu1 %v1559_v41  ;;  %3433 = vmatprep.mubr.msk.f32.mxu1 %vm3706_vm1, %v3707_v18  ;;  %v3258_v41 = vld [vmem:[%s4278_s14] ss:$0 sm:$0xff] }
 0x4bc   : > { %v1557_v43 = vmul.f32 %v3670_v42, %v3662_v26  ;;  %3441 = vmatprep.subr.mxu1 %v3707_v18  ;;  %v3599_v26 = vpack.c.bf16 %v1928_v24, %v1927_v23 }
 0x4be   : > { %3434 = vmatmul.mubr.msk.f32.vlgmr.msra.gmra.mrb[10].mxu1 %vm1142_vm2, %v1557_v43 }
 0x4bf   : > { %3443 = vmatprep.mubr.msk.f32.mxu1 %vm3706_vm1, %v3707_v18 }
 0x4e1   : > { %v1720_v44 = vpop.xlane.xlu1 %1719 }
 0x4e2   : > { %3671 = vrcp.f32 %v1720_v44 }
 0x4e5   : > { %v1724_v45 = vpop.permute.xlu1 %1723 }
 0x4e6   : > { %3442 = vmatpush3.msra.mxu1 %v1724_v45 }
 0x4e7   : > { %3595 = vmatprep.subr.bf16.mxu1 %v3705_v10 }
 0x4ec   : > { %v3672_v46 = vpop.eup %3671 }
 0x4ed   : > { %v1722_v47 = vmul.f32 %v3672_v46, %v3666_v34  ;;  %v3256_v34 = vld [vmem:[%s4330_s4] ss:$0 sm:$0xff] }
 0x4ef   : > { %3444 = vmatmul.mubr.msk.f32.vlgmr.msra.gmra.mrb[12].mxu1 %vm1142_vm2, %v1722_v47  ;;  %v1934_v47 = vld [vmem:[%s4280_s16] sm:$0xff] }
 0x4f0   : > { %3465 = vmatprep.mubr.msk.f32.mxu1 %vm3706_vm1, %v3707_v18 }
 0x519   : > { %v1299_v48 = vpop.f32.mrb[6].mxu1 }
 0x51a   : > { %v3415_v49 = vpop.f32.mrb[7].mxu1 }
 0x51b   : > { %v1936_v49 = vld [vmem:[%s4280_s16 + $0x10] sm:$0xff] }
 0x51c   : > { %v3611_v52 = vpack.c.bf16 %v1937_v51, %v1936_v49  ;;  %v1940_v51 = vld [vmem:[%s4282_s18 + $0x8] sm:$0xff] }
 0x58d   : > { %v1465_v56 = vpop.f32.mrb[8].mxu1 }
 0x58e   : > { %1800 = vrot.lane.b32.xlu0 %v1465_v56, %s4301_s12  ;;  %v3425_v57 = vpop.f32.mrb[9].mxu1 }
 0x591   : > { %v1630_v58 = vpop.f32.mrb[10].mxu1 }
 0x592   : > { %1804 = vrot.lane.b32.xlu1 %v1630_v58, %s4300_s1  ;;  %v3435_v59 = vpop.f32.mrb[11].mxu1  ;;  %s4331_s1 = sld [smem:[#allocation14_spill]] }
 0x598   : > { %v3257_v36 = vld [vmem:[%s4331_s1] ss:$0 sm:$0xff] }
 0x5c2   : > { %v1795_v60 = vpop.f32.mrb[12].mxu1 }
 0x5c3   : > { %1808 = vrot.lane.b32.xlu0 %v1795_v60, %s4299_s29  ;;  %v3445_v61 = vpop.f32.mrb[13].mxu1  ;;  %s4329_s29 = sld [smem:[#allocation3_spill]] }
 0x5c9   : > { %s853_s6 = scalar_lea.vmem %s4329_s29, %s3868_s9  ;;  %s4332_s29 = smov 112  }
 0x5ca   : > { %v859_v29 = vld [vmem:[%s853_s6] sm:$0xff]  ;;  %s4333_s6 = smov 104  }
 0x600   : > { %v1801_v62 = vpop.permute.xlu0 %1800 }
 0x601   : > { %v1811_v1 = vsel %vm1142_vm2, %v1299_v48, %v1801_v62  ;;  %v1935_v48 = vld [vmem:[%s4280_s16 + $0x8] sm:$0xff] }
 0x602   : > { %v3608_v50 = vpack.c.bf16 %v1935_v48, %v1934_v47 }
 0x604   : > { %v1805_v63 = vpop.permute.xlu1 %1804 }
 0x605   : > { %v1813_v2 = vsel %vm1812_vm4, %v1811_v1, %v1805_v63 }
 0x635   : > { %v1809_v3 = vpop.permute.xlu0 %1808 }
 0x636   : > { %v1815_v4 = vsel %vm1814_vm5, %v1813_v2, %v1809_v3 }
 0x637   : > { %3455 = vmatmul.mubr.msk.f32.vlgmr.msra.gmra.mrb[8].mxu0 %vm868_vm0, %v1815_v4 }
 0x638   : > { %3476 = vmatprep.mubr.msk.f32.mxu0 %vm3706_vm1, %v3707_v18  ;;  %3603 = vmatpush3.bf16.msra.mxu0 %v3602_v22 }
 0x639   : > { %3604 = vmatprep.subr.bf16.mxu0 %v3705_v10 }
 0x63c   : > { %3606 = vmatpush3.bf16.msra.mxu0 %v3605_v28 }
 0x63d   : > { %3490 = vmatprep.subr.mxu0 %v3707_v18 }
 0x63f   : > { %3477 = vmatmul.mubr.msk.f32.vlgmr.msra.gmra.mrb[10].mxu0 %vm868_vm0, %v859_v29 }
 0x640   : > { %3492 = vmatprep.mubr.msk.f32.mxu0 %vm3706_vm1, %v3707_v18 }
 0x70a   : > { %v1891_v6 = vpop.f32.mrb[8].mxu0 }
 0x70b   : > { %v1892_v7 = vadd.f32 %v3254_v5, %v1891_v6  ;;  %v3456_v8 = vpop.f32.mrb[9].mxu0 }
 0x70d   : > { %v4035_v9 = vadd.f32 %v1892_v7, %v3874_v0  ;;  %v1926_v0 = vld [vmem:[%s4277_s13 + $0x8] sm:$0xff] }
 0x70e   : > { %v3596_v20 = vpack.c.bf16 %v1926_v0, %v1925_v17 }
 0x70f   : > { %v1898_v11 = vsel %vm868_vm0, %v4035_v9, 0.0 }
 0x710   : > { %1899 = vadd.xlane.f32.xlu1 %v1898_v11  ;;  %3597 = vmatpush3.bf16.msra.mxu1 %v3596_v20 }
 0x711   : > { %3598 = vmatprep.subr.bf16.mxu1 %v3705_v10 }
 0x712   : > { %v2093_v39 = vpop.f32.mrb[10].mxu0 }
 0x713   : > { %v3478_v40 = vpop.f32.mrb[11].mxu0  ;;  %3491 = vmatpush3.xpose.msk.msra.mxu0 %vm1142_vm2, %v2093_v39 }
 0x714   : > { %3600 = vmatpush3.bf16.msra.mxu1 %v3599_v26  ;;  %3500 = vmatprep.subr.mxu0 %v3707_v18 }
 0x715   : > { %3607 = vmatprep.subr.bf16.mxu1 %v3705_v10 }
 0x79d   : > { %v1900_v12 = vpop.xlane.xlu1 %1899 }
 0x79e   : > { %v1901_v13 = vmul.f32 0.03125, %v1900_v12  ;;  %v3261_v12 = vld [vmem:[%s4281_s17] ss:$0 sm:$0xff] }
 0x7a0   : > { %v1902_v14 = vsub.f32 %v4035_v9, %v1901_v13 }
 0x7a2   : > { %v1903_v15 = vmul.f32 %v1902_v14, %v1902_v14 }
 0x7a4   : > { %v1904_v16 = vsel %vm868_vm0, %v1903_v15, 0.0 }
 0x7a5   : > { %1905 = vadd.xlane.f32.xlu0 %v1904_v16 }
 0x7bb   : > { %2335 = vrot.lane.b32.xlu0 %v2093_v39, %s3708_s3 }
 0x832   : > { %v1906_v30 = vpop.xlane.xlu0 %1905 }
 0x833   : > { %v1907_v31 = vmul.f32 0.03125, %v1906_v30 }
 0x835   : > { %v1908_v32 = vadd.f32 1e-05, %v1907_v31 }
 0x836   : > { %v2336_v46 = vpop.permute.xlu0 %2335 }
 0x837   : > { %3673 = vrsqrt.f32 %v1908_v32 }
 0x841   : > { %v3674_v33 = vpop.eup %3673 }
 0x842   : > { %v1910_v35 = vmul.f32 %v3674_v33, %v1902_v14 }
 0x844   : > { %v1917_v37 = vmul.f32 %v3256_v34, %v1910_v35 }
 0x846   : > { %v1924_v38 = vadd.f32 %v3257_v36, %v1917_v37 }
 0x848   : > { %3466 = vmatmul.mubr.msk.f32.vlgmr.msra.gmra.mrb[14].mxu1 %vm868_vm0, %v1924_v38 }
 0x849   : > { %3487 = vmatprep.mubr.msk.f32.mxu1 %vm3706_vm1, %v3707_v18  ;;  %3609 = vmatpush3.bf16.msra.mxu1 %v3608_v50  ;;  %v1939_v50 = vld [vmem:[%s4282_s18] sm:$0xff] }
 0x84a   : > { %3610 = vmatprep.subr.bf16.mxu1 %v3705_v10 }
 0x84d   : > { %3612 = vmatpush3.bf16.msra.mxu1 %v3611_v52  ;;  %v1941_v52 = vld [vmem:[%s4282_s18 + $0x10] sm:$0xff] }
 0x84e   : > { %3495 = vmatprep.subr.mxu1 %v3707_v18 }
 0x850   : > { %3488 = vmatmul.mubr.msk.f32.vlgmr.msra.gmra.mrb[16].mxu1 %vm868_vm0, %v859_v29 }
 0x851   : > { %3497 = vmatprep.mubr.msk.f32.mxu1 %vm3706_vm1, %v3707_v18 }
 0x91b   : > { %v2019_v42 = vpop.f32.mrb[14].mxu1 }
 0x91c   : > { %v2020_v43 = vadd.f32 %v3258_v41, %v2019_v42  ;;  %v3467_v44 = vpop.f32.mrb[15].mxu1 }
 0x91e   : > { %v2023_v45 = vmul.f32 0.35355338, %v2020_v43 }
 0x920   : > { %2499 = vrot.lane.b32.xlu0 %v2023_v45, %s4332_s29  ;;  %2333 = vrot.lane.b32.xlu1 %v2023_v45, %s3708_s3 }
 0x921   : > { %3493 = vmatmul.mubr.msk.f32.vlgmr.msra.gmra.mrb[12].mxu0 %vm1142_vm2, %v2023_v45 }
 0x922   : > { %3501 = vmatpush3.xpose.msk.msra.mxu0 %vm1142_vm2, %v2336_v46  ;;  %3502 = vmatprep.mubr.msk.f32.mxu0 %vm3706_vm1, %v3707_v18 }
 0x923   : > { %3510 = vmatprep.subr.mxu0 %v3707_v18  ;;  %v2169_v13 = vpop.f32.mrb[16].mxu1 }
 0x924   : > { %2664 = vrot.lane.b32.xlu0 %v2023_v45, %s4333_s6  ;;  %2501 = vrot.lane.b32.xlu1 %v2093_v39, %s4332_s29  ;;  %v2170_v14 = vadd.f32 %v3261_v12, %v2169_v13  ;;  %v3489_v15 = vpop.f32.mrb[17].mxu1 }
 0x926   : > { %3496 = vmatpush3.msra.mxu1 %v2170_v14 }
 0x927   : > { %3505 = vmatprep.subr.mxu1 %v3707_v18 }
 0x928   : > { %2666 = vrot.lane.b32.xlu1 %v2093_v39, %s4333_s6 }
 0x992   : > { %v2334_v53 = vpop.permute.xlu1 %2333  ;;  %v2500_v55 = vpop.permute.xlu0 %2499 }
 0x993   : > { %3503 = vmatmul.mubr.msk.f32.vlgmr.msra.gmra.mrb[14].mxu0 %vm1142_vm2, %v2334_v53  ;;  %v3614_v53 = vpack.c.bf16 %v1940_v51, %v1939_v50  ;;  %v3281_v51 = vld [vmem:[%s4289_s25] ss:$0 sm:$0xff] }
 0x994   : > { %3512 = vmatprep.mubr.msk.f32.mxu0 %vm3706_vm1, %v3707_v18 }
 0x996   : > { %v2502_v54 = vpop.permute.xlu1 %2501  ;;  %v2665_v57 = vpop.permute.xlu0 %2664 }
 0x997   : > { %3511 = vmatpush3.xpose.msk.msra.mxu0 %vm1142_vm2, %v2502_v54  ;;  %v1942_v54 = vld [vmem:[%s4282_s18 + $0x18] sm:$0xff] }
 0x998   : > { %3520 = vmatprep.subr.mxu0 %v3707_v18 }
 0x99a   : > { %v2667_v56 = vpop.permute.xlu1 %2666  ;;  %3513 = vmatmul.mubr.msk.f32.vlgmr.msra.gmra.mrb[16].mxu0 %vm1142_vm2, %v2500_v55  ;;  %v3617_v55 = vpack.c.bf16 %v1942_v54, %v1941_v52 }
 0x99b   : > { %3521 = vmatpush3.xpose.msk.msra.mxu0 %vm1142_vm2, %v2667_v56  ;;  %3522 = vmatprep.mubr.msk.f32.mxu0 %vm3706_vm1, %v3707_v18 }
 0x99c   : > { %3613 = vmatprep.subr.bf16.mxu0 %v3705_v10 }
 0x99e   : > { %3523 = vmatmul.mubr.msk.f32.vlgmr.msra.gmra.mrb[18].mxu0 %vm1142_vm2, %v2665_v57 }
 0x99f   : > { %3538 = vmatprep.mubr.msk.f32.mxu0 %vm3706_vm1, %v3707_v18  ;;  %3615 = vmatpush3.bf16.msra.mxu0 %v3614_v53 }
 0x9a0   : > { %3616 = vmatprep.subr.bf16.mxu0 %v3705_v10 }
 0x9a3   : > { %3618 = vmatpush3.bf16.msra.mxu0 %v3617_v55 }
 0x9a4   : > { %3625 = vmatprep.subr.bf16.mxu0 %v3705_v10 }
 0x9f4   : > { %v2245_v58 = vpop.f32.mrb[12].mxu0 }
 0x9f5   : > { %v3494_v59 = vpop.f32.mrb[13].mxu0  ;;  %v2249_v60 = vsel %vm1142_vm2, %v2245_v58, -inf }
 0x9f6   : > { %2250 = vmax.xlane.f32.xlu1 %v2249_v60 }
 0xa66   : > { %v2407_v61 = vpop.f32.mrb[14].mxu0 }
 0xa67   : > { %v3504_v62 = vpop.f32.mrb[15].mxu0  ;;  %v2411_v63 = vsel %vm1142_vm2, %v2407_v61, -inf }
 0xa68   : > { %2412 = vmax.xlane.f32.xlu0 %v2411_v63 }
 0xa6d   : > { %v2573_v1 = vpop.f32.mrb[16].mxu0 }
 0xa6e   : > { %v3514_v2 = vpop.f32.mrb[17].mxu0  ;;  %v2577_v3 = vsel %vm1142_vm2, %v2573_v1, -inf }
 0xa6f   : > { %2578 = vmax.xlane.f32.xlu0 %v2577_v3 }
 0xa71   : > { %v2738_v4 = vpop.f32.mrb[18].mxu0 }
 0xa72   : > { %v3524_v5 = vpop.f32.mrb[19].mxu0  ;;  %v2742_v6 = vsel %vm1142_vm2, %v2738_v4, -inf }
 0xa73   : > { %2743 = vmax.xlane.f32.xlu1 %v2742_v6  ;;  %v3275_v5 = vld [vmem:[%s4283_s19] ss:$0 sm:$0xff] }
 0xa83   : > { %v2251_v7 = vpop.xlane.xlu1 %2250 }
 0xa84   : > { %v2252_v8 = vsub.f32 %v2245_v58, %v2251_v7 }
 0xa86   : > { %v2253_v11 = vmul.f32 1.442695, %v2252_v8 }
 0xa88   : > { %3675 = vpow2.f32 %v2253_v11 }
 0xa92   : > { %v3676_v16 = vpop.eup %3675 }
 0xa93   : > { %v2255_v17 = vsel %vm1142_vm2, %v3676_v16, 0.0 }
 0xa94   : > { %2256 = vadd.xlane.f32.xlu0 %v2255_v17  ;;  %v2953_v17 = vld [vmem:[%s4286_s22] sm:$0xff] }
 0xaf5   : > { %v2413_v0 = vpop.xlane.xlu0 %2412 }
 0xaf6   : > { %v2414_v19 = vsub.f32 %v2407_v61, %v2413_v0 }
 0xaf8   : > { %v2415_v20 = vmul.f32 1.442695, %v2414_v19  ;;  %v2955_v19 = vld [vmem:[%s4286_s22 + $0x10] sm:$0xff] }
 0xafa   : > { %3677 = vpow2.f32 %v2415_v20  ;;  %v2956_v20 = vld [vmem:[%s4286_s22 + $0x18] sm:$0xff] }
 0xafc   : > { %v2579_v21 = vpop.xlane.xlu0 %2578 }
 0xafd   : > { %v2580_v22 = vsub.f32 %v2573_v1, %v2579_v21  ;;  %v3623_v21 = vpack.c.bf16 %v2956_v20, %v2955_v19 }
 0xaff   : > { %v2581_v23 = vmul.f32 1.442695, %v2580_v22 }
 0xb00   : > { %v2744_v29 = vpop.xlane.xlu1 %2743 }
 0xb01   : > { %3679 = vpow2.f32 %v2581_v23  ;;  %v2745_v30 = vsub.f32 %v2738_v4, %v2744_v29 }
 0xb03   : > { %v2746_v31 = vmul.f32 1.442695, %v2745_v30 }
 0xb04   : > { %v3678_v24 = vpop.eup %3677 }
 0xb05   : > { %v2417_v25 = vsel %vm1142_vm2, %v3678_v24, 0.0 }
 0xb06   : > { %2418 = vadd.xlane.f32.xlu1 %v2417_v25 }
 0xb0b   : > { %v3680_v26 = vpop.eup %3679 }
 0xb0c   : > { %v2583_v27 = vsel %vm1142_vm2, %v3680_v26, 0.0 }
 0xb0d   : > { %2584 = vadd.xlane.f32.xlu0 %v2583_v27 }
 0xb17   : > { %2588 = vrot.lane.b32.xlu1 %v2170_v14, %s4332_s29 }
 0xb21   : > { %v2257_v28 = vpop.xlane.xlu0 %2256 }
 0xb22   : > { %3681 = vrcp.f32 %v2257_v28  ;;  %v3278_v28 = vld [vmem:[%s4285_s21] ss:$0 sm:$0xff] }
 0xb23   : > { %2423 = vrot.lane.b32.xlu0 %v2170_v14, %s3708_s3  ;;  %3683 = vpow2.f32 %v2746_v31  ;;  %v3042_v31 = vld [vmem:[%s4288_s24] sm:$0xff] }
 0xb2c   : > { %v3682_v32 = vpop.eup %3681 }
 0xb2d   : > { %v2259_v33 = vmul.f32 %v3682_v32, %v3676_v16  ;;  %v3684_v34 = vpop.eup %3683  ;;  %v3043_v32 = vld [vmem:[%s4288_s24 + $0x8] sm:$0xff] }
 0xb2e   : > { %v2748_v35 = vsel %vm1142_vm2, %v3684_v34, 0.0 }
 0xb2f   : > { %3498 = vmatmul.mubr.msk.f32.vlgmr.msra.gmra.mrb[18].mxu1 %vm1142_vm2, %v2259_v33  ;;  %v3626_v33 = vpack.c.bf16 %v3043_v32, %v3042_v31 }
 0xb30   : > { %3507 = vmatprep.mubr.msk.f32.mxu1 %vm3706_vm1, %v3707_v18 }
 0xb3b   : > { %2749 = vadd.xlane.f32.xlu1 %v2748_v35  ;;  %v3045_v35 = vld [vmem:[%s4288_s24 + $0x18] sm:$0xff] }
 0xb4c   : > { %2753 = vrot.lane.b32.xlu1 %v2170_v14, %s4333_s6 }
 0xb93   : > { %v2419_v36 = vpop.xlane.xlu1 %2418 }
 0xb94   : > { %3685 = vrcp.f32 %v2419_v36 }
 0xb97   : > { %v2589_v41 = vpop.permute.xlu1 %2588 }
 0xb9a   : > { %v2585_v37 = vpop.xlane.xlu0 %2584 }
 0xb9b   : > { %3687 = vrcp.f32 %v2585_v37  ;;  %v3046_v37 = vld [vmem:[%s4288_s24 + $0x20] sm:$0xff] }
 0xb9e   : > { %v3686_v38 = vpop.eup %3685  ;;  %v2424_v39 = vpop.permute.xlu0 %2423 }
 0xb9f   : > { %v2421_v40 = vmul.f32 %v3686_v38, %v3678_v24  ;;  %3506 = vmatpush3.msra.mxu1 %v2424_v39  ;;  %v3047_v38 = vld [vmem:[%s4288_s24 + $0x28] sm:$0xff] }
 0xba0   : > { %3515 = vmatprep.subr.mxu1 %v3707_v18  ;;  %v3632_v39 = vpack.c.bf16 %v3047_v38, %v3046_v37 }
 0xba1   : > { %3508 = vmatmul.mubr.msk.f32.vlgmr.msra.gmra.mrb[20].mxu1 %vm1142_vm2, %v2421_v40  ;;  %v3048_v40 = vld [vmem:[%s4288_s24 + $0x30] sm:$0xff] }
 0xba2   : > { %3516 = vmatpush3.msra.mxu1 %v2589_v41  ;;  %3517 = vmatprep.mubr.msk.f32.mxu1 %vm3706_vm1, %v3707_v18  ;;  %v3049_v41 = vld [vmem:[%s4288_s24 + $0x38] sm:$0xff] }
 0xba3   : > { %3525 = vmatprep.subr.mxu1 %v3707_v18 }
 0xba5   : > { %v3688_v42 = vpop.eup %3687 }
 0xba6   : > { %v2587_v43 = vmul.f32 %v3688_v42, %v3680_v26  ;;  %v3277_v26 = vld [vmem:[%s4284_s20] ss:$0 sm:$0xff]  ;;  %v3635_v42 = vpack.c.bf16 %v3049_v41, %v3048_v40 }
 0xba8   : > { %3518 = vmatmul.mubr.msk.f32.vlgmr.msra.gmra.mrb[22].mxu1 %vm1142_vm2, %v2587_v43  ;;  %v3279_v43 = vld [vmem:[%s4287_s23] ss:$0 sm:$0xff] }
 0xba9   : > { %3527 = vmatprep.mubr.msk.f32.mxu1 %vm3706_vm1, %v3707_v18 }
 0xbc8   : > { %v2750_v44 = vpop.xlane.xlu1 %2749 }
 0xbc9   : > { %3689 = vrcp.f32 %v2750_v44 }
 0xbcc   : > { %v2754_v45 = vpop.permute.xlu1 %2753 }
 0xbcd   : > { %3526 = vmatpush3.msra.mxu1 %v2754_v45 }
 0xbce   : > { %3619 = vmatprep.subr.bf16.mxu1 %v3705_v10 }
 0xbd3   : > { %v3690_v46 = vpop.eup %3689 }
 0xbd4   : > { %v2752_v47 = vmul.f32 %v3690_v46, %v3684_v34  ;;  %v3044_v34 = vld [vmem:[%s4288_s24 + $0x10] sm:$0xff] }
 0xbd5   : > { %v3629_v36 = vpack.c.bf16 %v3045_v35, %v3044_v34 }
 0xbd6   : > { %3528 = vmatmul.mubr.msk.f32.vlgmr.msra.gmra.mrb[24].mxu1 %vm1142_vm2, %v2752_v47 }
 0xbd7   : > { %3549 = vmatprep.mubr.msk.f32.mxu1 %vm3706_vm1, %v3707_v18 }
 0xc02   : > { %v2329_v48 = vpop.f32.mrb[18].mxu1 }
 0xc03   : > { %v3499_v49 = vpop.f32.mrb[19].mxu1 }
 0xc74   : > { %v2495_v56 = vpop.f32.mrb[20].mxu1 }
 0xc75   : > { %2830 = vrot.lane.b32.xlu0 %v2495_v56, %s4334_s7  ;;  %v3509_v57 = vpop.f32.mrb[21].mxu1 }
 0xc7b   : > { %v2660_v58 = vpop.f32.mrb[22].mxu1 }
 0xc7c   : > { %2834 = vrot.lane.b32.xlu1 %v2660_v58, %s4335_s0  ;;  %v3519_v59 = vpop.f32.mrb[23].mxu1 }
 0xca9   : > { %v2825_v60 = vpop.f32.mrb[24].mxu1 }
 0xcaa   : > { %2838 = vrot.lane.b32.xlu0 %v2825_v60, %s4336_s11  ;;  %v3529_v61 = vpop.f32.mrb[25].mxu1 }
 0xce7   : > { %v2831_v62 = vpop.permute.xlu0 %2830 }
 0xce8   : > { %v2841_v1 = vsel %vm1142_vm2, %v2329_v48, %v2831_v62 }
 0xcee   : > { %v2835_v63 = vpop.permute.xlu1 %2834 }
 0xcef   : > { %v2842_v2 = vsel %vm1812_vm4, %v2841_v1, %v2835_v63 }
 0xd1c   : > { %v2839_v3 = vpop.permute.xlu0 %2838 }
 0xd1d   : > { %v2843_v4 = vsel %vm1814_vm5, %v2842_v2, %v2839_v3  ;;  %v3283_v3 = vld [vmem:[%s4290_s26] ss:$0 sm:$0xff] }
 0xd1e   : > { %3539 = vmatmul.mubr.msk.f32.vlgmr.msra.gmra.mrb[20].mxu0 %vm868_vm0, %v2843_v4 }
 0xd1f   : > { %3568 = vmatprep.mubr.msk.f32.mxu0 %vm3706_vm1, %v3707_v18  ;;  %3627 = vmatpush3.bf16.msra.mxu0 %v3626_v33 }
 0xd20   : > { %3628 = vmatprep.subr.bf16.mxu0 %v3705_v10 }
 0xd23   : > { %3630 = vmatpush3.bf16.msra.mxu0 %v3629_v36 }
 0xd24   : > { %3631 = vmatprep.subr.bf16.mxu0 %v3705_v10 }
 0xd27   : > { %3633 = vmatpush3.bf16.msra.mxu0 %v3632_v39 }
 0xd28   : > { %3634 = vmatprep.subr.bf16.mxu0 %v3705_v10 }
 0xd2b   : > { %3636 = vmatpush3.bf16.msra.mxu0 %v3635_v42 }
 0xdf1   : > { %v2919_v6 = vpop.f32.mrb[20].mxu0 }
 0xdf2   : > { %v2920_v7 = vadd.f32 %v3275_v5, %v2919_v6  ;;  %v3540_v8 = vpop.f32.mrb[21].mxu0  ;;  %v3284_v5 = vld [vmem:[%s4291_s27] ss:$0 sm:$0xff] }
 0xdf4   : > { %v4188_v11 = vadd.f32 %v2920_v7, %v4035_v9  ;;  %v2954_v9 = vld [vmem:[%s4286_s22 + $0x8] sm:$0xff] }
 0xdf5   : > { %v3620_v0 = vpack.c.bf16 %v2954_v9, %v2953_v17 }
 0xdf6   : > { %v2926_v12 = vsel %vm868_vm0, %v4188_v11, 0.0 }
 0xdf7   : > { %2927 = vadd.xlane.f32.xlu1 %v2926_v12  ;;  %3621 = vmatpush3.bf16.msra.mxu1 %v3620_v0 }
 0xdf8   : > { %3622 = vmatprep.subr.bf16.mxu1 %v3705_v10 }
 0xdfb   : > { %3624 = vmatpush3.bf16.msra.mxu1 %v3623_v21 }
 0xe84   : > { %v2928_v13 = vpop.xlane.xlu1 %2927 }
 0xe85   : > { %v2929_v14 = vmul.f32 0.03125, %v2928_v13 }
 0xe87   : > { %v2930_v15 = vsub.f32 %v4188_v11, %v2929_v14 }
 0xe89   : > { %v2931_v16 = vmul.f32 %v2930_v15, %v2930_v15 }
 0xe8b   : > { %v2932_v18 = vsel %vm868_vm0, %v2931_v16, 0.0 }
 0xe8c   : > { %2933 = vadd.xlane.f32.xlu0 %v2932_v18 }
 0xf19   : > { %v2934_v22 = vpop.xlane.xlu0 %2933 }
 0xf1a   : > { %v2935_v23 = vmul.f32 0.03125, %v2934_v22 }
 0xf1c   : > { %v2936_v24 = vadd.f32 1e-05, %v2935_v23 }
 0xf1e   : > { %3691 = vrsqrt.f32 %v2936_v24 }
 0xf28   : > { %v3692_v25 = vpop.eup %3691 }
 0xf29   : > { %v2938_v27 = vmul.f32 %v3692_v25, %v2930_v15 }
 0xf2b   : > { %v2945_v29 = vmul.f32 %v3277_v26, %v2938_v27 }
 0xf2d   : > { %v2952_v30 = vadd.f32 %v3278_v28, %v2945_v29 }
 0xf2f   : > { %3550 = vmatmul.mubr.msk.f32.vlgmr.msra.gmra.mrb[26].mxu1 %vm868_vm0, %v2952_v30 }
0x1002   : > { %v3033_v44 = vpop.f32.mrb[26].mxu1 }
0x1003   : > { %v3034_v45 = vadd.f32 %v3279_v43, %v3033_v44  ;;  %v3551_v46 = vpop.f32.mrb[27].mxu1 }
0x1005   : > { %v3038_v47 = vmul.f32 0.70710677, %v3034_v45  ;;  %v3037_v48 = vmul.f32 0.5, %v3034_v45 }
0x1007   : > { %3693 = verf.f32 %v3038_v47 }
0x1011   : > { %v3694_v10 = vpop.eup %3693 }
0x1012   : > { %v3040_v49 = vadd.f32 1.0, %v3694_v10 }
0x1014   : > { %v3041_v50 = vmul.f32 %v3040_v49, %v3037_v48 }
0x1016   : > { %3569 = vmatmul.mubr.msk.f32.vlgmr.msra.gmra.mrb[22].mxu0 %vm3057_vm6, %v3041_v50 }
0x10e9   : > { %v3127_v52 = vpop.f32.mrb[22].mxu0 }
0x10ea   : > { %v3128_v53 = vadd.f32 %v3281_v51, %v3127_v52  ;;  %v3570_v54 = vpop.f32.mrb[23].mxu0 }
0x10ec   : > { %v3131_v55 = vadd.f32 %v3128_v53, %v4188_v11 }
0x10ee   : > { %v3134_v56 = vsel %vm868_vm0, %v3131_v55, 0.0 }
0x10ef   : > { %3135 = vadd.xlane.f32.xlu0 %v3134_v56 }
0x117c   : > { %v3136_v57 = vpop.xlane.xlu0 %3135 }
0x117d   : > { %v3137_v58 = vmul.f32 0.03125, %v3136_v57 }
0x117f   : > { %v3138_v59 = vsub.f32 %v3131_v55, %v3137_v58 }
0x1181   : > { %v3139_v60 = vmul.f32 %v3138_v59, %v3138_v59 }
0x1183   : > { %v3140_v61 = vsel %vm868_vm0, %v3139_v60, 0.0 }
0x1184   : > { %3141 = vadd.xlane.f32.xlu1 %v3140_v61 }
0x1211   : > { %v3142_v62 = vpop.xlane.xlu1 %3141 }
0x1212   : > { %v3143_v63 = vmul.f32 0.03125, %v3142_v62 }
0x1214   : > { %v3144_v1 = vadd.f32 1e-05, %v3143_v63 }
0x1216   : > { %3695 = vrsqrt.f32 %v3144_v1 }
0x1220   : > { %v3696_v2 = vpop.eup %3695 }
0x1221   : > { %v3146_v4 = vmul.f32 %v3696_v2, %v3138_v59 }
0x1223   : > { %v3153_v6 = vmul.f32 %v3283_v3, %v3146_v4 }
0x1225   : > { %v3160_v7 = vadd.f32 %v3284_v5, %v3153_v6 }
0x1227   : > { %3161 = vst.msk [vmem:[%s857_s2] sm:$0xff] %vm868_vm0, %v3160_v7 }
0x1228 PF: > { %s38_s8 = sadd.s32 1, %s3703_s8  }
0x1229   : > { %p35_p4 = scmp.ge.s32.totalorder %s38_s8, 4  }
0x122b   :  { %37 = sbr.rel (!%p35_p4) target bundleno = 14 (0xe), region = 165 }

</bundles_post_ra>
